<compile_context>
chip_gen: v7x
topology: tpu7x:2x2x1
jax: 0.10.0
libtpu: 0.0.40
codegen_flags: <defaults>
</compile_context>

<pallas_src>
import numpy as np
import jax
import jax.numpy as jnp
from jax.experimental import pallas as pl
from jax.experimental.pallas import tpu as pltpu

GRID = 16                  # dense voxel grid H = W = GRID
HW = GRID * GRID           # flattened grid size = 256
KSIZE = 3                  # conv kernel size
C_OUT = 8                  # conv output channels
F_OUT = 16                 # encoder output feature size (per edge)

BIAS_COL = HW              # column of K_all / row of the voxel block carrying the bias
HW_IN = 384                # HW + bias row, padded up to a multiple of 128 for clean MXU tiles
CHW = C_OUT * HW           # 2048 -- rows of K_all / columns of P


# ---------------------------------------------------------------------------
# Pallas kernel: batched per-edge CNN encoder hot path (pure MXU work)
# ---------------------------------------------------------------------------
def _encoder_kernel(v_ref, k_ref, p_ref, fb_ref, o_ref):
    # v_ref : (HW_IN, TE)  bf16  flattened voxel grids (one edge per lane) + 1.0 bias row
    # k_ref : (CHW, HW_IN) bf16  banded conv matrix (boundary zeros + bias column baked in)
    # p_ref : (F_OUT, CHW) f32   pooling (1/HW) + FC weights
    # fb_ref: (F_OUT, 1)   f32   FC bias
    # o_ref : (F_OUT, TE)  f32   lane-dense output block (transposed features)
    z = jnp.dot(k_ref[...], v_ref[...],
                preferred_element_type=jnp.float32)          # (CHW, TE)  conv + conv bias
    act = jnp.maximum(z, 0.0)                                # ReLU on the VPU
    feats = jnp.dot(p_ref[...], act,
                    preferred_element_type=jnp.float32)      # (F_OUT, TE) mean pool + FC
    o_ref[...] = feats + fb_ref[...]


def _cnn_encoder(vox_blocks, params, num_edges):
    """vox_blocks: (n_blocks, HW_IN, TE) bf16 -> (num_edges, F_OUT) f32."""
    k_all, p_mat, fb_col = params
    n_blocks, hw_in, te = vox_blocks.shape
    out = pl.pallas_call(
        _encoder_kernel,
        out_shape=jax.ShapeDtypeStruct((F_OUT, n_blocks * te), jnp.float32),
        grid=(n_blocks,),
        in_specs=[
            pl.BlockSpec((None, hw_in, te), lambda i: (i, 0, 0)),   # contiguous per-step DMA
            pl.BlockSpec((CHW, hw_in), lambda i: (0, 0)),           # resident conv matrix
            pl.BlockSpec((F_OUT, CHW), lambda i: (0, 0)),           # resident pool+FC matrix
            pl.BlockSpec((F_OUT, 1), lambda i: (0, 0)),             # resident FC bias
        ],
        out_specs=pl.BlockSpec((F_OUT, te), lambda i: (0, i)),
        compiler_params=pltpu.CompilerParams(
            dimension_semantics=("parallel",),
            vmem_limit_bytes=32 * 1024 * 1024),
    )(vox_blocks, k_all, p_mat, fb_col)
    return out.T[:num_edges]                                        # (E, F_OUT)


# ---------------------------------------------------------------------------
# Host-side parameter init: fold conv / pool / FC into the two MXU matrices
# ---------------------------------------------------------------------------
def init_params(key):
    k1, k2, k3, k4 = jax.random.split(key, 4)
    # torch Conv2d weight layout (O, I, kH, kW) with I=1; torch Linear weight (out, in)
    conv_w = np.asarray(jax.random.normal(k1, (C_OUT, 1, KSIZE, KSIZE), jnp.float32)) * 0.1
    conv_b = np.asarray(jax.random.normal(k2, (C_OUT,), jnp.float32)) * 0.01
    fc_w = np.asarray(jax.random.normal(k3, (F_OUT, C_OUT), jnp.float32)) * 0.1
    fc_b = np.asarray(jax.random.normal(k4, (F_OUT,), jnp.float32)) * 0.01

    # Banded conv matrix: K_all[c*HW + p, q] = w[c, 0, ky, kx] where grid cell q is the
    # (ky-1, kx-1) neighbour of cell p; out-of-image taps stay zero.  The BIAS_COL column
    # multiplies the constant 1.0 row of every voxel block -> adds the conv bias.
    k_all = np.zeros((C_OUT, GRID, GRID, HW_IN), np.float32)
    for ky in range(KSIZE):
        dy = ky - 1
        for kx in range(KSIZE):
            dx = kx - 1
            for py in range(GRID):
                qy = py + dy
                if not (0 <= qy < GRID):
                    continue
                for px in range(GRID):
                    qx = px + dx
                    if not (0 <= qx < GRID):
                        continue
                    k_all[:, py, px, qy * GRID + qx] = conv_w[:, 0, ky, kx]
    k_all[:, :, :, BIAS_COL] = conv_b[:, None, None]
    k_all = k_all.reshape(CHW, HW_IN)

    # Pooling + FC: global mean over HW cells folded into the FC weights (1/HW).
    p_mat = np.repeat(fc_w / float(HW), HW, axis=1)                 # (F_OUT, CHW)

    return (jnp.asarray(k_all, dtype=jnp.bfloat16),
            jnp.asarray(p_mat, dtype=jnp.float32),
            jnp.asarray(fc_b.reshape(F_OUT, 1), dtype=jnp.float32))


# ---------------------------------------------------------------------------
# Host-side voxelization: one edge per lane, one contiguous slab per grid step
# ---------------------------------------------------------------------------
def _choose_te(num_edges):
    # <=256 edges: TE=128 keeps >=2 parallel grid steps when possible (v7x has 2 TCs)
    return 128 if num_edges <= 256 else 256


def _voxelize_blocks(cnn_data, num_edges, te):
    """Scatter points onto (n_blocks, HW_IN, te) flattened grids (bf16)."""
    n_blocks = (num_edges + te - 1) // te
    vox = np.zeros((n_blocks, HW_IN, te), np.float32)
    vox[:, BIAS_COL, :] = 1.0                       # constant row -> conv bias via K_all
    if cnn_data.shape[0] > 0:
        # cnn_data columns: [x, y, z, edge_id, value]
        ix = np.clip(np.floor(cnn_data[:, 0]).astype(np.int32), 0, GRID - 1)
        iy = np.clip(np.floor(cnn_data[:, 1]).astype(np.int32), 0, GRID - 1)
        eid = cnn_data[:, 3].astype(np.int32)
        np.add.at(vox, (eid // te, iy * GRID + ix, eid % te),
                  cnn_data[:, 4].astype(np.float32))
    return jnp.asarray(vox, dtype=jnp.bfloat16)


# ---------------------------------------------------------------------------
# ClustCNNEdgeEncoder.forward
# ---------------------------------------------------------------------------
def clust_cnn_edge_encoder(data, clusts, edge_index, params):
    data = np.asarray(data)
    edge_index = np.asarray(edge_index)

    if edge_index.shape[1] == 0:
        return jnp.zeros((0, F_OUT), jnp.float32)

    half_idx = edge_index.shape[1] // 2
    undirected = (edge_index.shape[1] % 2 == 0 and
                  [int(edge_index[1, 0]), int(edge_index[0, 0])] ==
                  [int(v) for v in edge_index[:, half_idx]])
    if undirected:
        edge_index = edge_index[:, :half_idx]

    rows = []
    for i, e in enumerate(edge_index.T):
        ci, cj = clusts[int(e[0])], clusts[int(e[1])]
        block = np.concatenate([data[ci, :5], data[cj, :5]], axis=0).astype(np.float32)
        block[:, 3] = float(i)          # batch column <- edge id (as in the torch code)
        rows.append(block)
    cnn_data = (np.concatenate(rows, axis=0) if rows
                else np.zeros((0, 5), np.float32))

    num_edges = edge_index.shape[1]
    te = _choose_te(num_edges)
    vox_blocks = _voxelize_blocks(cnn_data, num_edges, te)  # (n_blocks, HW_IN, TE) bf16
    feats = _cnn_encoder(vox_blocks, params, num_edges)     # (E, F_OUT) -- Pallas hot path

    if undirected:
        feats = jnp.concatenate([feats, feats], axis=0)
    return feats


# ---------------------------------------------------------------------------
if __name__ == "__main__":
    key = jax.random.PRNGKey(0)
    k_data, k_params = jax.random.split(key)

    # (N, 5) point cloud: [x, y, z, batch_id, value]
    N = 64
    coords = jax.random.uniform(k_data, (N, 3), minval=0.0, maxval=float(GRID))
    vals = jax.random.uniform(jax.random.fold_in(k_data, 1), (N, 1))
    batch_col = jnp.zeros((N, 1), jnp.float32)
    data = jnp.concatenate([coords, batch_col, vals], axis=1).astype(jnp.float32)

    # 4 clusters of 16 points each
    clusts = [np.arange(0, 16), np.arange(16, 32),
              np.arange(32, 48), np.arange(48, 64)]

    # undirected edge_index: second half is the reverse of the first half
    edge_index = np.array([[0, 0, 1, 1, 2, 2],
                           [1, 2, 2, 0, 0, 1]], dtype=np.int64)

    params = init_params(k_params)
    feats = clust_cnn_edge_encoder(data, clusts, edge_index, params)
    feats = jax.block_until_ready(feats)

    assert feats.shape == (edge_index.shape[1], F_OUT), feats.shape
    assert bool(jnp.all(jnp.isfinite(feats)))
    # undirected -> second half duplicates first half
    assert bool(jnp.allclose(feats[:3], feats[3:]))
    print("KERNEL_OK")
</pallas_src>

<mosaic_0001>
module attributes {stable_mosaic.version = 11 : i64} {
  func.func @_encoder_kernel(%arg0: i32, %arg1: memref<1x384x128xbf16, #tpu.memory_space<vmem>>, %arg2: memref<2048x384xbf16, #tpu.memory_space<vmem>>, %arg3: memref<16x2048xf32, #tpu.memory_space<vmem>>, %arg4: memref<16x1xf32, #tpu.memory_space<vmem>>, %arg5: memref<16x128xf32, #tpu.memory_space<vmem>>) attributes {dimension_semantics = [#tpu.dimension_semantics<parallel>], iteration_bounds = array<i64: 1>, scalar_prefetch = 0 : i64, scratch_operands = 0 : i64, tpu.core_type = #tpu.core_type<tc>, window_params = [{transform_indices = @transform_0, window_bounds = array<i64: 1, 384, 128>}, {pipeline_mode = #tpu.pipeline_mode<synchronous>, transform_indices = @transform_1, window_bounds = array<i64: 2048, 384>}, {pipeline_mode = #tpu.pipeline_mode<synchronous>, transform_indices = @transform_2, window_bounds = array<i64: 16, 2048>}, {pipeline_mode = #tpu.pipeline_mode<synchronous>, transform_indices = @transform_3, window_bounds = array<i64: 16, 1>}, {transform_indices = @transform_4, window_bounds = array<i64: 16, 128>}]} {
    %c0 = arith.constant 0 : index
    %c0_0 = arith.constant 0 : index
    %0 = vector.load %arg2[%c0, %c0_0] : memref<2048x384xbf16, #tpu.memory_space<vmem>>, vector<2048x384xbf16>
    %c0_1 = arith.constant 0 : index
    %c0_2 = arith.constant 0 : index
    %c0_3 = arith.constant 0 : index
    %1 = vector.load %arg1[%c0_1, %c0_2, %c0_3] : memref<1x384x128xbf16, #tpu.memory_space<vmem>>, vector<1x384x128xbf16>
    %2 = vector.shape_cast %1 : vector<1x384x128xbf16> to vector<384x128xbf16>
    %cst = arith.constant dense<0.000000e+00> : vector<2048x128xf32>
    %3 = tpu.matmul %0, %2, %cst {dimension_numbers = #tpu.dot_dimension_numbers<[1], [0], [0], [1], [0, 0, 1, 1], [], []>} : vector<2048x384xbf16>, vector<384x128xbf16>, vector<2048x128xf32> -> vector<2048x128xf32>
    %cst_4 = arith.constant 0.000000e+00 : f32
    %4 = vector.broadcast %cst_4 : f32 to vector<2048x128xf32>
    %5 = arith.maximumf %3, %4 : vector<2048x128xf32>
    %c0_5 = arith.constant 0 : index
    %c0_6 = arith.constant 0 : index
    %6 = vector.load %arg3[%c0_5, %c0_6] : memref<16x2048xf32, #tpu.memory_space<vmem>>, vector<16x2048xf32>
    %cst_7 = arith.constant dense<0.000000e+00> : vector<16x128xf32>
    %7 = tpu.matmul %6, %5, %cst_7 {dimension_numbers = #tpu.dot_dimension_numbers<[1], [0], [0], [1], [0, 0, 1, 1], [], []>} : vector<16x2048xf32>, vector<2048x128xf32>, vector<16x128xf32> -> vector<16x128xf32>
    %c0_8 = arith.constant 0 : index
    %c0_9 = arith.constant 0 : index
    %8 = vector.load %arg4[%c0_8, %c0_9] : memref<16x1xf32, #tpu.memory_space<vmem>>, vector<16x1xf32>
    %9 = vector.broadcast %8 : vector<16x1xf32> to vector<16x128xf32>
    %10 = arith.addf %7, %9 : vector<16x128xf32>
    %c0_10 = arith.constant 0 : index
    %c0_11 = arith.constant 0 : index
    %11 = vector.load %arg5[%c0_10, %c0_11] : memref<16x128xf32, #tpu.memory_space<vmem>>, vector<16x128xf32>
    tpu.vector_store %arg5[%c0_10, %c0_11], %10 {strides = array<i32>} : memref<16x128xf32, #tpu.memory_space<vmem>>, vector<16x128xf32>,
    return
  }
  func.func @transform_0(%arg0: i32) -> (i32, i32, i32) {
    %c0_i32 = arith.constant 0 : i32
    %c0_i32_0 = arith.constant 0 : i32
    %c0_i32_1 = arith.constant 0 : i32
    return %arg0, %c0_i32, %c0_i32_0 : i32, i32, i32
  }
  func.func @transform_1(%arg0: i32) -> (i32, i32) {
    %c0_i32 = arith.constant 0 : i32
    %c0_i32_0 = arith.constant 0 : i32
    %c0_i32_1 = arith.constant 0 : i32
    return %c0_i32, %c0_i32_0 : i32, i32
  }
  func.func @transform_2(%arg0: i32) -> (i32, i32) {
    %c0_i32 = arith.constant 0 : i32
    %c0_i32_0 = arith.constant 0 : i32
    %c0_i32_1 = arith.constant 0 : i32
    return %c0_i32, %c0_i32_0 : i32, i32
  }
  func.func @transform_3(%arg0: i32) -> (i32, i32) {
    %c0_i32 = arith.constant 0 : i32
    %c0_i32_0 = arith.constant 0 : i32
    %c0_i32_1 = arith.constant 0 : i32
    return %c0_i32, %c0_i32_0 : i32, i32
  }
  func.func @transform_4(%arg0: i32) -> (i32, i32) {
    %c0_i32 = arith.constant 0 : i32
    %c0_i32_0 = arith.constant 0 : i32
    return %c0_i32, %arg0 : i32, i32
  }
}

</mosaic_0001>

<bundles_post_ra>
// kernel: tpu_custom_call.1
= control target key start
LH: loop header
LB: loop body
LE: loop exit
PB: predicated region body
PF: predicated region fallthrough
CT: control target
= control target key end

     0   :  { %9 = vsyncpa [#allocation3], 0  ;;  %s9020_s0 = inlined_call_operand.hbm [shape: bf16[1,384,128], index: 0, kind: input, shape index: {}]   ;;  %s9021_s1 = inlined_call_operand.hbm [shape: bf16[2048,384], index: 1, kind: input, shape index: {}]   ;;  %s9022_s2 = inlined_call_operand.hbm [shape: f32[16,2048], index: 2, kind: input, shape index: {}]   ;;  %s9023_s3 = inlined_call_operand.vmem [shape: f32[16,1], index: 3, kind: input, shape index: {}]   ;;  %s9024_s4 = inlined_call_operand.hbm [shape: f32[16,128], index: 4, kind: output, shape index: {}]  }
   0x1   :  { %10 = vsyncpa [#allocation6], 0 }
   0x2   :  { %11 = vsyncpa [#allocation4], 0  ;;  %s7897_s15 = smov [#allocation5]   ;;  %s7803_s19 = scalar_lea.hbm %s9021_s1, 49152 }
   0x3   :  { %s29_s16 = sshll.u32 %s7897_s15, 4  ;;  %p7804_p0 = scmp.ne.s32.totalorder %s9021_s1, %s7803_s19  ;;  %s30_s16 = int_to_ptr.vmem [resolvable:$true] %s29_s16 }
   0x4   :  { %p7807_p1 = scmp.lt.u32.totalorder %s7803_s19, %s9021_s1 }
   0x6   :  { %p7809_p2 = pnand %p7807_p1, %p7804_p0 }
   0x8   :  { %7812 = shalt.err (!%p7809_p2)
}
   0x9   :  { %s7813_s24 = scalar_lea.vmem %s30_s16, 49152  ;;  %p7818_p4 = scmp.lt.s32.totalorder %s30_s16, %s30_s16 }
   0xa   :  { %p7814_p3 = scmp.ne.s32.totalorder %s30_s16, %s7813_s24  ;;  %p7819_p5 = scmp.lt.s32.totalorder %s7813_s24, %s7813_s24 }
   0xc   :  { %p7820_p6 = por %p7819_p5, %p7818_p4 }
   0xe   :  { %p7821_p7 = pnand %p7820_p6, %p7814_p3 }
  0x10   :  { %7824 = shalt.err (!%p7821_p7)
}
  0x11   :  { %s7898_s25 = smov 192   ;;  %s7899_s26 = smov 12  }
  0x12   :  { %35 = dma.hbm_to_vmem [thread:$0]  %s9021_s1, 49152, %s30_s16, [#allocation6], %s7898_s25, %s7898_s25, %s7899_s26  }
  0x13   :  { %s7900_s29 = smov [#allocation2]   ;;  %s7825_s7 = scalar_lea.hbm %s9020_s0, 3072 }
  0x14   :  { %s17_s30 = sshll.u32 %s7900_s29, 4  ;;  %p7826_p8 = scmp.ne.s32.totalorder %s9020_s0, %s7825_s7  ;;  %s18_s30 = int_to_ptr.vmem [resolvable:$true] %s17_s30 }
  0x15   :  { %p7829_p9 = scmp.lt.u32.totalorder %s7825_s7, %s9020_s0 }
  0x17   :  { %p7831_p10 = pnand %p7829_p9, %p7826_p8 }
  0x19   :  { %7834 = shalt.err (!%p7831_p10)
}
  0x1a   :  { %s7835_s12 = scalar_lea.vmem %s18_s30, 3072  ;;  %p7840_p12 = scmp.lt.s32.totalorder %s18_s30, %s18_s30 }
  0x1b   :  { %p7836_p11 = scmp.ne.s32.totalorder %s18_s30, %s7835_s12  ;;  %p7841_p13 = scmp.lt.s32.totalorder %s7835_s12, %s7835_s12 }
  0x1d   :  { %p7842_p0 = por %p7841_p13, %p7840_p12 }
  0x1f   :  { %p7843_p1 = pnand %p7842_p0, %p7836_p11 }
  0x21   :  { %7846 = shalt.err (!%p7843_p1)
}
  0x22   :  { %s7901_s1 = smov 64   ;;  %s7902_s13 = smov 4  }
  0x23   :  { %23 = dma.hbm_to_vmem [thread:$0]  %s9020_s0, 3072, %s18_s30, [#allocation3], %s7901_s1, %s7901_s1, %s7902_s13  }
  0x24   :  { %s7903_s16 = smov [#allocation7]   ;;  %s7847_s20 = scalar_lea.hbm %s9022_s2, 4096 }
  0x25   :  { %s41_s17 = sshll.u32 %s7903_s16, 4  ;;  %p7848_p2 = scmp.ne.s32.totalorder %s9022_s2, %s7847_s20  ;;  %s42_s17 = int_to_ptr.vmem [resolvable:$true] %s41_s17 }
  0x26   :  { %p7851_p3 = scmp.lt.u32.totalorder %s7847_s20, %s9022_s2 }
  0x28   :  { %p7853_p4 = pnand %p7851_p3, %p7848_p2 }
  0x2a   :  { %7856 = shalt.err (!%p7853_p4)
}
  0x2b   :  { %s7857_s25 = scalar_lea.vmem %s42_s17, 4096  ;;  %p7862_p6 = scmp.lt.s32.totalorder %s42_s17, %s42_s17 }
  0x2c   :  { %p7858_p5 = scmp.ne.s32.totalorder %s42_s17, %s7857_s25  ;;  %p7863_p7 = scmp.lt.s32.totalorder %s7857_s25, %s7857_s25 }
  0x2e   :  { %p7864_p8 = por %p7863_p7, %p7862_p6 }
  0x30   :  { %p7865_p9 = pnand %p7864_p8, %p7858_p5 }
  0x32   :  { %7868 = shalt.err (!%p7865_p9)
}
  0x33   :  { %s7904_s0 = smov 2048   ;;  %s7905_s26 = smov 128  }
  0x34   :  { %47 = dma.hbm_to_vmem [thread:$0]  %s9022_s2, 4096, %s42_s17, [#allocation6], %s7904_s0, %s7904_s0, %s7905_s26  }
  0x35   :  { %7891 = dma.done.wait [#allocation3], 3072  }
  0x36   :  { %7892 = vsyncadd [#allocation3], 4294964224 }
  0x37   :  { %7893 = dma.done.wait [#allocation6], 53248  }
  0x38   :  { %7894 = vsyncadd [#allocation6], 4294914048  ;;  %v7906_v0 = vmov 0   ;;  %v7267_v1 = vld [vmem:[#allocation2] sm:$0xff]   ;;  %v7268_v2 = vld [vmem:[#allocation2 + $0x8] sm:$0xff]  }
  0x39   :  { %2812 = vmatprep.subr.bf16.mxu0 %v7906_v0  ;;  %7222 = vmatprep.subr.bf16.mxu1 %v7906_v0  ;;  %v7269_v3 = vld [vmem:[#allocation2 + $0x10] sm:$0xff]   ;;  %v7270_v4 = vld [vmem:[#allocation2 + $0x18] sm:$0xff]   ;;  %v7271_v5 = vld [vmem:[#allocation2 + $0x20] sm:$0xff]  }
  0x3a   :  { %7266 = vset.pattern.permute.xlu0 %v7906_v0  ;;  %2813 = vmatpush1.bf16.msra.mxu0 %v7267_v1  ;;  %v7285_v6 = vld [vmem:[#allocation5 + $0x4] ss:$12 sps:$4 sm:$0xff]   ;;  %v7272_v7 = vld [vmem:[#allocation2 + $0x28] sm:$0xff]   ;;  %v7274_v10 = vld [vmem:[#allocation2 + $0x38] sm:$0xff]  }
  0x3b   :  { %7238 = vmatpush1.bf16.msra.mxu1 %v7267_v1  ;;  %2814 = vmatprep.subr.bf16.mxu0 %v7906_v0  ;;  %v7288_v8 = vld [vmem:[#allocation5 + $0xa6c] ss:$12 sps:$4 sm:$0xff]   ;;  %v7273_v9 = vld [vmem:[#allocation2 + $0x30] sm:$0xff]   ;;  %v7275_v11 = vld [vmem:[#allocation2 + $0x40] sm:$0xff]  }
  0x3c   :  { %7223 = vmatprep.subr.bf16.mxu1 %v7906_v0  ;;  %2844 = vmatprep.mubr.bf16.mxu0 %v7285_v6  ;;  %v7276_v12 = vld [vmem:[#allocation2 + $0x48] sm:$0xff]   ;;  %v7277_v13 = vld [vmem:[#allocation2 + $0x50] sm:$0xff]   ;;  %v7278_v14 = vld [vmem:[#allocation2 + $0x58] sm:$0xff]  }
  0x3d   :  { %3732 = vmatprep.mubr.bf16.mxu1 %v7288_v8  ;;  %v7279_v15 = vld [vmem:[#allocation2 + $0x60] sm:$0xff]   ;;  %v7280_v16 = vld [vmem:[#allocation2 + $0x68] sm:$0xff]   ;;  %v7281_v17 = vld [vmem:[#allocation2 + $0x70] sm:$0xff]  }
  0x3e   :  { %2815 = vmatpush1.bf16.msra.mxu0 %v7268_v2  ;;  %v7282_v18 = vld [vmem:[#allocation2 + $0x78] sm:$0xff]   ;;  %v7367_v19 = vld [vmem:[#allocation2 + $0x80] sm:$0xff]   ;;  %v7286_v21 = vld [vmem:[#allocation5 + $0xa68] ss:$12 sps:$4 sm:$0xff]  }
  0x3f   :  { %7239 = vmatpush1.bf16.msra.mxu1 %v7268_v2  ;;  %2816 = vmatprep.subr.bf16.mxu0 %v7906_v0  ;;  %v7283_v20 = vld [vmem:[#allocation5] ss:$12 sps:$4 sm:$0xff]   ;;  %v7289_v22 = vld [vmem:[#allocation5 + $0x1c] ss:$12 sps:$4 sm:$0xff]   ;;  %v7291_v23 = vld [vmem:[#allocation5 + $0xa84] ss:$12 sps:$4 sm:$0xff]  }
  0x40   :  { %7224 = vmatprep.subr.bf16.mxu1 %v7906_v0  ;;  %v7368_v24 = vld [vmem:[#allocation2 + $0x88] sm:$0xff]   ;;  %v7293_v25 = vld [vmem:[#allocation5 + $0x18] ss:$12 sps:$4 sm:$0xff]   ;;  %v7375_v27 = vld [vmem:[#allocation2 + $0x90] sm:$0xff]  }
  0x41   :  { %v7294_v26 = vld [vmem:[#allocation5 + $0xa80] ss:$12 sps:$4 sm:$0xff]   ;;  %v7297_v29 = vld [vmem:[#allocation5 + $0xa9c] ss:$12 sps:$4 sm:$0xff]   ;;  %v7300_v33 = vld [vmem:[#allocation5 + $0xa98] ss:$12 sps:$4 sm:$0xff]  }
  0x42   :  { %2817 = vmatpush1.bf16.msra.mxu0 %v7269_v3  ;;  %v7295_v28 = vld [vmem:[#allocation5 + $0x34] ss:$12 sps:$4 sm:$0xff]   ;;  %v7376_v30 = vld [vmem:[#allocation2 + $0x98] sm:$0xff]   ;;  %v7384_v36 = vld [vmem:[#allocation2 + $0xa8] sm:$0xff]  }
  0x43   :  { %7240 = vmatpush1.bf16.msra.mxu1 %v7269_v3  ;;  %2818 = vmatprep.subr.bf16.mxu0 %v7906_v0  ;;  %v7383_v31 = vld [vmem:[#allocation2 + $0xa0] sm:$0xff]   ;;  %v7299_v32 = vld [vmem:[#allocation5 + $0x30] ss:$12 sps:$4 sm:$0xff]   ;;  %v7301_v34 = vld [vmem:[#allocation5 + $0x4c] ss:$12 sps:$4 sm:$0xff]  }
  0x44   :  { %7225 = vmatprep.subr.bf16.mxu1 %v7906_v0  ;;  %v7303_v35 = vld [vmem:[#allocation5 + $0xab4] ss:$12 sps:$4 sm:$0xff]   ;;  %v7306_v39 = vld [vmem:[#allocation5 + $0xab0] ss:$12 sps:$4 sm:$0xff]   ;;  %v7309_v41 = vld [vmem:[#allocation5 + $0xacc] ss:$12 sps:$4 sm:$0xff]  }
  0x45   :  { %v7391_v37 = vld [vmem:[#allocation2 + $0xb0] sm:$0xff]   ;;  %v7392_v42 = vld [vmem:[#allocation2 + $0xb8] sm:$0xff]   ;;  %v7311_v43 = vld [vmem:[#allocation5 + $0x60] ss:$12 sps:$4 sm:$0xff]  }
  0x46   :  { %2819 = vmatpush1.bf16.msra.mxu0 %v7270_v4  ;;  %v7305_v38 = vld [vmem:[#allocation5 + $0x48] ss:$12 sps:$4 sm:$0xff]   ;;  %v7307_v40 = vld [vmem:[#allocation5 + $0x64] ss:$12 sps:$4 sm:$0xff]   ;;  %v7318_v48 = vld [vmem:[#allocation5 + $0xae0] ss:$12 sps:$4 sm:$0xff]  }
  0x47   :  { %7241 = vmatpush1.bf16.msra.mxu1 %v7270_v4  ;;  %2820 = vmatprep.subr.bf16.mxu0 %v7906_v0  ;;  %v7312_v44 = vld [vmem:[#allocation5 + $0xac8] ss:$12 sps:$4 sm:$0xff]   ;;  %v7315_v46 = vld [vmem:[#allocation5 + $0xae4] ss:$12 sps:$4 sm:$0xff]   ;;  %v7325_v53 = vld [vmem:[#allocation5 + $0xac] ss:$12 sps:$4 sm:$0xff]  }
  0x48   :  { %7226 = vmatprep.subr.bf16.mxu1 %v7906_v0  ;;  %v7313_v45 = vld [vmem:[#allocation5 + $0x7c] ss:$12 sps:$4 sm:$0xff]   ;;  %v7317_v47 = vld [vmem:[#allocation5 + $0x78] ss:$12 sps:$4 sm:$0xff]   ;;  %v7319_v49 = vld [vmem:[#allocation5 + $0x94] ss:$12 sps:$4 sm:$0xff]  }
  0x49   :  { %v7321_v50 = vld [vmem:[#allocation5 + $0xafc] ss:$12 sps:$4 sm:$0xff]   ;;  %v7324_v52 = vld [vmem:[#allocation5 + $0xaf8] ss:$12 sps:$4 sm:$0xff]   ;;  %v7327_v54 = vld [vmem:[#allocation5 + $0xb14] ss:$12 sps:$4 sm:$0xff]  }
  0x4a   :  { %2821 = vmatpush1.bf16.msra.mxu0 %v7271_v5  ;;  %v7323_v51 = vld [vmem:[#allocation5 + $0x90] ss:$12 sps:$4 sm:$0xff]   ;;  %v7329_v55 = vld [vmem:[#allocation5 + $0xa8] ss:$12 sps:$4 sm:$0xff]   ;;  %v7333_v58 = vld [vmem:[#allocation5 + $0xb2c] ss:$12 sps:$4 sm:$0xff]  }
  0x4b   :  { %7242 = vmatpush1.bf16.msra.mxu1 %v7271_v5  ;;  %2822 = vmatprep.subr.bf16.mxu0 %v7906_v0  ;;  %v7330_v56 = vld [vmem:[#allocation5 + $0xb10] ss:$12 sps:$4 sm:$0xff]   ;;  %v7335_v59 = vld [vmem:[#allocation5 + $0xc0] ss:$12 sps:$4 sm:$0xff]   ;;  %v7336_v60 = vld [vmem:[#allocation5 + $0xb28] ss:$12 sps:$4 sm:$0xff]  }
  0x4c   :  { %7227 = vmatprep.subr.bf16.mxu1 %v7906_v0  ;;  %v7331_v57 = vld [vmem:[#allocation5 + $0xc4] ss:$12 sps:$4 sm:$0xff]   ;;  %v7337_v61 = vld [vmem:[#allocation5 + $0xdc] ss:$12 sps:$4 sm:$0xff]   ;;  %v7343_v1 = vld [vmem:[#allocation5 + $0xf4] ss:$12 sps:$4 sm:$0xff]  }
  0x4d   :  { %v7339_v62 = vld [vmem:[#allocation5 + $0xb44] ss:$12 sps:$4 sm:$0xff]   ;;  %v7345_v2 = vld [vmem:[#allocation5 + $0xb5c] ss:$12 sps:$4 sm:$0xff]   ;;  %v7349_v5 = vld [vmem:[#allocation5 + $0x10c] ss:$12 sps:$4 sm:$0xff]  }
  0x4e   :  { %2823 = vmatpush1.bf16.msra.mxu0 %v7272_v7  ;;  %v7341_v63 = vld [vmem:[#allocation5 + $0xd8] ss:$12 sps:$4 sm:$0xff]   ;;  %v7347_v3 = vld [vmem:[#allocation5 + $0xf0] ss:$12 sps:$4 sm:$0xff]   ;;  %v7351_v6 = vld [vmem:[#allocation5 + $0xb74] ss:$12 sps:$4 sm:$0xff]  }
  0x4f   :  { %7243 = vmatpush1.bf16.msra.mxu1 %v7272_v7  ;;  %2824 = vmatprep.subr.bf16.mxu0 %v7906_v0  ;;  %v7348_v4 = vld [vmem:[#allocation5 + $0xb58] ss:$12 sps:$4 sm:$0xff]   ;;  %v7353_v7 = vld [vmem:[#allocation5 + $0x108] ss:$12 sps:$4 sm:$0xff]   ;;  %v7354_v8 = vld [vmem:[#allocation5 + $0xb70] ss:$12 sps:$4 sm:$0xff]  }
  0x50   :  { %7228 = vmatprep.subr.bf16.mxu1 %v7906_v0 }
  0x52   :  { %2825 = vmatpush1.bf16.msra.mxu0 %v7273_v9 }
  0x53   :  { %7244 = vmatpush1.bf16.msra.mxu1 %v7273_v9  ;;  %2826 = vmatprep.subr.bf16.mxu0 %v7906_v0  ;;  %v7355_v9 = vld [vmem:[#allocation5 + $0x124] ss:$12 sps:$4 sm:$0xff]  }
  0x54   :  { %7229 = vmatprep.subr.bf16.mxu1 %v7906_v0 }
  0x56   :  { %2827 = vmatpush1.bf16.msra.mxu0 %v7274_v10 }
  0x57   :  { %7245 = vmatpush1.bf16.msra.mxu1 %v7274_v10  ;;  %2828 = vmatprep.subr.bf16.mxu0 %v7906_v0  ;;  %v7357_v10 = vld [vmem:[#allocation5 + $0xb8c] ss:$12 sps:$4 sm:$0xff]  }
  0x58   :  { %7230 = vmatprep.subr.bf16.mxu1 %v7906_v0 }
  0x5a   :  { %2829 = vmatpush1.bf16.msra.mxu0 %v7275_v11 }
  0x5b   :  { %7246 = vmatpush1.bf16.msra.mxu1 %v7275_v11  ;;  %2830 = vmatprep.subr.bf16.mxu0 %v7906_v0  ;;  %v7359_v11 = vld [vmem:[#allocation5 + $0x120] ss:$12 sps:$4 sm:$0xff]  }
  0x5c   :  { %7231 = vmatprep.subr.bf16.mxu1 %v7906_v0 }
  0x5e   :  { %2831 = vmatpush1.bf16.msra.mxu0 %v7276_v12 }
  0x5f   :  { %7247 = vmatpush1.bf16.msra.mxu1 %v7276_v12  ;;  %2832 = vmatprep.subr.bf16.mxu0 %v7906_v0  ;;  %v7360_v12 = vld [vmem:[#allocation5 + $0xb88] ss:$12 sps:$4 sm:$0xff]  }
  0x60   :  { %7232 = vmatprep.subr.bf16.mxu1 %v7906_v0 }
  0x62   :  { %2833 = vmatpush1.bf16.msra.mxu0 %v7277_v13 }
  0x63   :  { %7248 = vmatpush1.bf16.msra.mxu1 %v7277_v13  ;;  %2834 = vmatprep.subr.bf16.mxu0 %v7906_v0  ;;  %v7361_v13 = vld [vmem:[#allocation5 + $0x13c] ss:$12 sps:$4 sm:$0xff]  }
  0x64   :  { %7233 = vmatprep.subr.bf16.mxu1 %v7906_v0 }
  0x66   :  { %2835 = vmatpush1.bf16.msra.mxu0 %v7278_v14 }
  0x67   :  { %7249 = vmatpush1.bf16.msra.mxu1 %v7278_v14  ;;  %2836 = vmatprep.subr.bf16.mxu0 %v7906_v0  ;;  %v7363_v14 = vld [vmem:[#allocation5 + $0xba4] ss:$12 sps:$4 sm:$0xff]  }
  0x68   :  { %7234 = vmatprep.subr.bf16.mxu1 %v7906_v0 }
  0x6a   :  { %2837 = vmatpush1.bf16.msra.mxu0 %v7279_v15 }
  0x6b   :  { %7250 = vmatpush1.bf16.msra.mxu1 %v7279_v15  ;;  %2838 = vmatprep.subr.bf16.mxu0 %v7906_v0  ;;  %v7365_v15 = vld [vmem:[#allocation5 + $0x138] ss:$12 sps:$4 sm:$0xff]  }
  0x6c   :  { %7235 = vmatprep.subr.bf16.mxu1 %v7906_v0 }
  0x6e   :  { %2839 = vmatpush1.bf16.msra.mxu0 %v7280_v16 }
  0x6f   :  { %7251 = vmatpush1.bf16.msra.mxu1 %v7280_v16  ;;  %2840 = vmatprep.subr.bf16.mxu0 %v7906_v0  ;;  %v7366_v16 = vld [vmem:[#allocation5 + $0xba0] ss:$12 sps:$4 sm:$0xff]  }
  0x70   :  { %7236 = vmatprep.subr.bf16.mxu1 %v7906_v0 }
  0x72   :  { %2841 = vmatpush1.bf16.msra.mxu0 %v7281_v17 }
  0x73   :  { %7252 = vmatpush1.bf16.msra.mxu1 %v7281_v17  ;;  %2842 = vmatprep.subr.bf16.mxu0 %v7906_v0  ;;  %v7369_v17 = vld [vmem:[#allocation5 + $0x154] ss:$12 sps:$4 sm:$0xff]  }
  0x74   :  { %7237 = vmatprep.subr.bf16.mxu1 %v7906_v0  ;;  %v7342_v0 = vld [vmem:[#allocation5 + $0xb40] ss:$12 sps:$4 sm:$0xff]  }
  0x76   :  { %2843 = vmatpush1.bf16.msra.mxu0 %v7282_v18 }
  0x77   :  { %7253 = vmatpush1.bf16.msra.mxu1 %v7282_v18  ;;  %v7371_v18 = vld [vmem:[#allocation5 + $0xbbc] ss:$12 sps:$4 sm:$0xff]  }
  0x78   :  { %6694 = vmatprep.subr.bf16.mxu1 %v7367_v19 }
  0x79   :  { %2845 = vmatmul.mubr.bf16.vlgmr.msra.gmra.mrb[0].mxu0 %v7283_v20  ;;  %v7374_v20 = vld [vmem:[#allocation5 + $0xbb8] ss:$12 sps:$4 sm:$0xff]  }
  0x7a   :  { %3733 = vmatmul.mubr.bf16.vlgmr.msra.gmra.mrb[0].mxu1 %v7286_v21  ;;  %2852 = vmatprep.mubr.bf16.mxu0 %v7289_v22  ;;  %v7377_v21 = vld [vmem:[#allocation5 + $0x16c] ss:$12 sps:$4 sm:$0xff]   ;;  %v7379_v22 = vld [vmem:[#allocation5 + $0xbd4] ss:$12 sps:$4 sm:$0xff]  }
  0x7b   :  { %3740 = vmatprep.mubr.bf16.mxu1 %v7291_v23  ;;  %6695 = vmatpush3.bf16.msra.mxu1 %v7367_v19  ;;  %v7373_v19 = vld [vmem:[#allocation5 + $0x150] ss:$12 sps:$4 sm:$0xff]   ;;  %v7381_v23 = vld [vmem:[#allocation5 + $0x168] ss:$12 sps:$4 sm:$0xff]  }
  0x7c   :  { %6696 = vmatprep.subr.bf16.mxu1 %v7368_v24 }
  0x7f   :  { %6697 = vmatpush3.bf16.msra.mxu1 %v7368_v24  ;;  %v7382_v24 = vld [vmem:[#allocation5 + $0xbd0] ss:$12 sps:$4 sm:$0xff]  }
  0x80   :  { %6698 = vmatprep.subr.bf16.mxu1 %v7375_v27 }
  0x81   :  { %2853 = vmatmul.mubr.bf16.gmra.mrb[4].mxu0 %v7293_v25  ;;  %v7385_v25 = vld [vmem:[#allocation5 + $0x184] ss:$12 sps:$4 sm:$0xff]  }
  0x82   :  { %3741 = vmatmul.mubr.bf16.gmra.mrb[4].mxu1 %v7294_v26  ;;  %2860 = vmatprep.mubr.bf16.mxu0 %v7295_v28  ;;  %v7387_v26 = vld [vmem:[#allocation5 + $0xbec] ss:$12 sps:$4 sm:$0xff]   ;;  %v7390_v28 = vld [vmem:[#allocation5 + $0xbe8] ss:$12 sps:$4 sm:$0xff]  }
  0x83   :  { %3748 = vmatprep.mubr.bf16.mxu1 %v7297_v29  ;;  %6699 = vmatpush3.bf16.msra.mxu1 %v7375_v27  ;;  %v7389_v27 = vld [vmem:[#allocation5 + $0x180] ss:$12 sps:$4 sm:$0xff]   ;;  %v7393_v29 = vld [vmem:[#allocation5 + $0x19c] ss:$12 sps:$4 sm:$0xff]  }
  0x84   :  { %6700 = vmatprep.subr.bf16.mxu1 %v7376_v30 }
  0x87   :  { %6701 = vmatpush3.bf16.msra.mxu1 %v7376_v30  ;;  %v7395_v30 = vld [vmem:[#allocation5 + $0x8] ss:$12 sps:$4 sm:$0xff]  }
  0x88   :  { %6702 = vmatprep.subr.bf16.mxu1 %v7383_v31 }
  0x89   :  { %2861 = vmatmul.mubr.bf16.gmra.mrb[8].mxu0 %v7299_v32  ;;  %v7397_v32 = vld [vmem:[#allocation5 + $0x20] ss:$12 sps:$4 sm:$0xff]  }
  0x8a   :  { %3749 = vmatmul.mubr.bf16.gmra.mrb[8].mxu1 %v7300_v33  ;;  %2868 = vmatprep.mubr.bf16.mxu0 %v7301_v34  ;;  %v7398_v33 = vld [vmem:[#allocation5 + $0x1b4] ss:$12 sps:$4 sm:$0xff]   ;;  %v7400_v34 = vld [vmem:[#allocation5 + $0x38] ss:$12 sps:$4 sm:$0xff]  }
  0x8b   :  { %3756 = vmatprep.mubr.bf16.mxu1 %v7303_v35  ;;  %6703 = vmatpush3.bf16.msra.mxu1 %v7383_v31  ;;  %v7396_v31 = vld [vmem:[#allocation5 + $0x198] ss:$12 sps:$4 sm:$0xff]   ;;  %v7401_v35 = vld [vmem:[#allocation5 + $0x1b0] ss:$12 sps:$4 sm:$0xff]  }
  0x8c   :  { %6704 = vmatprep.subr.bf16.mxu1 %v7384_v36 }
  0x8f   :  { %6705 = vmatpush3.bf16.msra.mxu1 %v7384_v36  ;;  %v7402_v36 = vld [vmem:[#allocation5 + $0x50] ss:$12 sps:$4 sm:$0xff]  }
  0x90   :  { %6706 = vmatprep.subr.bf16.mxu1 %v7391_v37 }
  0x91   :  { %2869 = vmatmul.mubr.bf16.gmra.mrb[12].mxu0 %v7305_v38  ;;  %v7405_v38 = vld [vmem:[#allocation5 + $0x68] ss:$12 sps:$4 sm:$0xff]  }
  0x92   :  { %3757 = vmatmul.mubr.bf16.gmra.mrb[12].mxu1 %v7306_v39  ;;  %2876 = vmatprep.mubr.bf16.mxu0 %v7307_v40  ;;  %v7406_v39 = vld [vmem:[#allocation5 + $0x1c8] ss:$12 sps:$4 sm:$0xff]   ;;  %v7407_v40 = vld [vmem:[#allocation5 + $0x80] ss:$12 sps:$4 sm:$0xff]  }
  0x93   :  { %3764 = vmatprep.mubr.bf16.mxu1 %v7309_v41  ;;  %6707 = vmatpush3.bf16.msra.mxu1 %v7391_v37  ;;  %v7403_v37 = vld [vmem:[#allocation5 + $0x1cc] ss:$12 sps:$4 sm:$0xff]   ;;  %v7408_v41 = vld [vmem:[#allocation5 + $0x1e4] ss:$12 sps:$4 sm:$0xff]  }
  0x94   :  { %6708 = vmatprep.subr.bf16.mxu1 %v7392_v42 }
  0x97   :  { %6709 = vmatpush3.bf16.msra.mxu1 %v7392_v42  ;;  %v7410_v42 = vld [vmem:[#allocation5 + $0x98] ss:$12 sps:$4 sm:$0xff]  }
  0x99   :  { %2877 = vmatmul.mubr.bf16.gmra.mrb[16].mxu0 %v7311_v43  ;;  %v7411_v43 = vld [vmem:[#allocation5 + $0x1e0] ss:$12 sps:$4 sm:$0xff]  }
  0x9a   :  { %3765 = vmatmul.mubr.bf16.gmra.mrb[16].mxu1 %v7312_v44  ;;  %2884 = vmatprep.mubr.bf16.mxu0 %v7313_v45  ;;  %v7412_v44 = vld [vmem:[#allocation5 + $0xb0] ss:$12 sps:$4 sm:$0xff]  }
  0x9b   :  { %3772 = vmatprep.mubr.bf16.mxu1 %v7315_v46  ;;  %v7413_v45 = vld [vmem:[#allocation5 + $0x1fc] ss:$12 sps:$4 sm:$0xff]  }
  0x9c   :  { %v7415_v46 = vld [vmem:[#allocation5 + $0xc8] ss:$12 sps:$4 sm:$0xff]  }
  0xa1   :  { %2885 = vmatmul.mubr.bf16.gmra.mrb[20].mxu0 %v7317_v47  ;;  %v7416_v47 = vld [vmem:[#allocation5 + $0x1f8] ss:$12 sps:$4 sm:$0xff]  }
  0xa2   :  { %3773 = vmatmul.mubr.bf16.gmra.mrb[20].mxu1 %v7318_v48  ;;  %2892 = vmatprep.mubr.bf16.mxu0 %v7319_v49  ;;  %v7417_v48 = vld [vmem:[#allocation5 + $0xe0] ss:$12 sps:$4 sm:$0xff]  }
  0xa3   :  { %3780 = vmatprep.mubr.bf16.mxu1 %v7321_v50  ;;  %v7418_v49 = vld [vmem:[#allocation5 + $0x214] ss:$12 sps:$4 sm:$0xff]   ;;  %v7420_v50 = vld [vmem:[#allocation5 + $0xf8] ss:$12 sps:$4 sm:$0xff]  }
  0xa9   :  { %2893 = vmatmul.mubr.bf16.gmra.mrb[24].mxu0 %v7323_v51  ;;  %v7421_v51 = vld [vmem:[#allocation5 + $0x210] ss:$12 sps:$4 sm:$0xff]  }
  0xaa   :  { %3781 = vmatmul.mubr.bf16.gmra.mrb[24].mxu1 %v7324_v52  ;;  %2900 = vmatprep.mubr.bf16.mxu0 %v7325_v53  ;;  %v7422_v52 = vld [vmem:[#allocation5 + $0x110] ss:$12 sps:$4 sm:$0xff]   ;;  %v7423_v53 = vld [vmem:[#allocation5 + $0x22c] ss:$12 sps:$4 sm:$0xff]  }
  0xab   :  { %3788 = vmatprep.mubr.bf16.mxu1 %v7327_v54  ;;  %v7425_v54 = vld [vmem:[#allocation5 + $0x128] ss:$12 sps:$4 sm:$0xff]  }
  0xb1   :  { %2901 = vmatmul.mubr.bf16.gmra.mrb[28].mxu0 %v7329_v55  ;;  %v7426_v55 = vld [vmem:[#allocation5 + $0x228] ss:$12 sps:$4 sm:$0xff]  }
  0xb2   :  { %3789 = vmatmul.mubr.bf16.gmra.mrb[28].mxu1 %v7330_v56  ;;  %2908 = vmatprep.mubr.bf16.mxu0 %v7331_v57  ;;  %v7427_v56 = vld [vmem:[#allocation5 + $0x140] ss:$12 sps:$4 sm:$0xff]   ;;  %v7428_v57 = vld [vmem:[#allocation5 + $0x244] ss:$12 sps:$4 sm:$0xff]  }
  0xb3   :  { %3796 = vmatprep.mubr.bf16.mxu1 %v7333_v58  ;;  %v7430_v58 = vld [vmem:[#allocation5 + $0x158] ss:$12 sps:$4 sm:$0xff]  }
  0xb9   :  { %2909 = vmatmul.mubr.bf16.gmra.mrb[32].mxu0 %v7335_v59  ;;  %v7431_v59 = vld [vmem:[#allocation5 + $0x240] ss:$12 sps:$4 sm:$0xff]  }
  0xba   :  { %3797 = vmatmul.mubr.bf16.gmra.mrb[32].mxu1 %v7336_v60  ;;  %2916 = vmatprep.mubr.bf16.mxu0 %v7337_v61  ;;  %v7432_v60 = vld [vmem:[#allocation5 + $0x170] ss:$12 sps:$4 sm:$0xff]  }
  0xbb   :  { %3804 = vmatprep.mubr.bf16.mxu1 %v7339_v62  ;;  %v7433_v61 = vld [vmem:[#allocation5 + $0x25c] ss:$12 sps:$4 sm:$0xff]  }
  0xbc   :  { %v7435_v62 = vld [vmem:[#allocation5 + $0x188] ss:$12 sps:$4 sm:$0xff]  }
  0xc1   :  { %2917 = vmatmul.mubr.bf16.gmra.mrb[36].mxu0 %v7341_v63  ;;  %v7436_v63 = vld [vmem:[#allocation5 + $0x258] ss:$12 sps:$4 sm:$0xff]  }
  0xc2   :  { %3805 = vmatmul.mubr.bf16.gmra.mrb[36].mxu1 %v7342_v0  ;;  %2924 = vmatprep.mubr.bf16.mxu0 %v7343_v1  ;;  %v7437_v0 = vld [vmem:[#allocation5 + $0x1a0] ss:$12 sps:$4 sm:$0xff]  }
  0xc3   :  { %3812 = vmatprep.mubr.bf16.mxu1 %v7345_v2  ;;  %v7438_v1 = vld [vmem:[#allocation5 + $0x274] ss:$12 sps:$4 sm:$0xff]   ;;  %v7440_v2 = vld [vmem:[#allocation5 + $0x1b8] ss:$12 sps:$4 sm:$0xff]  }
  0xc9   :  { %2925 = vmatmul.mubr.bf16.gmra.mrb[40].mxu0 %v7347_v3  ;;  %v7441_v3 = vld [vmem:[#allocation5 + $0x270] ss:$12 sps:$4 sm:$0xff]  }
  0xca   :  { %3813 = vmatmul.mubr.bf16.gmra.mrb[40].mxu1 %v7348_v4  ;;  %2932 = vmatprep.mubr.bf16.mxu0 %v7349_v5  ;;  %v7442_v4 = vld [vmem:[#allocation5 + $0x1d0] ss:$12 sps:$4 sm:$0xff]   ;;  %v7443_v5 = vld [vmem:[#allocation5 + $0x28c] ss:$12 sps:$4 sm:$0xff]  }
  0xcb   :  { %3820 = vmatprep.mubr.bf16.mxu1 %v7351_v6  ;;  %v7445_v6 = vld [vmem:[#allocation5 + $0x1e8] ss:$12 sps:$4 sm:$0xff]  }
  0xd1   :  { %2933 = vmatmul.mubr.bf16.gmra.mrb[44].mxu0 %v7353_v7 }
  0xd2   :  { %3821 = vmatmul.mubr.bf16.gmra.mrb[44].mxu1 %v7354_v8  ;;  %2940 = vmatprep.mubr.bf16.mxu0 %v7355_v9 }
  0xd3   :  { %3828 = vmatprep.mubr.bf16.mxu1 %v7357_v10  ;;  %v7446_v10 = vld [vmem:[#allocation5 + $0x288] ss:$12 sps:$4 sm:$0xff]  }
  0xd9   :  { %2941 = vmatmul.mubr.bf16.gmra.mrb[48].mxu0 %v7359_v11  ;;  %v7447_v11 = vld [vmem:[#allocation5 + $0x200] ss:$12 sps:$4 sm:$0xff]  }
  0xda   :  { %3829 = vmatmul.mubr.bf16.gmra.mrb[48].mxu1 %v7360_v12  ;;  %2948 = vmatprep.mubr.bf16.mxu0 %v7361_v13 }
  0xdb   :  { %3836 = vmatprep.mubr.bf16.mxu1 %v7363_v14  ;;  %v7448_v14 = vld [vmem:[#allocation5 + $0x2a4] ss:$12 sps:$4 sm:$0xff]  }
  0xe1   :  { %2949 = vmatmul.mubr.bf16.gmra.mrb[52].mxu0 %v7365_v15  ;;  %v7450_v15 = vld [vmem:[#allocation5 + $0x218] ss:$12 sps:$4 sm:$0xff]  }
  0xe2   :  { %3837 = vmatmul.mubr.bf16.gmra.mrb[52].mxu1 %v7366_v16  ;;  %2956 = vmatprep.mubr.bf16.mxu0 %v7369_v17 }
  0xe3   :  { %3844 = vmatprep.mubr.bf16.mxu1 %v7371_v18 }
  0xe9   :  { %2957 = vmatmul.mubr.bf16.gmra.mrb[56].mxu0 %v7373_v19 }
  0xea   :  { %3845 = vmatmul.mubr.bf16.gmra.mrb[56].mxu1 %v7374_v20  ;;  %2964 = vmatprep.mubr.bf16.mxu0 %v7377_v21 }
  0xeb   :  { %3852 = vmatprep.mubr.bf16.mxu1 %v7379_v22  ;;  %v7451_v22 = vld [vmem:[#allocation5 + $0x2a0] ss:$12 sps:$4 sm:$0xff]  }
  0xf1   :  { %2965 = vmatmul.mubr.bf16.gmra.mrb[60].mxu0 %v7381_v23  ;;  %v7452_v23 = vld [vmem:[#allocation5 + $0x230] ss:$12 sps:$4 sm:$0xff]  }
  0xf2   :  { %3853 = vmatmul.mubr.bf16.gmra.mrb[60].mxu1 %v7382_v24  ;;  %2972 = vmatprep.mubr.bf16.mxu0 %v7385_v25 }
  0xf3   :  { %3860 = vmatprep.mubr.bf16.mxu1 %v7387_v26  ;;  %v7453_v26 = vld [vmem:[#allocation5 + $0x2bc] ss:$12 sps:$4 sm:$0xff]  }
  0xf9   :  { %2973 = vmatmul.mubr.bf16.gmra.mrb[64].mxu0 %v7389_v27  ;;  %v7455_v27 = vld [vmem:[#allocation5 + $0x248] ss:$12 sps:$4 sm:$0xff]  }
  0xfa   :  { %3861 = vmatmul.mubr.bf16.gmra.mrb[64].mxu1 %v7390_v28  ;;  %2980 = vmatprep.mubr.bf16.mxu0 %v7393_v29 }
  0xfb   :  { %6710 = vmatprep.mubr.bf16.mxu1 %v7395_v30 }
 0x101   :  { %2981 = vmatmul.mubr.bf16.gmra.mrb[68].mxu0 %v7396_v31 }
 0x102   :  { %6711 = vmatmul.mubr.bf16.vlgmr.msra.gmra.mrb[68].mxu1 %v7397_v32  ;;  %2988 = vmatprep.mubr.bf16.mxu0 %v7398_v33 }
 0x103   :  { %6714 = vmatprep.mubr.bf16.mxu1 %v7400_v34  ;;  %v7456_v34 = vld [vmem:[#allocation5 + $0x2b8] ss:$12 sps:$4 sm:$0xff]  }
 0x109   :  { %2989 = vmatmul.mubr.bf16.gmra.mrb[72].mxu0 %v7401_v35  ;;  %v7457_v35 = vld [vmem:[#allocation5 + $0x260] ss:$12 sps:$4 sm:$0xff]  }
 0x10a   :  { %6715 = vmatmul.mubr.bf16.gmra.mrb[72].mxu1 %v7402_v36  ;;  %2996 = vmatprep.mubr.bf16.mxu0 %v7403_v37 }
 0x10b   :  { %6718 = vmatprep.mubr.bf16.mxu1 %v7405_v38  ;;  %v7458_v38 = vld [vmem:[#allocation5 + $0x2d4] ss:$12 sps:$4 sm:$0xff]  }
 0x111   :  { %2997 = vmatmul.mubr.bf16.gmra.mrb[76].mxu0 %v7406_v39  ;;  %v7460_v39 = vld [vmem:[#allocation5 + $0x278] ss:$12 sps:$4 sm:$0xff]  }
 0x112   :  { %6719 = vmatmul.mubr.bf16.gmra.mrb[76].mxu1 %v7407_v40  ;;  %3004 = vmatprep.mubr.bf16.mxu0 %v7408_v41 }
 0x113   :  { %6722 = vmatprep.mubr.bf16.mxu1 %v7410_v42 }
 0x119   :  { %3005 = vmatmul.mubr.bf16.gmra.mrb[80].mxu0 %v7411_v43 }
 0x11a   :  { %6723 = vmatmul.mubr.bf16.gmra.mrb[80].mxu1 %v7412_v44  ;;  %3012 = vmatprep.mubr.bf16.mxu0 %v7413_v45 }
 0x11b   :  { %6726 = vmatprep.mubr.bf16.mxu1 %v7415_v46  ;;  %v7461_v46 = vld [vmem:[#allocation5 + $0x2d0] ss:$12 sps:$4 sm:$0xff]  }
 0x121   :  { %3013 = vmatmul.mubr.bf16.gmra.mrb[84].mxu0 %v7416_v47  ;;  %v7462_v47 = vld [vmem:[#allocation5 + $0x290] ss:$12 sps:$4 sm:$0xff]  }
 0x122   :  { %6727 = vmatmul.mubr.bf16.gmra.mrb[84].mxu1 %v7417_v48  ;;  %3020 = vmatprep.mubr.bf16.mxu0 %v7418_v49 }
 0x123   :  { %6730 = vmatprep.mubr.bf16.mxu1 %v7420_v50  ;;  %v7463_v50 = vld [vmem:[#allocation5 + $0x2ec] ss:$12 sps:$4 sm:$0xff]  }
 0x129   :  { %3021 = vmatmul.mubr.bf16.gmra.mrb[88].mxu0 %v7421_v51  ;;  %v7465_v51 = vld [vmem:[#allocation5 + $0x2a8] ss:$12 sps:$4 sm:$0xff]  }
 0x12a   :  { %6731 = vmatmul.mubr.bf16.gmra.mrb[88].mxu1 %v7422_v52  ;;  %3028 = vmatprep.mubr.bf16.mxu0 %v7423_v53 }
 0x12b   :  { %6734 = vmatprep.mubr.bf16.mxu1 %v7425_v54 }
 0x131   :  { %3029 = vmatmul.mubr.bf16.gmra.mrb[92].mxu0 %v7426_v55 }
 0x132   :  { %6735 = vmatmul.mubr.bf16.gmra.mrb[92].mxu1 %v7427_v56  ;;  %3036 = vmatprep.mubr.bf16.mxu0 %v7428_v57 }
 0x133   :  { %6738 = vmatprep.mubr.bf16.mxu1 %v7430_v58  ;;  %v7466_v58 = vld [vmem:[#allocation5 + $0x2e8] ss:$12 sps:$4 sm:$0xff]  }
 0x139   :  { %3037 = vmatmul.mubr.bf16.gmra.mrb[96].mxu0 %v7431_v59  ;;  %v7467_v59 = vld [vmem:[#allocation5 + $0x2c0] ss:$12 sps:$4 sm:$0xff]  }
 0x13a   :  { %6739 = vmatmul.mubr.bf16.gmra.mrb[96].mxu1 %v7432_v60  ;;  %3044 = vmatprep.mubr.bf16.mxu0 %v7433_v61 }
 0x13b   :  { %6742 = vmatprep.mubr.bf16.mxu1 %v7435_v62  ;;  %v7468_v62 = vld [vmem:[#allocation5 + $0x304] ss:$12 sps:$4 sm:$0xff]  }
 0x141   :  { %3045 = vmatmul.mubr.bf16.gmra.mrb[100].mxu0 %v7436_v63  ;;  %v7470_v63 = vld [vmem:[#allocation5 + $0x2d8] ss:$12 sps:$4 sm:$0xff]  }
 0x142   :  { %6743 = vmatmul.mubr.bf16.gmra.mrb[100].mxu1 %v7437_v0  ;;  %3052 = vmatprep.mubr.bf16.mxu0 %v7438_v1 }
 0x143   :  { %6746 = vmatprep.mubr.bf16.mxu1 %v7440_v2 }
 0x149   :  { %3053 = vmatmul.mubr.bf16.gmra.mrb[104].mxu0 %v7441_v3 }
 0x14a   :  { %6747 = vmatmul.mubr.bf16.gmra.mrb[104].mxu1 %v7442_v4  ;;  %3060 = vmatprep.mubr.bf16.mxu0 %v7443_v5 }
 0x14b   :  { %6750 = vmatprep.mubr.bf16.mxu1 %v7445_v6  ;;  %v7471_v6 = vld [vmem:[#allocation5 + $0x300] ss:$12 sps:$4 sm:$0xff]  }
 0x14c   :  { %v8004_v7 = vpop.f32.mrb[0].mxu0 }
 0x14d   :  { %v8006_v8 = vpop.f32.mrb[0].mxu1  ;;  %v2848_v9 = vpop.f32.mrb[1].mxu0 }
 0x14e   :  { %9025 = vst [vmem:[#allocation12_spill] sm:$0xff] %v8006_v8  ;;  %v3736_v12 = vpop.f32.mrb[1].mxu1  ;;  %v8008_v13 = vpop.f32.mrb[2].mxu0  ;;  %v7472_v9 = vld [vmem:[#allocation5 + $0x2f0] ss:$12 sps:$4 sm:$0xff]  }
 0x14f   :  { %v8010_v16 = vpop.f32.mrb[2].mxu1  ;;  %v2851_v17 = vpop.f32.mrb[3].mxu0  ;;  %v7473_v12 = vld [vmem:[#allocation5 + $0x31c] ss:$12 sps:$4 sm:$0xff]   ;;  %v7667_v8 = vld [vmem:[#allocation5 + $0xa40] ss:$12 sps:$4 sm:$0xff]  }
 0x150   :  { %9026 = vst [vmem:[#allocation13_spill] sm:$0xff] %v8010_v16  ;;  %v3739_v18 = vpop.f32.mrb[3].mxu1  ;;  %v7663_v16 = vld [vmem:[#allocation5 + $0x6a8] ss:$12 sps:$4 sm:$0xff]  }
 0x151   :  { %3061 = vmatmul.mubr.bf16.gmra.mrb[108].mxu0 %v7446_v10 }
 0x152   :  { %6751 = vmatmul.mubr.bf16.gmra.mrb[108].mxu1 %v7447_v11  ;;  %3068 = vmatprep.mubr.bf16.mxu0 %v7448_v14  ;;  %v7475_v14 = vld [vmem:[#allocation5 + $0x308] ss:$12 sps:$4 sm:$0xff]  }
 0x153   :  { %6754 = vmatprep.mubr.bf16.mxu1 %v7450_v15 }
 0x154   :  { %v8012_v19 = vpop.f32.mrb[4].mxu0 }
 0x155   :  { %v8014_v20 = vpop.f32.mrb[4].mxu1  ;;  %v2856_v21 = vpop.f32.mrb[5].mxu0 }
 0x156   :  { %9027 = vst [vmem:[#allocation14_spill] sm:$0xff] %v8014_v20  ;;  %v3744_v24 = vpop.f32.mrb[5].mxu1  ;;  %v8016_v25 = vpop.f32.mrb[6].mxu0  ;;  %v7662_v20 = vld [vmem:[#allocation5 + $0xa10] ss:$12 sps:$4 sm:$0xff]  }
 0x157   :  { %v8018_v28 = vpop.f32.mrb[6].mxu1  ;;  %v2859_v29 = vpop.f32.mrb[7].mxu0  ;;  %v7476_v24 = vld [vmem:[#allocation5 + $0x318] ss:$12 sps:$4 sm:$0xff]  }
 0x158   :  { %9028 = vst [vmem:[#allocation15_spill] sm:$0xff] %v8018_v28  ;;  %v3747_v30 = vpop.f32.mrb[7].mxu1 }
 0x159   :  { %3069 = vmatmul.mubr.bf16.gmra.mrb[112].mxu0 %v7451_v22  ;;  %v7478_v30 = vld [vmem:[#allocation5 + $0x334] ss:$12 sps:$4 sm:$0xff]  }
 0x15a   :  { %6755 = vmatmul.mubr.bf16.gmra.mrb[112].mxu1 %v7452_v23  ;;  %3076 = vmatprep.mubr.bf16.mxu0 %v7453_v26  ;;  %v7477_v26 = vld [vmem:[#allocation5 + $0x320] ss:$12 sps:$4 sm:$0xff]  }
 0x15b   :  { %6758 = vmatprep.mubr.bf16.mxu1 %v7455_v27 }
 0x15c   :  { %v8020_v31 = vpop.f32.mrb[8].mxu0 }
 0x15d   :  { %v8022_v32 = vpop.f32.mrb[8].mxu1  ;;  %v2864_v33 = vpop.f32.mrb[9].mxu0 }
 0x15e   :  { %9029 = vst [vmem:[#allocation16_spill] sm:$0xff] %v8022_v32  ;;  %v3752_v36 = vpop.f32.mrb[9].mxu1  ;;  %v8024_v37 = vpop.f32.mrb[10].mxu0  ;;  %v7480_v33 = vld [vmem:[#allocation5 + $0x338] ss:$12 sps:$4 sm:$0xff]  }
 0x15f   :  { %v8026_v40 = vpop.f32.mrb[10].mxu1  ;;  %v2867_v41 = vpop.f32.mrb[11].mxu0 }
 0x160   :  { %9030 = vst [vmem:[#allocation17_spill] sm:$0xff] %v8026_v40  ;;  %v3755_v42 = vpop.f32.mrb[11].mxu1  ;;  %v7658_v40 = vld [vmem:[#allocation5 + $0x690] ss:$12 sps:$4 sm:$0xff]  }
 0x161   :  { %3077 = vmatmul.mubr.bf16.gmra.mrb[116].mxu0 %v7456_v34  ;;  %v7481_v42 = vld [vmem:[#allocation5 + $0x330] ss:$12 sps:$4 sm:$0xff]  }
 0x162   :  { %6759 = vmatmul.mubr.bf16.gmra.mrb[116].mxu1 %v7457_v35  ;;  %3084 = vmatprep.mubr.bf16.mxu0 %v7458_v38 }
 0x163   :  { %6762 = vmatprep.mubr.bf16.mxu1 %v7460_v39 }
 0x164   :  { %v8028_v43 = vpop.f32.mrb[12].mxu0 }
 0x165   :  { %v8030_v44 = vpop.f32.mrb[12].mxu1  ;;  %v2872_v45 = vpop.f32.mrb[13].mxu0 }
 0x166   :  { %9031 = vst [vmem:[#allocation18_spill] sm:$0xff] %v8030_v44  ;;  %v3760_v48 = vpop.f32.mrb[13].mxu1  ;;  %v8032_v49 = vpop.f32.mrb[14].mxu0  ;;  %v7482_v45 = vld [vmem:[#allocation5 + $0x350] ss:$12 sps:$4 sm:$0xff]  }
 0x167   :  { %v8034_v52 = vpop.f32.mrb[14].mxu1  ;;  %v2875_v53 = vpop.f32.mrb[15].mxu0  ;;  %v7483_v48 = vld [vmem:[#allocation5 + $0x34c] ss:$12 sps:$4 sm:$0xff]  }
 0x168   :  { %9032 = vst [vmem:[#allocation19_spill] sm:$0xff] %v8034_v52  ;;  %v3763_v54 = vpop.f32.mrb[15].mxu1  ;;  %v7557_v52 = vld [vmem:[#allocation5 + $0x620] ss:$12 sps:$4 sm:$0xff]   ;;  %v7653_v44 = vld [vmem:[#allocation5 + $0x678] ss:$12 sps:$4 sm:$0xff]  }
 0x169   :  { %3085 = vmatmul.mubr.bf16.gmra.mrb[120].mxu0 %v7461_v46 }
 0x16a   :  { %6763 = vmatmul.mubr.bf16.gmra.mrb[120].mxu1 %v7462_v47  ;;  %3092 = vmatprep.mubr.bf16.mxu0 %v7463_v50  ;;  %v7485_v50 = vld [vmem:[#allocation5 + $0x368] ss:$12 sps:$4 sm:$0xff]  }
 0x16b   :  { %6766 = vmatprep.mubr.bf16.mxu1 %v7465_v51 }
 0x16c   :  { %v8036_v55 = vpop.f32.mrb[16].mxu0 }
 0x16d   :  { %v8038_v56 = vpop.f32.mrb[16].mxu1  ;;  %v2880_v57 = vpop.f32.mrb[17].mxu0 }
 0x16e   :  { %9033 = vst [vmem:[#allocation20_spill] sm:$0xff] %v8038_v56  ;;  %v3768_v60 = vpop.f32.mrb[17].mxu1  ;;  %v8040_v61 = vpop.f32.mrb[18].mxu0  ;;  %v7657_v56 = vld [vmem:[#allocation5 + $0x9e0] ss:$12 sps:$4 sm:$0xff]  }
 0x16f   :  { %v8042_v0 = vpop.f32.mrb[18].mxu1  ;;  %v2883_v1 = vpop.f32.mrb[19].mxu0  ;;  %v7486_v60 = vld [vmem:[#allocation5 + $0x348] ss:$12 sps:$4 sm:$0xff]  }
 0x170   :  { %9034 = vst [vmem:[#allocation21_spill] sm:$0xff] %v8042_v0  ;;  %v3771_v2 = vpop.f32.mrb[19].mxu1 }
 0x171   :  { %3093 = vmatmul.mubr.bf16.gmra.mrb[124].mxu0 %v7466_v58  ;;  %v7488_v2 = vld [vmem:[#allocation5 + $0x364] ss:$12 sps:$4 sm:$0xff]  }
 0x172   :  { %6767 = vmatmul.mubr.bf16.gmra.mrb[124].mxu1 %v7467_v59  ;;  %3100 = vmatprep.mubr.bf16.mxu0 %v7468_v62  ;;  %v7487_v62 = vld [vmem:[#allocation5 + $0x380] ss:$12 sps:$4 sm:$0xff]  }
 0x173   :  { %6770 = vmatprep.mubr.bf16.mxu1 %v7470_v63 }
 0x174   :  { %v8044_v3 = vpop.f32.mrb[20].mxu0 }
 0x175   :  { %v8046_v4 = vpop.f32.mrb[20].mxu1  ;;  %v2888_v5 = vpop.f32.mrb[21].mxu0 }
 0x176   :  { %9035 = vst [vmem:[#allocation22_spill] sm:$0xff] %v8046_v4  ;;  %v3776_v10 = vpop.f32.mrb[21].mxu1  ;;  %v8048_v11 = vpop.f32.mrb[22].mxu0  ;;  %v7490_v5 = vld [vmem:[#allocation5 + $0x398] ss:$12 sps:$4 sm:$0xff]  }
 0x177   :  { %v8050_v15 = vpop.f32.mrb[22].mxu1  ;;  %v2891_v17 = vpop.f32.mrb[23].mxu0 }
 0x178   :  { %9036 = vst [vmem:[#allocation23_spill] sm:$0xff] %v8050_v15  ;;  %v3779_v18 = vpop.f32.mrb[23].mxu1 }
 0x179   :  { %3101 = vmatmul.mubr.bf16.gmra.mrb[128].mxu0 %v7471_v6  ;;  %v7491_v18 = vld [vmem:[#allocation5 + $0x360] ss:$12 sps:$4 sm:$0xff]  }
 0x17a   :  { %6771 = vmatmul.mubr.bf16.gmra.mrb[128].mxu1 %v7472_v9  ;;  %3108 = vmatprep.mubr.bf16.mxu0 %v7473_v12 }
 0x17b   :  { %6774 = vmatprep.mubr.bf16.mxu1 %v7475_v14 }
 0x17c   :  { %v8052_v21 = vpop.f32.mrb[24].mxu0 }
 0x17d   :  { %v8054_v22 = vpop.f32.mrb[24].mxu1  ;;  %v2896_v23 = vpop.f32.mrb[25].mxu0 }
 0x17e   :  { %9037 = vst [vmem:[#allocation24_spill] sm:$0xff] %v8054_v22  ;;  %v3784_v27 = vpop.f32.mrb[25].mxu1  ;;  %v8056_v29 = vpop.f32.mrb[26].mxu0  ;;  %v7492_v23 = vld [vmem:[#allocation5 + $0x3b0] ss:$12 sps:$4 sm:$0xff]  }
 0x17f   :  { %v8058_v34 = vpop.f32.mrb[26].mxu1  ;;  %v2899_v35 = vpop.f32.mrb[27].mxu0  ;;  %v7493_v27 = vld [vmem:[#allocation5 + $0x37c] ss:$12 sps:$4 sm:$0xff]  }
 0x180   :  { %9038 = vst [vmem:[#allocation25_spill] sm:$0xff] %v8058_v34  ;;  %v3787_v36 = vpop.f32.mrb[27].mxu1 }
 0x181   :  { %3109 = vmatmul.mubr.bf16.gmra.mrb[132].mxu0 %v7476_v24 }
 0x182   :  { %6775 = vmatmul.mubr.bf16.gmra.mrb[132].mxu1 %v7477_v26  ;;  %3116 = vmatprep.mubr.bf16.mxu0 %v7478_v30  ;;  %v7495_v30 = vld [vmem:[#allocation5 + $0x3c8] ss:$12 sps:$4 sm:$0xff]  }
 0x183   :  { %6778 = vmatprep.mubr.bf16.mxu1 %v7480_v33 }
 0x184   :  { %v8060_v38 = vpop.f32.mrb[28].mxu0 }
 0x185   :  { %v8062_v39 = vpop.f32.mrb[28].mxu1  ;;  %v2904_v41 = vpop.f32.mrb[29].mxu0 }
 0x186   :  { %9039 = vst [vmem:[#allocation26_spill] sm:$0xff] %v8062_v39  ;;  %v3792_v46 = vpop.f32.mrb[29].mxu1  ;;  %v8064_v47 = vpop.f32.mrb[30].mxu0 }
 0x187   :  { %v8066_v51 = vpop.f32.mrb[30].mxu1  ;;  %v2907_v53 = vpop.f32.mrb[31].mxu0  ;;  %v7496_v46 = vld [vmem:[#allocation5 + $0x378] ss:$12 sps:$4 sm:$0xff]  }
 0x188   :  { %9040 = vst [vmem:[#allocation27_spill] sm:$0xff] %v8066_v51  ;;  %v3795_v54 = vpop.f32.mrb[31].mxu1 }
 0x189   :  { %3117 = vmatmul.mubr.bf16.gmra.mrb[136].mxu0 %v7481_v42  ;;  %v7498_v54 = vld [vmem:[#allocation5 + $0x394] ss:$12 sps:$4 sm:$0xff]  }
 0x18a   :  { %6779 = vmatmul.mubr.bf16.gmra.mrb[136].mxu1 %v7482_v45  ;;  %3124 = vmatprep.mubr.bf16.mxu0 %v7483_v48  ;;  %v7497_v48 = vld [vmem:[#allocation5 + $0x3e0] ss:$12 sps:$4 sm:$0xff]  }
 0x18b   :  { %6782 = vmatprep.mubr.bf16.mxu1 %v7485_v50 }
 0x18c   :  { %v8068_v57 = vpop.f32.mrb[32].mxu0 }
 0x18d   :  { %v8070_v58 = vpop.f32.mrb[32].mxu1  ;;  %v2912_v59 = vpop.f32.mrb[33].mxu0 }
 0x18e   :  { %9041 = vst [vmem:[#allocation28_spill] sm:$0xff] %v8070_v58  ;;  %v3800_v63 = vpop.f32.mrb[33].mxu1  ;;  %v8072_v1 = vpop.f32.mrb[34].mxu0  ;;  %v7500_v59 = vld [vmem:[#allocation5 + $0x3f8] ss:$12 sps:$4 sm:$0xff]  }
 0x18f   :  { %v8074_v6 = vpop.f32.mrb[34].mxu1  ;;  %v2915_v9 = vpop.f32.mrb[35].mxu0 }
 0x190   :  { %9042 = vst [vmem:[#allocation29_spill] sm:$0xff] %v8074_v6  ;;  %v3803_v10 = vpop.f32.mrb[35].mxu1  ;;  %v7530_v6 = vld [vmem:[#allocation5 + $0x518] ss:$12 sps:$4 sm:$0xff]  }
 0x191   :  { %3125 = vmatmul.mubr.bf16.gmra.mrb[140].mxu0 %v7486_v60  ;;  %v7501_v10 = vld [vmem:[#allocation5 + $0x390] ss:$12 sps:$4 sm:$0xff]  }
 0x192   :  { %6783 = vmatmul.mubr.bf16.gmra.mrb[140].mxu1 %v7487_v62  ;;  %3132 = vmatprep.mubr.bf16.mxu0 %v7488_v2 }
 0x193   :  { %6786 = vmatprep.mubr.bf16.mxu1 %v7490_v5 }
 0x194   :  { %v8076_v12 = vpop.f32.mrb[36].mxu0 }
 0x195   :  { %v8078_v14 = vpop.f32.mrb[36].mxu1  ;;  %v2920_v17 = vpop.f32.mrb[37].mxu0 }
 0x196   :  { %9043 = vst [vmem:[#allocation30_spill] sm:$0xff] %v8078_v14  ;;  %v3808_v24 = vpop.f32.mrb[37].mxu1  ;;  %v8080_v26 = vpop.f32.mrb[38].mxu0  ;;  %v7502_v17 = vld [vmem:[#allocation5 + $0x410] ss:$12 sps:$4 sm:$0xff]  }
 0x197   :  { %v8082_v33 = vpop.f32.mrb[38].mxu1  ;;  %v2923_v35 = vpop.f32.mrb[39].mxu0  ;;  %v7503_v24 = vld [vmem:[#allocation5 + $0x3ac] ss:$12 sps:$4 sm:$0xff]  }
 0x198   :  { %9044 = vst [vmem:[#allocation31_spill] sm:$0xff] %v8082_v33  ;;  %v3811_v36 = vpop.f32.mrb[39].mxu1 }
 0x199   :  { %3133 = vmatmul.mubr.bf16.gmra.mrb[144].mxu0 %v7491_v18 }
 0x19a   :  { %6787 = vmatmul.mubr.bf16.gmra.mrb[144].mxu1 %v7492_v23  ;;  %3140 = vmatprep.mubr.bf16.mxu0 %v7493_v27  ;;  %v7505_v27 = vld [vmem:[#allocation5 + $0x428] ss:$12 sps:$4 sm:$0xff]  }
 0x19b   :  { %6790 = vmatprep.mubr.bf16.mxu1 %v7495_v30 }
 0x19c   :  { %v8084_v41 = vpop.f32.mrb[40].mxu0 }
 0x19d   :  { %v8086_v42 = vpop.f32.mrb[40].mxu1  ;;  %v2928_v45 = vpop.f32.mrb[41].mxu0 }
 0x19e   :  { %9045 = vst [vmem:[#allocation32_spill] sm:$0xff] %v8086_v42  ;;  %v3816_v50 = vpop.f32.mrb[41].mxu1  ;;  %v8088_v53 = vpop.f32.mrb[42].mxu0  ;;  %v7523_v42 = vld [vmem:[#allocation5 + $0x40c] ss:$12 sps:$4 sm:$0xff]  }
 0x19f   :  { %v8090_v60 = vpop.f32.mrb[42].mxu1  ;;  %v2931_v62 = vpop.f32.mrb[43].mxu0  ;;  %v7506_v50 = vld [vmem:[#allocation5 + $0x3a8] ss:$12 sps:$4 sm:$0xff]  }
 0x1a0   :  { %9046 = vst [vmem:[#allocation33_spill] sm:$0xff] %v8090_v60  ;;  %v3819_v63 = vpop.f32.mrb[43].mxu1  ;;  %v7520_v60 = vld [vmem:[#allocation5 + $0x4b8] ss:$12 sps:$4 sm:$0xff]  }
 0x1a1   :  { %3141 = vmatmul.mubr.bf16.gmra.mrb[148].mxu0 %v7496_v46  ;;  %v7508_v63 = vld [vmem:[#allocation5 + $0x3c4] ss:$12 sps:$4 sm:$0xff]  }
 0x1a2   :  { %6791 = vmatmul.mubr.bf16.gmra.mrb[148].mxu1 %v7497_v48  ;;  %3148 = vmatprep.mubr.bf16.mxu0 %v7498_v54  ;;  %v7507_v54 = vld [vmem:[#allocation5 + $0x440] ss:$12 sps:$4 sm:$0xff]  }
 0x1a3   :  { %6794 = vmatprep.mubr.bf16.mxu1 %v7500_v59 }
 0x1a4   :  { %v8092_v2 = vpop.f32.mrb[44].mxu0 }
 0x1a5   :  { %v8094_v5 = vpop.f32.mrb[44].mxu1  ;;  %v2936_v9 = vpop.f32.mrb[45].mxu0 }
 0x1a6   :  { %9047 = vst [vmem:[#allocation34_spill] sm:$0xff] %v8094_v5  ;;  %v3824_v18 = vpop.f32.mrb[45].mxu1  ;;  %v8096_v23 = vpop.f32.mrb[46].mxu0  ;;  %v7510_v9 = vld [vmem:[#allocation5 + $0x458] ss:$12 sps:$4 sm:$0xff]  }
 0x1a7   :  { %v8098_v30 = vpop.f32.mrb[46].mxu1  ;;  %v2939_v35 = vpop.f32.mrb[47].mxu0  ;;  %v7513_v5 = vld [vmem:[#allocation5 + $0x3dc] ss:$12 sps:$4 sm:$0xff]  }
 0x1a8   :  { %9048 = vst [vmem:[#allocation35_spill] sm:$0xff] %v8098_v30  ;;  %v3827_v36 = vpop.f32.mrb[47].mxu1 }
 0x1a9   :  { %3149 = vmatmul.mubr.bf16.gmra.mrb[152].mxu0 %v7501_v10 }
 0x1aa   :  { %6795 = vmatmul.mubr.bf16.gmra.mrb[152].mxu1 %v7502_v17  ;;  %3156 = vmatprep.mubr.bf16.mxu0 %v7503_v24 }
 0x1ab   :  { %6798 = vmatprep.mubr.bf16.mxu1 %v7505_v27  ;;  %v7511_v27 = vld [vmem:[#allocation5 + $0x3c0] ss:$12 sps:$4 sm:$0xff]  }
 0x1ac   :  { %v8100_v45 = vpop.f32.mrb[48].mxu0 }
 0x1ad   :  { %v8102_v46 = vpop.f32.mrb[48].mxu1  ;;  %v2944_v48 = vpop.f32.mrb[49].mxu0 }
 0x1ae   :  { %9049 = vst [vmem:[#allocation36_spill] sm:$0xff] %v8102_v46  ;;  %v3832_v59 = vpop.f32.mrb[49].mxu1  ;;  %v8104_v62 = vpop.f32.mrb[50].mxu0  ;;  %v7512_v48 = vld [vmem:[#allocation5 + $0x470] ss:$12 sps:$4 sm:$0xff]  }
 0x1af   :  { %v8106_v18 = vpop.f32.mrb[50].mxu1  ;;  %v2947_v35 = vpop.f32.mrb[51].mxu0  ;;  %v7515_v46 = vld [vmem:[#allocation5 + $0x488] ss:$12 sps:$4 sm:$0xff]  }
 0x1b0   :  { %9050 = vst [vmem:[#allocation37_spill] sm:$0xff] %v8106_v18  ;;  %v3835_v36 = vpop.f32.mrb[51].mxu1  ;;  %v7518_v18 = vld [vmem:[#allocation5 + $0x3f4] ss:$12 sps:$4 sm:$0xff]  }
 0x1b1   :  { %3157 = vmatmul.mubr.bf16.gmra.mrb[156].mxu0 %v7506_v50 }
 0x1b2   :  { %6799 = vmatmul.mubr.bf16.gmra.mrb[156].mxu1 %v7507_v54  ;;  %3164 = vmatprep.mubr.bf16.mxu0 %v7508_v63 }
 0x1b3   :  { %6802 = vmatprep.mubr.bf16.mxu1 %v7510_v9  ;;  %v7516_v9 = vld [vmem:[#allocation5 + $0x3d8] ss:$12 sps:$4 sm:$0xff]  }
 0x1b4   :  { %v8108_v10 = vpop.f32.mrb[52].mxu0 }
 0x1b5   :  { %v8110_v17 = vpop.f32.mrb[52].mxu1  ;;  %v2952_v24 = vpop.f32.mrb[53].mxu0 }
 0x1b6   :  { %9051 = vst [vmem:[#allocation38_spill] sm:$0xff] %v8110_v17  ;;  %v3840_v59 = vpop.f32.mrb[53].mxu1  ;;  %v8112_v30 = vpop.f32.mrb[54].mxu0  ;;  %v7517_v24 = vld [vmem:[#allocation5 + $0x4a0] ss:$12 sps:$4 sm:$0xff]  }
 0x1b7   :  { %v8114_v33 = vpop.f32.mrb[54].mxu1  ;;  %v2955_v35 = vpop.f32.mrb[55].mxu0 }
 0x1b8   :  { %9052 = vst [vmem:[#allocation39_spill] sm:$0xff] %v8114_v33  ;;  %v3843_v36 = vpop.f32.mrb[55].mxu1 }
 0x1b9   :  { %3165 = vmatmul.mubr.bf16.gmra.mrb[160].mxu0 %v7511_v27 }
 0x1ba   :  { %6803 = vmatmul.mubr.bf16.gmra.mrb[160].mxu1 %v7512_v48  ;;  %3172 = vmatprep.mubr.bf16.mxu0 %v7513_v5  ;;  %v7521_v48 = vld [vmem:[#allocation5 + $0x3f0] ss:$12 sps:$4 sm:$0xff]  }
 0x1bb   :  { %6806 = vmatprep.mubr.bf16.mxu1 %v7515_v46 }
 0x1bc   :  { %v8116_v50 = vpop.f32.mrb[56].mxu0 }
 0x1bd   :  { %v8118_v54 = vpop.f32.mrb[56].mxu1  ;;  %v2960_v63 = vpop.f32.mrb[57].mxu0 }
 0x1be   :  { %9053 = vst [vmem:[#allocation40_spill] sm:$0xff] %v8118_v54  ;;  %v3848_v59 = vpop.f32.mrb[57].mxu1  ;;  %v8120_v17 = vpop.f32.mrb[58].mxu0  ;;  %v7522_v63 = vld [vmem:[#allocation5 + $0x4d0] ss:$12 sps:$4 sm:$0xff]  }
 0x1bf   :  { %v8122_v14 = vpop.f32.mrb[58].mxu1  ;;  %v2963_v35 = vpop.f32.mrb[59].mxu0 }
 0x1c0   :  { %9054 = vst [vmem:[#allocation41_spill] sm:$0xff] %v8122_v14  ;;  %v3851_v36 = vpop.f32.mrb[59].mxu1  ;;  %v7525_v14 = vld [vmem:[#allocation5 + $0x4e8] ss:$12 sps:$4 sm:$0xff]  }
 0x1c1   :  { %3173 = vmatmul.mubr.bf16.gmra.mrb[164].mxu0 %v7516_v9 }
 0x1c2   :  { %6807 = vmatmul.mubr.bf16.gmra.mrb[164].mxu1 %v7517_v24  ;;  %3180 = vmatprep.mubr.bf16.mxu0 %v7518_v18  ;;  %v7526_v24 = vld [vmem:[#allocation5 + $0x408] ss:$12 sps:$4 sm:$0xff]  }
 0x1c3   :  { %6810 = vmatprep.mubr.bf16.mxu1 %v7520_v60 }
 0x1c4   :  { %v8124_v5 = vpop.f32.mrb[60].mxu0 }
 0x1c5   :  { %v8126_v46 = vpop.f32.mrb[60].mxu1  ;;  %v2968_v27 = vpop.f32.mrb[61].mxu0 }
 0x1c6   :  { %9055 = vst [vmem:[#allocation42_spill] sm:$0xff] %v8126_v46  ;;  %v3856_v59 = vpop.f32.mrb[61].mxu1  ;;  %v8128_v33 = vpop.f32.mrb[62].mxu0 }
 0x1c7   :  { %v8130_v54 = vpop.f32.mrb[62].mxu1  ;;  %v2971_v35 = vpop.f32.mrb[63].mxu0  ;;  %v7527_v59 = vld [vmem:[#allocation5 + $0x500] ss:$12 sps:$4 sm:$0xff]  }
 0x1c8   :  { %9056 = vst [vmem:[#allocation43_spill] sm:$0xff] %v8130_v54  ;;  %v3859_v36 = vpop.f32.mrb[63].mxu1  ;;  %v7528_v54 = vld [vmem:[#allocation5 + $0x424] ss:$12 sps:$4 sm:$0xff]  }
 0x1c9   :  { %3181 = vmatmul.mubr.bf16.gmra.mrb[168].mxu0 %v7521_v48 }
 0x1ca   :  { %6811 = vmatmul.mubr.bf16.gmra.mrb[168].mxu1 %v7522_v63  ;;  %3188 = vmatprep.mubr.bf16.mxu0 %v7523_v42 }
 0x1cb   :  { %6814 = vmatprep.mubr.bf16.mxu1 %v7525_v14 }
 0x1cc   :  { %v8132_v60 = vpop.f32.mrb[64].mxu0 }
 0x1cd   :  { %v8134_v18 = vpop.f32.mrb[64].mxu1  ;;  %v2976_v9 = vpop.f32.mrb[65].mxu0 }
 0x1ce   :  { %9057 = vst [vmem:[#allocation44_spill] sm:$0xff] %v8134_v18  ;;  %v3864_v27 = vpop.f32.mrb[65].mxu1  ;;  %v8136_v46 = vpop.f32.mrb[66].mxu0  ;;  %v7532_v18 = vld [vmem:[#allocation5 + $0x530] ss:$12 sps:$4 sm:$0xff]  }
 0x1cf   :  { %v8138_v51 = vpop.f32.mrb[66].mxu1  ;;  %v2979_v35 = vpop.f32.mrb[67].mxu0  ;;  %v7531_v27 = vld [vmem:[#allocation5 + $0x420] ss:$12 sps:$4 sm:$0xff]  }
 0x1d0   :  { %9058 = vst [vmem:[#allocation45_spill] sm:$0xff] %v8138_v51  ;;  %v3867_v36 = vpop.f32.mrb[67].mxu1  ;;  %v7533_v35 = vld [vmem:[#allocation5 + $0x43c] ss:$12 sps:$4 sm:$0xff]  }
 0x1d1   :  { %3189 = vmatmul.mubr.bf16.gmra.mrb[172].mxu0 %v7526_v24  ;;  %v7535_v36 = vld [vmem:[#allocation5 + $0x548] ss:$12 sps:$4 sm:$0xff]  }
 0x1d2   :  { %6815 = vmatmul.mubr.bf16.gmra.mrb[172].mxu1 %v7527_v59  ;;  %3196 = vmatprep.mubr.bf16.mxu0 %v7528_v54 }
 0x1d3   :  { %6818 = vmatprep.mubr.bf16.mxu1 %v7530_v6 }
 0x1d4   :  { %v8140_v14 = vpop.f32.mrb[68].mxu0 }
 0x1d5   :  { %v6712_v42 = vpop.f32.mrb[68].mxu1  ;;  %v2984_v63 = vpop.f32.mrb[69].mxu0 }
 0x1d6   :  { %v3912_v48 = vadd.f32 %v6712_v42, %v8012_v19  ;;  %v3903_v9 = vpop.f32.mrb[69].mxu1  ;;  %v8144_v51 = vpop.f32.mrb[70].mxu0 }
 0x1d7   :  { %v3904_v39 = vadd.f32 %v3903_v9, %v8004_v7  ;;  %v6713_v58 = vpop.f32.mrb[70].mxu1  ;;  %v2987_v54 = vpop.f32.mrb[71].mxu0 }
 0x1d8   :  { %v3915_v24 = vadd.f32 %v6713_v58, %v8016_v25  ;;  %v3906_v6 = vpop.f32.mrb[71].mxu1  ;;  %v4928_v15 = vmax.f32 %v3912_v48, 0.0  ;;  %v7537_v48 = vld [vmem:[#allocation5 + $0x560] ss:$12 sps:$4 sm:$0xff]  }
 0x1d9   :  { %v3907_v59 = vadd.f32 %v3906_v6, %v8008_v13  ;;  %3197 = vmatmul.mubr.bf16.gmra.mrb[176].mxu0 %v7531_v27  ;;  %v4926_v19 = vmax.f32 %v3904_v39, 0.0  ;;  %v7536_v13 = vld [vmem:[#allocation5 + $0x438] ss:$12 sps:$4 sm:$0xff]  }
 0x1da   :  { %v4929_v34 = vmax.f32 %v3915_v24, 0.0  ;;  %6819 = vmatmul.mubr.bf16.gmra.mrb[176].mxu1 %v7532_v18  ;;  %3204 = vmatprep.mubr.bf16.mxu0 %v7533_v35  ;;  %v7538_v35 = vld [vmem:[#allocation5 + $0x454] ss:$12 sps:$4 sm:$0xff]  }
 0x1db   :  { %v4927_v42 = vmax.f32 %v3907_v59, 0.0  ;;  %6822 = vmatprep.mubr.bf16.mxu1 %v7535_v36  ;;  %v7540_v36 = vld [vmem:[#allocation5 + $0x578] ss:$12 sps:$4 sm:$0xff]  }
 0x1dc   :  { %v8148_v7 = vpack.c.bf16 %v4929_v34, %v4928_v15  ;;  %v8152_v9 = vpop.f32.mrb[72].mxu0 }
 0x1dd   :  { %v8150_v63 = vpack.c.bf16 %v4927_v42, %v4926_v19  ;;  %v6716_v4 = vpop.f32.mrb[72].mxu1  ;;  %v2992_v58 = vpop.f32.mrb[73].mxu0 }
 0x1de   :  { %v3928_v25 = vadd.f32 %v6716_v4, %v8028_v43  ;;  %v3919_v54 = vpop.f32.mrb[73].mxu1  ;;  %v8156_v18 = vpop.f32.mrb[74].mxu0 }
 0x1df   :  { %v3920_v27 = vadd.f32 %v3919_v54, %v8020_v31  ;;  %v6717_v39 = vpop.f32.mrb[74].mxu1  ;;  %v2995_v34 = vpop.f32.mrb[75].mxu0 }
 0x1e0   :  { %v3931_v15 = vadd.f32 %v6717_v39, %v8032_v49  ;;  %v3922_v24 = vpop.f32.mrb[75].mxu1  ;;  %v4932_v59 = vmax.f32 %v3928_v25, 0.0  ;;  %v7542_v25 = vld [vmem:[#allocation5 + $0x590] ss:$12 sps:$4 sm:$0xff]  }
 0x1e1   :  { %v3923_v6 = vadd.f32 %v3922_v24, %v8024_v37  ;;  %3205 = vmatmul.mubr.bf16.gmra.mrb[180].mxu0 %v7536_v13  ;;  %v4930_v43 = vmax.f32 %v3920_v27, 0.0  ;;  %v7541_v37 = vld [vmem:[#allocation5 + $0x450] ss:$12 sps:$4 sm:$0xff]  }
 0x1e2   :  { %v4933_v19 = vmax.f32 %v3931_v15, 0.0  ;;  %6823 = vmatmul.mubr.bf16.gmra.mrb[180].mxu1 %v7537_v48  ;;  %3212 = vmatprep.mubr.bf16.mxu0 %v7538_v35  ;;  %v7543_v35 = vld [vmem:[#allocation5 + $0x46c] ss:$12 sps:$4 sm:$0xff]  }
 0x1e3   :  { %v4931_v4 = vmax.f32 %v3923_v6, 0.0  ;;  %6826 = vmatprep.mubr.bf16.mxu1 %v7540_v36  ;;  %v7545_v36 = vld [vmem:[#allocation5 + $0x5a8] ss:$12 sps:$4 sm:$0xff]  }
 0x1e4   :  { %v8160_v31 = vpack.c.bf16 %v4933_v19, %v4932_v59  ;;  %v8164_v58 = vpop.f32.mrb[76].mxu0 }
 0x1e5   :  { %v8162_v42 = vpack.c.bf16 %v4931_v4, %v4930_v43  ;;  %v6720_v54 = vpop.f32.mrb[76].mxu1  ;;  %v3000_v39 = vpop.f32.mrb[77].mxu0 }
 0x1e6   :  { %v3944_v49 = vadd.f32 %v6720_v54, %v8044_v3  ;;  %v3935_v34 = vpop.f32.mrb[77].mxu1  ;;  %v8168_v48 = vpop.f32.mrb[78].mxu0 }
 0x1e7   :  { %v3936_v13 = vadd.f32 %v3935_v34, %v8036_v55  ;;  %v6721_v27 = vpop.f32.mrb[78].mxu1  ;;  %v3003_v24 = vpop.f32.mrb[79].mxu0 }
 0x1e8   :  { %v3947_v15 = vadd.f32 %v6721_v27, %v8048_v11  ;;  %v3938_v6 = vpop.f32.mrb[79].mxu1  ;;  %v4936_v19 = vmax.f32 %v3944_v49, 0.0  ;;  %v7547_v49 = vld [vmem:[#allocation5 + $0x5c0] ss:$12 sps:$4 sm:$0xff]  }
 0x1e9   :  { %v3939_v59 = vadd.f32 %v3938_v6, %v8040_v61  ;;  %3213 = vmatmul.mubr.bf16.gmra.mrb[184].mxu0 %v7541_v37  ;;  %v4934_v3 = vmax.f32 %v3936_v13, 0.0  ;;  %v7546_v61 = vld [vmem:[#allocation5 + $0x468] ss:$12 sps:$4 sm:$0xff]  }
 0x1ea   :  { %v4937_v43 = vmax.f32 %v3947_v15, 0.0  ;;  %6827 = vmatmul.mubr.bf16.gmra.mrb[184].mxu1 %v7542_v25  ;;  %3220 = vmatprep.mubr.bf16.mxu0 %v7543_v35  ;;  %v7548_v35 = vld [vmem:[#allocation5 + $0x484] ss:$12 sps:$4 sm:$0xff]  }
 0x1eb   :  { %v4935_v4 = vmax.f32 %v3939_v59, 0.0  ;;  %6830 = vmatprep.mubr.bf16.mxu1 %v7545_v36  ;;  %v7550_v36 = vld [vmem:[#allocation5 + $0x5d8] ss:$12 sps:$4 sm:$0xff]  }
 0x1ec   :  { %v8172_v55 = vpack.c.bf16 %v4937_v43, %v4936_v19  ;;  %v8176_v39 = vpop.f32.mrb[80].mxu0 }
 0x1ed   :  { %v8174_v54 = vpack.c.bf16 %v4935_v4, %v4934_v3  ;;  %v6724_v34 = vpop.f32.mrb[80].mxu1  ;;  %v3008_v27 = vpop.f32.mrb[81].mxu0 }
 0x1ee   :  { %v3960_v11 = vadd.f32 %v6724_v34, %v8060_v38  ;;  %v3951_v24 = vpop.f32.mrb[81].mxu1  ;;  %v8180_v25 = vpop.f32.mrb[82].mxu0 }
 0x1ef   :  { %v3952_v37 = vadd.f32 %v3951_v24, %v8052_v21  ;;  %v6725_v13 = vpop.f32.mrb[82].mxu1  ;;  %v3011_v6 = vpop.f32.mrb[83].mxu0 }
 0x1f0   :  { %v3963_v15 = vadd.f32 %v6725_v13, %v8064_v47  ;;  %v3954_v59 = vpop.f32.mrb[83].mxu1  ;;  %v4940_v43 = vmax.f32 %v3960_v11, 0.0  ;;  %v7552_v11 = vld [vmem:[#allocation5 + $0x5f0] ss:$12 sps:$4 sm:$0xff]  }
 0x1f1   :  { %v3955_v19 = vadd.f32 %v3954_v59, %v8056_v29  ;;  %3221 = vmatmul.mubr.bf16.gmra.mrb[188].mxu0 %v7546_v61  ;;  %v4938_v38 = vmax.f32 %v3952_v37, 0.0  ;;  %v7551_v29 = vld [vmem:[#allocation5 + $0x480] ss:$12 sps:$4 sm:$0xff]  }
 0x1f2   :  { %v4941_v3 = vmax.f32 %v3963_v15, 0.0  ;;  %6831 = vmatmul.mubr.bf16.gmra.mrb[188].mxu1 %v7547_v49  ;;  %3228 = vmatprep.mubr.bf16.mxu0 %v7548_v35  ;;  %v7553_v35 = vld [vmem:[#allocation5 + $0x49c] ss:$12 sps:$4 sm:$0xff]  }
 0x1f3   :  { %v4939_v4 = vmax.f32 %v3955_v19, 0.0  ;;  %6834 = vmatprep.mubr.bf16.mxu1 %v7550_v36  ;;  %v7555_v36 = vld [vmem:[#allocation5 + $0x608] ss:$12 sps:$4 sm:$0xff]  }
 0x1f4   :  { %v8184_v21 = vpack.c.bf16 %v4941_v3, %v4940_v43  ;;  %v8188_v27 = vpop.f32.mrb[84].mxu0 }
 0x1f5   :  { %v8186_v34 = vpack.c.bf16 %v4939_v4, %v4938_v38  ;;  %v6728_v24 = vpop.f32.mrb[84].mxu1  ;;  %v3016_v13 = vpop.f32.mrb[85].mxu0 }
 0x1f6   :  { %v3976_v47 = vadd.f32 %v6728_v24, %v8076_v12  ;;  %v3967_v6 = vpop.f32.mrb[85].mxu1  ;;  %v8192_v49 = vpop.f32.mrb[86].mxu0 }
 0x1f7   :  { %v3968_v61 = vadd.f32 %v3967_v6, %v8068_v57  ;;  %v6729_v37 = vpop.f32.mrb[86].mxu1  ;;  %v3019_v59 = vpop.f32.mrb[87].mxu0 }
 0x1f8   :  { %v3979_v15 = vadd.f32 %v6729_v37, %v8080_v26  ;;  %v3970_v19 = vpop.f32.mrb[87].mxu1  ;;  %v4944_v3 = vmax.f32 %v3976_v47, 0.0  ;;  %v7556_v59 = vld [vmem:[#allocation5 + $0x498] ss:$12 sps:$4 sm:$0xff]  }
 0x1f9   :  { %v3971_v43 = vadd.f32 %v3970_v19, %v8072_v1  ;;  %3229 = vmatmul.mubr.bf16.gmra.mrb[192].mxu0 %v7551_v29  ;;  %v4942_v12 = vmax.f32 %v3968_v61, 0.0  ;;  %v7560_v61 = vld [vmem:[#allocation5 + $0x638] ss:$12 sps:$4 sm:$0xff]  }
 0x1fa   :  { %v4945_v38 = vmax.f32 %v3979_v15, 0.0  ;;  %6835 = vmatmul.mubr.bf16.gmra.mrb[192].mxu1 %v7552_v11  ;;  %3236 = vmatprep.mubr.bf16.mxu0 %v7553_v35  ;;  %v7558_v11 = vld [vmem:[#allocation5 + $0x4b4] ss:$12 sps:$4 sm:$0xff]  }
 0x1fb   :  { %v4943_v4 = vmax.f32 %v3971_v43, 0.0  ;;  %6838 = vmatprep.mubr.bf16.mxu1 %v7555_v36 }
 0x1fc   :  { %v6970_v57 = vpack.c.bf16 %v4945_v38, %v4944_v3  ;;  %v8196_v24 = vpop.f32.mrb[88].mxu0 }
 0x1fd   :  { %v6732_v13 = vpop.f32.mrb[88].mxu1  ;;  %v6966_v6 = vpack.c.bf16 %v4943_v4, %v4942_v12  ;;  %v3024_v26 = vpop.f32.mrb[89].mxu0 }
 0x1fe   :  { %v3992_v22 = vadd.f32 %v6732_v13, %v8092_v2  ;;  %v3983_v37 = vpop.f32.mrb[89].mxu1  ;;  %v8200_v47 = vpop.f32.mrb[90].mxu0 }
 0x1ff   :  { %v3984_v1 = vadd.f32 %v3983_v37, %v8084_v41  ;;  %v6733_v29 = vpop.f32.mrb[90].mxu1  ;;  %6967 = vmatprep.subr.bf16.mxu1 %v6966_v6  ;;  %v3027_v36 = vpop.f32.mrb[91].mxu0  ;;  %v7563_v37 = vld [vmem:[#allocation5 + $0x4cc] ss:$12 sps:$4 sm:$0xff]  }
 0x200   :  { %v3995_v35 = vadd.f32 %v6733_v29, %v8096_v23  ;;  %v3986_v15 = vpop.f32.mrb[91].mxu1  ;;  %6969 = vmatpush3.bf16.msra.mxu1 %v8150_v63  ;;  %v4948_v19 = vmax.f32 %v3992_v22, 0.0  ;;  %v7562_v22 = vld [vmem:[#allocation5 + $0x650] ss:$12 sps:$4 sm:$0xff]  }
 0x201   :  { %v3987_v2 = vadd.f32 %v3986_v15, %v8088_v53  ;;  %6971 = vmatprep.subr.bf16.mxu1 %v6970_v57  ;;  %3237 = vmatmul.mubr.bf16.gmra.mrb[196].mxu0 %v7556_v59  ;;  %v4946_v41 = vmax.f32 %v3984_v1, 0.0  ;;  %v7561_v57 = vld [vmem:[#allocation5 + $0x4b0] ss:$12 sps:$4 sm:$0xff]   ;;  %v7565_v59 = vld [vmem:[#allocation5 + $0x668] ss:$12 sps:$4 sm:$0xff]  }
 0x202   :  { %v4949_v43 = vmax.f32 %v3995_v35, 0.0  ;;  %6839 = vmatmul.mubr.bf16.gmra.mrb[196].mxu1 %v7557_v52  ;;  %3244 = vmatprep.mubr.bf16.mxu0 %v7558_v11 }
 0x203   :  { %v4947_v3 = vmax.f32 %v3987_v2, 0.0  ;;  %6842 = vmatprep.mubr.bf16.mxu1 %v7560_v61 }
 0x204   :  { %6973 = vmatpush3.bf16.msra.mxu1 %v8148_v7  ;;  %v6978_v38 = vpack.c.bf16 %v4949_v43, %v4948_v19  ;;  %v8206_v12 = vpop.f32.mrb[92].mxu0  ;;  %v7566_v43 = vld [vmem:[#allocation5 + $0x4c8] ss:$12 sps:$4 sm:$0xff]  }
 0x205   :  { %v6736_v23 = vpop.f32.mrb[92].mxu1  ;;  %v6974_v4 = vpack.c.bf16 %v4947_v3, %v4946_v41  ;;  %v3032_v13 = vpop.f32.mrb[93].mxu0  ;;  %v7567_v41 = vld [vmem:[#allocation5 + $0x680] ss:$12 sps:$4 sm:$0xff]  }
 0x206   :  { %v4008_v63 = vadd.f32 %v6736_v23, %v8108_v10  ;;  %v3999_v53 = vpop.f32.mrb[93].mxu1  ;;  %v8210_v52 = vpop.f32.mrb[94].mxu0 }
 0x207   :  { %v4000_v6 = vadd.f32 %v3999_v53, %v8100_v45  ;;  %v6737_v26 = vpop.f32.mrb[94].mxu1  ;;  %6975 = vmatprep.subr.bf16.mxu1 %v6974_v4  ;;  %v3035_v1 = vpop.f32.mrb[95].mxu0  ;;  %v7568_v4 = vld [vmem:[#allocation5 + $0x4e4] ss:$12 sps:$4 sm:$0xff]  }
 0x208   :  { %v4011_v7 = vadd.f32 %v6737_v26, %v8112_v30  ;;  %v4002_v29 = vpop.f32.mrb[95].mxu1  ;;  %6977 = vmatpush3.bf16.msra.mxu1 %v8162_v42  ;;  %v4952_v11 = vmax.f32 %v4008_v63, 0.0  ;;  %v7570_v63 = vld [vmem:[#allocation5 + $0x698] ss:$12 sps:$4 sm:$0xff]   ;;  %v7571_v1 = vld [vmem:[#allocation5 + $0x4e0] ss:$12 sps:$4 sm:$0xff]  }
 0x209   :  { %v4003_v10 = vadd.f32 %v4002_v29, %v8104_v62  ;;  %6979 = vmatprep.subr.bf16.mxu1 %v6978_v38  ;;  %3245 = vmatmul.mubr.bf16.gmra.mrb[200].mxu0 %v7561_v57  ;;  %v4950_v45 = vmax.f32 %v4000_v6, 0.0  ;;  %v7572_v29 = vld [vmem:[#allocation5 + $0x6b0] ss:$12 sps:$4 sm:$0xff]  }
 0x20a   :  { %v4953_v61 = vmax.f32 %v4011_v7, 0.0  ;;  %6843 = vmatmul.mubr.bf16.gmra.mrb[200].mxu1 %v7562_v22  ;;  %3252 = vmatprep.mubr.bf16.mxu0 %v7563_v37 }
 0x20b   :  { %v4951_v35 = vmax.f32 %v4003_v10, 0.0  ;;  %6846 = vmatprep.mubr.bf16.mxu1 %v7565_v59 }
 0x20c   :  { %6981 = vmatpush3.bf16.msra.mxu1 %v8160_v31  ;;  %v6986_v36 = vpack.c.bf16 %v4953_v61, %v4952_v11  ;;  %v8216_v15 = vpop.f32.mrb[96].mxu0 }
 0x20d   :  { %v6740_v30 = vpop.f32.mrb[96].mxu1  ;;  %v6982_v2 = vpack.c.bf16 %v4951_v35, %v4950_v45  ;;  %v3040_v19 = vpop.f32.mrb[97].mxu0  ;;  %v7573_v45 = vld [vmem:[#allocation5 + $0x4fc] ss:$12 sps:$4 sm:$0xff]  }
 0x20e   :  { %v4024_v42 = vadd.f32 %v6740_v30, %v8124_v5  ;;  %v4015_v62 = vpop.f32.mrb[97].mxu1  ;;  %v8220_v38 = vpop.f32.mrb[98].mxu0  ;;  %v7575_v35 = vld [vmem:[#allocation5 + $0x6c8] ss:$12 sps:$4 sm:$0xff]  }
 0x20f   :  { %v4016_v3 = vadd.f32 %v4015_v62, %v8116_v50  ;;  %v6741_v23 = vpop.f32.mrb[98].mxu1  ;;  %6983 = vmatprep.subr.bf16.mxu1 %v6982_v2  ;;  %v3043_v13 = vpop.f32.mrb[99].mxu0 }
 0x210   :  { %v4027_v31 = vadd.f32 %v6741_v23, %v8128_v33  ;;  %v4018_v53 = vpop.f32.mrb[99].mxu1  ;;  %6985 = vmatpush3.bf16.msra.mxu1 %v8174_v54  ;;  %v4956_v57 = vmax.f32 %v4024_v42, 0.0  ;;  %v7576_v23 = vld [vmem:[#allocation5 + $0x4f8] ss:$12 sps:$4 sm:$0xff]  }
 0x211   :  { %v4019_v5 = vadd.f32 %v4018_v53, %v8120_v17  ;;  %6987 = vmatprep.subr.bf16.mxu1 %v6986_v36  ;;  %3253 = vmatmul.mubr.bf16.gmra.mrb[204].mxu0 %v7566_v43  ;;  %v4954_v50 = vmax.f32 %v4016_v3, 0.0  ;;  %v7578_v53 = vld [vmem:[#allocation5 + $0x514] ss:$12 sps:$4 sm:$0xff]  }
 0x212   :  { %v4957_v22 = vmax.f32 %v4027_v31, 0.0  ;;  %6847 = vmatmul.mubr.bf16.gmra.mrb[204].mxu1 %v7567_v41  ;;  %3260 = vmatprep.mubr.bf16.mxu0 %v7568_v4  ;;  %v7577_v4 = vld [vmem:[#allocation5 + $0x6e0] ss:$12 sps:$4 sm:$0xff]  }
 0x213   :  { %v4955_v6 = vmax.f32 %v4019_v5, 0.0  ;;  %6850 = vmatprep.mubr.bf16.mxu1 %v7570_v63  ;;  %v7580_v5 = vld [vmem:[#allocation5 + $0x6f8] ss:$12 sps:$4 sm:$0xff]  }
 0x214   :  { %6989 = vmatpush3.bf16.msra.mxu1 %v8172_v55  ;;  %v6994_v26 = vpack.c.bf16 %v4957_v22, %v4956_v57  ;;  %v8226_v37 = vpop.f32.mrb[100].mxu0 }
 0x215   :  { %v6744_v33 = vpop.f32.mrb[100].mxu1  ;;  %v6990_v59 = vpack.c.bf16 %v4955_v6, %v4954_v50  ;;  %v3048_v7 = vpop.f32.mrb[101].mxu0 }
 0x216   :  { %v4040_v54 = vadd.f32 %v6744_v33, %v8140_v14  ;;  %v4031_v17 = vpop.f32.mrb[101].mxu1  ;;  %v8230_v11 = vpop.f32.mrb[102].mxu0 }
 0x217   :  { %v4032_v10 = vadd.f32 %v4031_v17, %v8132_v60  ;;  %v6745_v61 = vpop.f32.mrb[102].mxu1  ;;  %6991 = vmatprep.subr.bf16.mxu1 %v6990_v59  ;;  %v3051_v36 = vpop.f32.mrb[103].mxu0 }
 0x218   :  { %v4043_v55 = vadd.f32 %v6745_v61, %v8144_v51  ;;  %v4034_v30 = vpop.f32.mrb[103].mxu1  ;;  %6993 = vmatpush3.bf16.msra.mxu1 %v8186_v34  ;;  %v4960_v2 = vmax.f32 %v4040_v54, 0.0 }
 0x219   :  { %v4035_v14 = vadd.f32 %v4034_v30, %v8136_v46  ;;  %6995 = vmatprep.subr.bf16.mxu1 %v6994_v26  ;;  %3261 = vmatmul.mubr.bf16.gmra.mrb[208].mxu0 %v7571_v1  ;;  %v4958_v60 = vmax.f32 %v4032_v10, 0.0 }
 0x21a   :  { %v4961_v42 = vmax.f32 %v4043_v55, 0.0  ;;  %6851 = vmatmul.mubr.bf16.gmra.mrb[208].mxu1 %v7572_v29  ;;  %3268 = vmatprep.mubr.bf16.mxu0 %v7573_v45  ;;  %v7582_v29 = vld [vmem:[#allocation5 + $0x710] ss:$12 sps:$4 sm:$0xff]   ;;  %v7585_v55 = vld [vmem:[#allocation5 + $0x728] ss:$12 sps:$4 sm:$0xff]  }
 0x21b   :  { %v4959_v19 = vmax.f32 %v4035_v14, 0.0  ;;  %6854 = vmatprep.mubr.bf16.mxu1 %v7575_v35  ;;  %v7583_v35 = vld [vmem:[#allocation5 + $0x52c] ss:$12 sps:$4 sm:$0xff]  }
 0x21c   :  { %v8235_v62 = vpack.c.bf16 %v4961_v42, %v4960_v2  ;;  %6997 = vmatpush3.bf16.msra.mxu1 %v8184_v21  ;;  %v8240_v43 = vpop.f32.mrb[104].mxu0 }
 0x21d   :  { %v8238_v51 = vpack.c.bf16 %v4959_v19, %v4958_v60  ;;  %v6748_v34 = vpop.f32.mrb[104].mxu1  ;;  %v3056_v41 = vpop.f32.mrb[105].mxu0 }
 0x21e   :  { %v4056_v46 = vadd.f32 %v6748_v34, %v8164_v58  ;;  %v4047_v3 = vpop.f32.mrb[105].mxu1  ;;  %v8244_v31 = vpop.f32.mrb[106].mxu0 }
 0x21f   :  { %v4048_v63 = vadd.f32 %v4047_v3, %v8152_v9  ;;  %v6749_v13 = vpop.f32.mrb[106].mxu1  ;;  %v3059_v57 = vpop.f32.mrb[107].mxu0 }
 0x220   :  { %v4059_v21 = vadd.f32 %v6749_v13, %v8168_v48  ;;  %v4050_v22 = vpop.f32.mrb[107].mxu1  ;;  %v4964_v6 = vmax.f32 %v4056_v46, 0.0 }
 0x221   :  { %v4051_v50 = vadd.f32 %v4050_v22, %v8156_v18  ;;  %3269 = vmatmul.mubr.bf16.gmra.mrb[212].mxu0 %v7576_v23  ;;  %v4962_v58 = vmax.f32 %v4048_v63, 0.0  ;;  %v7581_v18 = vld [vmem:[#allocation5 + $0x510] ss:$12 sps:$4 sm:$0xff]  }
 0x222   :  { %v4965_v26 = vmax.f32 %v4059_v21, 0.0  ;;  %6855 = vmatmul.mubr.bf16.gmra.mrb[212].mxu1 %v7577_v4  ;;  %3276 = vmatprep.mubr.bf16.mxu0 %v7578_v53  ;;  %v7587_v4 = vld [vmem:[#allocation5 + $0x740] ss:$12 sps:$4 sm:$0xff]   ;;  %v7590_v21 = vld [vmem:[#allocation5 + $0x758] ss:$12 sps:$4 sm:$0xff]  }
 0x223   :  { %v4963_v33 = vmax.f32 %v4051_v50, 0.0  ;;  %6858 = vmatprep.mubr.bf16.mxu1 %v7580_v5  ;;  %v7588_v5 = vld [vmem:[#allocation5 + $0x544] ss:$12 sps:$4 sm:$0xff]  }
 0x224   :  { %v8248_v9 = vpack.c.bf16 %v4965_v26, %v4964_v6  ;;  %v8252_v54 = vpop.f32.mrb[108].mxu0 }
 0x225   :  { %v8250_v59 = vpack.c.bf16 %v4963_v33, %v4962_v58  ;;  %v6752_v7 = vpop.f32.mrb[108].mxu1  ;;  %v3064_v17 = vpop.f32.mrb[109].mxu0 }
 0x226   :  { %v4072_v48 = vadd.f32 %v6752_v7, %v8188_v27  ;;  %v4063_v1 = vpop.f32.mrb[109].mxu1  ;;  %v8256_v61 = vpop.f32.mrb[110].mxu0 }
 0x227   :  { %v4064_v10 = vadd.f32 %v4063_v1, %v8176_v39  ;;  %v6753_v45 = vpop.f32.mrb[110].mxu1  ;;  %v3067_v30 = vpop.f32.mrb[111].mxu0 }
 0x228   :  { %v4075_v36 = vadd.f32 %v6753_v45, %v8192_v49  ;;  %v4066_v14 = vpop.f32.mrb[111].mxu1  ;;  %v4968_v42 = vmax.f32 %v4072_v48, 0.0 }
 0x229   :  { %v4067_v2 = vadd.f32 %v4066_v14, %v8180_v25  ;;  %3277 = vmatmul.mubr.bf16.gmra.mrb[216].mxu0 %v7581_v18  ;;  %v4966_v27 = vmax.f32 %v4064_v10, 0.0  ;;  %v7586_v25 = vld [vmem:[#allocation5 + $0x528] ss:$12 sps:$4 sm:$0xff]  }
 0x22a   :  { %v4969_v60 = vmax.f32 %v4075_v36, 0.0  ;;  %6859 = vmatmul.mubr.bf16.gmra.mrb[216].mxu1 %v7582_v29  ;;  %3284 = vmatprep.mubr.bf16.mxu0 %v7583_v35  ;;  %v7591_v29 = vld [vmem:[#allocation5 + $0x540] ss:$12 sps:$4 sm:$0xff]   ;;  %v7595_v36 = vld [vmem:[#allocation5 + $0x788] ss:$12 sps:$4 sm:$0xff]  }
 0x22b   :  { %v4967_v19 = vmax.f32 %v4067_v2, 0.0  ;;  %6862 = vmatprep.mubr.bf16.mxu1 %v7585_v55  ;;  %v7593_v55 = vld [vmem:[#allocation5 + $0x55c] ss:$12 sps:$4 sm:$0xff]  }
 0x22c   :  { %v8260_v39 = vpack.c.bf16 %v4969_v60, %v4968_v42  ;;  %v8264_v46 = vpop.f32.mrb[112].mxu0 }
 0x22d   :  { %v8262_v34 = vpack.c.bf16 %v4967_v19, %v4966_v27  ;;  %v6756_v41 = vpop.f32.mrb[112].mxu1  ;;  %v3072_v3 = vpop.f32.mrb[113].mxu0 }
 0x22e   :  { %v4088_v49 = vadd.f32 %v6756_v41, %v8206_v12  ;;  %v4079_v23 = vpop.f32.mrb[113].mxu1  ;;  %v8268_v13 = vpop.f32.mrb[114].mxu0 }
 0x22f   :  { %v4080_v63 = vadd.f32 %v4079_v23, %v8196_v24  ;;  %v6757_v53 = vpop.f32.mrb[114].mxu1  ;;  %v3075_v22 = vpop.f32.mrb[115].mxu0 }
 0x230   :  { %v4091_v57 = vadd.f32 %v6757_v53, %v8210_v52  ;;  %v4082_v50 = vpop.f32.mrb[115].mxu1  ;;  %v4972_v26 = vmax.f32 %v4088_v49, 0.0 }
 0x231   :  { %v4083_v6 = vadd.f32 %v4082_v50, %v8200_v47  ;;  %3285 = vmatmul.mubr.bf16.gmra.mrb[220].mxu0 %v7586_v25  ;;  %v4970_v12 = vmax.f32 %v4080_v63, 0.0  ;;  %v7592_v47 = vld [vmem:[#allocation5 + $0x770] ss:$12 sps:$4 sm:$0xff]   ;;  %v7597_v63 = vld [vmem:[#allocation5 + $0x7a0] ss:$12 sps:$4 sm:$0xff]  }
 0x232   :  { %v4973_v58 = vmax.f32 %v4091_v57, 0.0  ;;  %6863 = vmatmul.mubr.bf16.gmra.mrb[220].mxu1 %v7587_v4  ;;  %3292 = vmatprep.mubr.bf16.mxu0 %v7588_v5  ;;  %v7596_v4 = vld [vmem:[#allocation5 + $0x558] ss:$12 sps:$4 sm:$0xff]  }
 0x233   :  { %v4971_v33 = vmax.f32 %v4083_v6, 0.0  ;;  %6866 = vmatprep.mubr.bf16.mxu1 %v7590_v21  ;;  %v7598_v21 = vld [vmem:[#allocation5 + $0x574] ss:$12 sps:$4 sm:$0xff]   ;;  %v7600_v57 = vld [vmem:[#allocation5 + $0x7b8] ss:$12 sps:$4 sm:$0xff]  }
 0x234   :  { %v8272_v24 = vpack.c.bf16 %v4973_v58, %v4972_v26  ;;  %v3078_v48 = vpop.f32.mrb[116].mxu0 }
 0x235   :  { %v8274_v7 = vpack.c.bf16 %v4971_v33, %v4970_v12  ;;  %v6760_v17 = vpop.f32.mrb[116].mxu1  ;;  %v3080_v1 = vpop.f32.mrb[117].mxu0 }
 0x236   :  { %v4104_v52 = vadd.f32 %v6760_v17, %v8226_v37  ;;  %v4095_v18 = vpop.f32.mrb[117].mxu1  ;;  %v3081_v45 = vpop.f32.mrb[118].mxu0 }
 0x237   :  { %v4096_v10 = vadd.f32 %v4095_v18, %v8216_v15  ;;  %v6761_v35 = vpop.f32.mrb[118].mxu1  ;;  %v3083_v14 = vpop.f32.mrb[119].mxu0 }
 0x238   :  { %v4107_v30 = vadd.f32 %v6761_v35, %v8230_v11  ;;  %v4098_v2 = vpop.f32.mrb[119].mxu1  ;;  %v4976_v60 = vmax.f32 %v4104_v52, 0.0 }
 0x239   :  { %v4099_v42 = vadd.f32 %v4098_v2, %v8220_v38  ;;  %3293 = vmatmul.mubr.bf16.gmra.mrb[224].mxu0 %v7591_v29  ;;  %v4974_v37 = vmax.f32 %v4096_v10, 0.0  ;;  %v7602_v10 = vld [vmem:[#allocation5 + $0x7d0] ss:$12 sps:$4 sm:$0xff]  }
 0x23a   :  { %v4977_v27 = vmax.f32 %v4107_v30, 0.0  ;;  %6867 = vmatmul.mubr.bf16.gmra.mrb[224].mxu1 %v7592_v47  ;;  %3300 = vmatprep.mubr.bf16.mxu0 %v7593_v55  ;;  %v7601_v47 = vld [vmem:[#allocation5 + $0x570] ss:$12 sps:$4 sm:$0xff]   ;;  %v7605_v30 = vld [vmem:[#allocation5 + $0x7e8] ss:$12 sps:$4 sm:$0xff]  }
 0x23b   :  { %v4975_v19 = vmax.f32 %v4099_v42, 0.0  ;;  %6870 = vmatprep.mubr.bf16.mxu1 %v7595_v36  ;;  %v7603_v36 = vld [vmem:[#allocation5 + $0x58c] ss:$12 sps:$4 sm:$0xff]  }
 0x23c   :  { %v8280_v41 = vpack.c.bf16 %v4977_v27, %v4976_v60  ;;  %v3086_v49 = vpop.f32.mrb[120].mxu0 }
 0x23d   :  { %v6998_v15 = vpack.c.bf16 %v4975_v19, %v4974_v37  ;;  %v6764_v3 = vpop.f32.mrb[120].mxu1  ;;  %v3088_v11 = vpop.f32.mrb[121].mxu0 }
 0x23e   :  { %v4120_v23 = vadd.f32 %v6764_v3, %v8252_v54  ;;  %v4111_v25 = vpop.f32.mrb[121].mxu1  ;;  %v3089_v53 = vpop.f32.mrb[122].mxu0 }
 0x23f   :  { %v4112_v38 = vadd.f32 %v4111_v25, %v8240_v43  ;;  %v6765_v5 = vpop.f32.mrb[122].mxu1  ;;  %6999 = vmatprep.subr.bf16.mxu1 %v6998_v15  ;;  %v3091_v50 = vpop.f32.mrb[123].mxu0 }
 0x240   :  { %v4123_v22 = vadd.f32 %v6765_v5, %v8256_v61  ;;  %v4114_v6 = vpop.f32.mrb[123].mxu1  ;;  %v4980_v58 = vmax.f32 %v4120_v23, 0.0 }
 0x241   :  { %v4115_v26 = vadd.f32 %v4114_v6, %v8244_v31  ;;  %3301 = vmatmul.mubr.bf16.gmra.mrb[228].mxu0 %v7596_v4  ;;  %v4978_v54 = vmax.f32 %v4112_v38, 0.0  ;;  %v7606_v4 = vld [vmem:[#allocation5 + $0x588] ss:$12 sps:$4 sm:$0xff]  }
 0x242   :  { %v4981_v12 = vmax.f32 %v4123_v22, 0.0  ;;  %6871 = vmatmul.mubr.bf16.gmra.mrb[228].mxu1 %v7597_v63  ;;  %3308 = vmatprep.mubr.bf16.mxu0 %v7598_v21  ;;  %v7607_v63 = vld [vmem:[#allocation5 + $0x800] ss:$12 sps:$4 sm:$0xff]   ;;  %v7608_v21 = vld [vmem:[#allocation5 + $0x5a4] ss:$12 sps:$4 sm:$0xff]  }
 0x243   :  { %v4979_v33 = vmax.f32 %v4115_v26, 0.0  ;;  %6874 = vmatprep.mubr.bf16.mxu1 %v7600_v57  ;;  %v7610_v57 = vld [vmem:[#allocation5 + $0x818] ss:$12 sps:$4 sm:$0xff]  }
 0x244   :  { %v8286_v43 = vpack.c.bf16 %v4981_v12, %v4980_v58  ;;  %v3094_v52 = vpop.f32.mrb[124].mxu0 }
 0x245   :  { %v8288_v17 = vpack.c.bf16 %v4979_v33, %v4978_v54  ;;  %v6768_v1 = vpop.f32.mrb[124].mxu1  ;;  %v3096_v61 = vpop.f32.mrb[125].mxu0 }
 0x246   :  { %v4136_v18 = vadd.f32 %v6768_v1, %v3078_v48  ;;  %v4127_v29 = vpop.f32.mrb[125].mxu1  ;;  %v3097_v35 = vpop.f32.mrb[126].mxu0 }
 0x247   :  { %v4128_v31 = vadd.f32 %v4127_v29, %v8264_v46  ;;  %v6769_v55 = vpop.f32.mrb[126].mxu1  ;;  %v3099_v2 = vpop.f32.mrb[127].mxu0 }
 0x248   :  { %v4139_v14 = vadd.f32 %v6769_v55, %v3081_v45  ;;  %v4130_v42 = vpop.f32.mrb[127].mxu1  ;;  %v4984_v27 = vmax.f32 %v4136_v18, 0.0 }
 0x249   :  { %v4131_v60 = vadd.f32 %v4130_v42, %v8268_v13  ;;  %3309 = vmatmul.mubr.bf16.gmra.mrb[232].mxu0 %v7601_v47  ;;  %v4982_v48 = vmax.f32 %v4128_v31, 0.0  ;;  %v7612_v31 = vld [vmem:[#allocation5 + $0x830] ss:$12 sps:$4 sm:$0xff]  }
 0x24a   :  { %v4985_v37 = vmax.f32 %v4139_v14, 0.0  ;;  %6875 = vmatmul.mubr.bf16.gmra.mrb[232].mxu1 %v7602_v10  ;;  %3316 = vmatprep.mubr.bf16.mxu0 %v7603_v36  ;;  %v7611_v10 = vld [vmem:[#allocation5 + $0x5a0] ss:$12 sps:$4 sm:$0xff]   ;;  %v7613_v36 = vld [vmem:[#allocation5 + $0x5bc] ss:$12 sps:$4 sm:$0xff]  }
 0x24b   :  { %v4983_v19 = vmax.f32 %v4131_v60, 0.0  ;;  %6878 = vmatprep.mubr.bf16.mxu1 %v7605_v30  ;;  %v7615_v30 = vld [vmem:[#allocation5 + $0x848] ss:$12 sps:$4 sm:$0xff]  }
 0x24c   :  { %v8292_v15 = vpack.c.bf16 %v4985_v37, %v4984_v27  ;;  %v3102_v3 = vpop.f32.mrb[128].mxu0 }
 0x24d   :  { %v8294_v46 = vpack.c.bf16 %v4983_v19, %v4982_v48  ;;  %v6772_v23 = vpop.f32.mrb[128].mxu1  ;;  %v3104_v45 = vpop.f32.mrb[129].mxu0 }
 0x24e   :  { %v4152_v11 = vadd.f32 %v6772_v23, %v3094_v52  ;;  %v4143_v25 = vpop.f32.mrb[129].mxu1  ;;  %v3105_v38 = vpop.f32.mrb[130].mxu0 }
 0x24f   :  { %v4144_v13 = vadd.f32 %v4143_v25, %v3086_v49  ;;  %v6773_v5 = vpop.f32.mrb[130].mxu1  ;;  %v3107_v50 = vpop.f32.mrb[131].mxu0 }
 0x250   :  { %v4155_v22 = vadd.f32 %v6773_v5, %v3097_v35  ;;  %v4146_v6 = vpop.f32.mrb[131].mxu1  ;;  %v4988_v58 = vmax.f32 %v4152_v11, 0.0 }
 0x251   :  { %v4147_v26 = vadd.f32 %v4146_v6, %v3089_v53  ;;  %3317 = vmatmul.mubr.bf16.gmra.mrb[236].mxu0 %v7606_v4  ;;  %v4986_v54 = vmax.f32 %v4144_v13, 0.0  ;;  %v7617_v13 = vld [vmem:[#allocation5 + $0x860] ss:$12 sps:$4 sm:$0xff]  }
 0x252   :  { %v4989_v12 = vmax.f32 %v4155_v22, 0.0  ;;  %6879 = vmatmul.mubr.bf16.gmra.mrb[236].mxu1 %v7607_v63  ;;  %3324 = vmatprep.mubr.bf16.mxu0 %v7608_v21  ;;  %v7616_v63 = vld [vmem:[#allocation5 + $0x5b8] ss:$12 sps:$4 sm:$0xff]  }
 0x253   :  { %v4987_v33 = vmax.f32 %v4147_v26, 0.0  ;;  %6882 = vmatprep.mubr.bf16.mxu1 %v7610_v57  ;;  %v7618_v57 = vld [vmem:[#allocation5 + $0x5d4] ss:$12 sps:$4 sm:$0xff]   ;;  %v7620_v22 = vld [vmem:[#allocation5 + $0x878] ss:$12 sps:$4 sm:$0xff]  }
 0x254   :  { %v8296_v52 = vpack.c.bf16 %v4989_v12, %v4988_v58  ;;  %v3110_v49 = vpop.f32.mrb[132].mxu0 }
 0x255   :  { %v8298_v1 = vpack.c.bf16 %v4987_v33, %v4986_v54  ;;  %v6776_v18 = vpop.f32.mrb[132].mxu1  ;;  %v3112_v29 = vpop.f32.mrb[133].mxu0 }
 0x256   :  { %v4168_v61 = vadd.f32 %v6776_v18, %v3110_v49  ;;  %v4159_v47 = vpop.f32.mrb[133].mxu1  ;;  %v3113_v35 = vpop.f32.mrb[134].mxu0  ;;  %v7621_v29 = vld [vmem:[#allocation5 + $0x5d0] ss:$12 sps:$4 sm:$0xff]  }
 0x257   :  { %v4160_v53 = vadd.f32 %v4159_v47, %v3102_v3  ;;  %v6777_v55 = vpop.f32.mrb[134].mxu1  ;;  %v3115_v2 = vpop.f32.mrb[135].mxu0  ;;  %v7622_v47 = vld [vmem:[#allocation5 + $0x890] ss:$12 sps:$4 sm:$0xff]  }
 0x258   :  { %v4171_v14 = vadd.f32 %v6777_v55, %v3113_v35  ;;  %v4162_v42 = vpop.f32.mrb[135].mxu1  ;;  %v4992_v27 = vmax.f32 %v4168_v61, 0.0  ;;  %v7623_v35 = vld [vmem:[#allocation5 + $0x5ec] ss:$12 sps:$4 sm:$0xff]   ;;  %v7625_v55 = vld [vmem:[#allocation5 + $0x8a8] ss:$12 sps:$4 sm:$0xff]  }
 0x259   :  { %v4163_v60 = vadd.f32 %v4162_v42, %v3105_v38  ;;  %3325 = vmatmul.mubr.bf16.gmra.mrb[240].mxu0 %v7611_v10  ;;  %v4990_v48 = vmax.f32 %v4160_v53, 0.0 }
 0x25a   :  { %v4993_v37 = vmax.f32 %v4171_v14, 0.0  ;;  %6883 = vmatmul.mubr.bf16.gmra.mrb[240].mxu1 %v7612_v31  ;;  %3332 = vmatprep.mubr.bf16.mxu0 %v7613_v36 }
 0x25b   :  { %v4991_v19 = vmax.f32 %v4163_v60, 0.0  ;;  %6886 = vmatprep.mubr.bf16.mxu1 %v7615_v30 }
 0x25c   :  { %v8300_v23 = vpack.c.bf16 %v4993_v37, %v4992_v27  ;;  %v3118_v3 = vpop.f32.mrb[136].mxu0 }
 0x25d   :  { %v8302_v11 = vpack.c.bf16 %v4991_v19, %v4990_v48  ;;  %v6780_v45 = vpop.f32.mrb[136].mxu1  ;;  %v3120_v25 = vpop.f32.mrb[137].mxu0 }
 0x25e   :  { %v4175_v4 = vpop.f32.mrb[137].mxu1  ;;  %v3121_v38 = vpop.f32.mrb[138].mxu0 }
 0x25f   :  { %v4176_v5 = vadd.f32 %v4175_v4, %v3118_v3  ;;  %v6781_v21 = vpop.f32.mrb[138].mxu1  ;;  %v3123_v50 = vpop.f32.mrb[139].mxu0  ;;  %v7626_v3 = vld [vmem:[#allocation5 + $0x5e8] ss:$12 sps:$4 sm:$0xff]  }
 0x260   :  { %v4178_v6 = vpop.f32.mrb[139].mxu1 }
 0x261   :  { %v4179_v26 = vadd.f32 %v4178_v6, %v3121_v38  ;;  %3333 = vmatmul.mubr.bf16.gmra.mrb[244].mxu0 %v7616_v63  ;;  %v4994_v58 = vmax.f32 %v4176_v5, 0.0  ;;  %v7630_v63 = vld [vmem:[#allocation5 + $0x604] ss:$12 sps:$4 sm:$0xff]  }
 0x262   :  { %6887 = vmatmul.mubr.bf16.gmra.mrb[244].mxu1 %v7617_v13  ;;  %3340 = vmatprep.mubr.bf16.mxu0 %v7618_v57  ;;  %v7631_v13 = vld [vmem:[#allocation5 + $0x8d8] ss:$12 sps:$4 sm:$0xff]  }
 0x263   :  { %v4995_v12 = vmax.f32 %v4179_v26, 0.0  ;;  %6890 = vmatprep.mubr.bf16.mxu1 %v7620_v22 }
 0x264   :  { %v3126_v33 = vpop.f32.mrb[140].mxu0 }
 0x265   :  { %v8304_v54 = vpack.c.bf16 %v4995_v12, %v4994_v58  ;;  %v6784_v49 = vpop.f32.mrb[140].mxu1  ;;  %v4184_v18 = vadd.f32 %v6780_v45, %v3126_v33  ;;  %v3128_v61 = vpop.f32.mrb[141].mxu0  ;;  %v7627_v45 = vld [vmem:[#allocation5 + $0x8c0] ss:$12 sps:$4 sm:$0xff]  }
 0x266   :  { %v4191_v10 = vpop.f32.mrb[141].mxu1  ;;  %v3129_v31 = vpop.f32.mrb[142].mxu0  ;;  %v7632_v61 = vld [vmem:[#allocation5 + $0x8f0] ss:$12 sps:$4 sm:$0xff]  }
 0x267   :  { %9059 = vst [vmem:[#allocation46_spill] sm:$0xff] %v8304_v54  ;;  %v6785_v53 = vpop.f32.mrb[142].mxu1  ;;  %v4187_v36 = vadd.f32 %v6781_v21, %v3129_v31  ;;  %v3131_v30 = vpop.f32.mrb[143].mxu0  ;;  %v4996_v2 = vmax.f32 %v4184_v18, 0.0  ;;  %v7628_v18 = vld [vmem:[#allocation5 + $0x600] ss:$12 sps:$4 sm:$0xff]  }
 0x268   :  { %v4194_v14 = vpop.f32.mrb[143].mxu1  ;;  %v7636_v31 = vld [vmem:[#allocation5 + $0x908] ss:$12 sps:$4 sm:$0xff]   ;;  %v7682_v54 = vld [vmem:[#allocation5 + $0xad0] ss:$12 sps:$4 sm:$0xff]  }
 0x269   :  { %v4997_v42 = vmax.f32 %v4187_v36, 0.0  ;;  %3341 = vmatmul.mubr.bf16.gmra.mrb[248].mxu0 %v7621_v29 }
 0x26a   :  { %6891 = vmatmul.mubr.bf16.gmra.mrb[248].mxu1 %v7622_v47  ;;  %3348 = vmatprep.mubr.bf16.mxu0 %v7623_v35 }
 0x26b   :  { %6894 = vmatprep.mubr.bf16.mxu1 %v7625_v55  ;;  %v8306_v60 = vpack.c.bf16 %v4997_v42, %v4996_v2 }
 0x26c   :  { %v3134_v27 = vpop.f32.mrb[144].mxu0 }
 0x26d   :  { %9060 = vst [vmem:[#allocation47_spill] sm:$0xff] %v8306_v60  ;;  %v8308_v37 = vpop.f32.mrb[144].mxu1  ;;  %v4192_v48 = vadd.f32 %v4191_v10, %v3134_v27  ;;  %v3136_v19 = vpop.f32.mrb[145].mxu0  ;;  %v7635_v10 = vld [vmem:[#allocation5 + $0x61c] ss:$12 sps:$4 sm:$0xff]  }
 0x26e   :  { %v4207_v25 = vpop.f32.mrb[145].mxu1  ;;  %v3137_v4 = vpop.f32.mrb[146].mxu0  ;;  %v7677_v60 = vld [vmem:[#allocation5 + $0xaa0] ss:$12 sps:$4 sm:$0xff]  }
 0x26f   :  { %v8310_v5 = vpop.f32.mrb[146].mxu1  ;;  %v4195_v38 = vadd.f32 %v4194_v14, %v3137_v4  ;;  %v3139_v21 = vpop.f32.mrb[147].mxu0  ;;  %v4998_v22 = vmax.f32 %v4192_v48, 0.0 }
 0x270   :  { %v4210_v57 = vpop.f32.mrb[147].mxu1 }
 0x271   :  { %v4999_v50 = vmax.f32 %v4195_v38, 0.0  ;;  %3349 = vmatmul.mubr.bf16.gmra.mrb[252].mxu0 %v7626_v3  ;;  %v7633_v3 = vld [vmem:[#allocation5 + $0x618] ss:$12 sps:$4 sm:$0xff]  }
 0x272   :  { %6895 = vmatmul.mubr.bf16.gmra.mrb[252].mxu1 %v7627_v45  ;;  %3356 = vmatprep.mubr.bf16.mxu0 %v7630_v63  ;;  %v7637_v45 = vld [vmem:[#allocation5 + $0x920] ss:$12 sps:$4 sm:$0xff]  }
 0x273   :  { %6898 = vmatprep.mubr.bf16.mxu1 %v7631_v13  ;;  %v8312_v6 = vpack.c.bf16 %v4999_v50, %v4998_v22  ;;  %v7640_v63 = vld [vmem:[#allocation5 + $0x634] ss:$12 sps:$4 sm:$0xff]   ;;  %v7641_v13 = vld [vmem:[#allocation5 + $0x938] ss:$12 sps:$4 sm:$0xff]  }
 0x274   :  { %v3142_v26 = vpop.f32.mrb[148].mxu0 }
 0x275   :  { %9061 = vst [vmem:[#allocation48_spill] sm:$0xff] %v8312_v6  ;;  %v8314_v58 = vpop.f32.mrb[148].mxu1  ;;  %v4200_v12 = vadd.f32 %v6784_v49, %v3142_v26  ;;  %v3144_v33 = vpop.f32.mrb[149].mxu0 }
 0x276   :  { %v4223_v29 = vpop.f32.mrb[149].mxu1  ;;  %v3145_v47 = vpop.f32.mrb[150].mxu0 }
 0x277   :  { %v8316_v35 = vpop.f32.mrb[150].mxu1  ;;  %v4203_v55 = vadd.f32 %v6785_v53, %v3145_v47  ;;  %v3147_v36 = vpop.f32.mrb[151].mxu0  ;;  %v5000_v14 = vmax.f32 %v4200_v12, 0.0 }
 0x278   :  { %v4226_v30 = vpop.f32.mrb[151].mxu1  ;;  %v7645_v36 = vld [vmem:[#allocation5 + $0x64c] ss:$12 sps:$4 sm:$0xff]  }
 0x279   :  { %v5001_v2 = vmax.f32 %v4203_v55, 0.0  ;;  %3357 = vmatmul.mubr.bf16.gmra.mrb[0].mxu0 %v7628_v18 }
 0x27a   :  { %6899 = vmatmul.mubr.bf16.gmra.mrb[0].mxu1 %v7632_v61  ;;  %3364 = vmatprep.mubr.bf16.mxu0 %v7635_v10  ;;  %v7638_v10 = vld [vmem:[#allocation5 + $0x630] ss:$12 sps:$4 sm:$0xff]  }
 0x27b   :  { %6902 = vmatprep.mubr.bf16.mxu1 %v7636_v31  ;;  %v8318_v42 = vpack.c.bf16 %v5001_v2, %v5000_v14  ;;  %v7642_v31 = vld [vmem:[#allocation5 + $0x950] ss:$12 sps:$4 sm:$0xff]   ;;  %v7646_v14 = vld [vmem:[#allocation5 + $0x968] ss:$12 sps:$4 sm:$0xff]  }
 0x27c   :  { %v3150_v49 = vpop.f32.mrb[152].mxu0 }
 0x27d   :  { %9062 = vst [vmem:[#allocation49_spill] sm:$0xff] %v8318_v42  ;;  %v8320_v27 = vpop.f32.mrb[152].mxu1  ;;  %v4208_v48 = vadd.f32 %v4207_v25, %v3150_v49  ;;  %v3152_v19 = vpop.f32.mrb[153].mxu0  ;;  %v7672_v42 = vld [vmem:[#allocation5 + $0xa70] ss:$12 sps:$4 sm:$0xff]  }
 0x27e   :  { %v8322_v4 = vpop.f32.mrb[153].mxu1  ;;  %v3153_v53 = vpop.f32.mrb[154].mxu0 }
 0x27f   :  { %v8324_v38 = vpop.f32.mrb[154].mxu1  ;;  %v4211_v21 = vadd.f32 %v4210_v57, %v3153_v53  ;;  %v3155_v22 = vpop.f32.mrb[155].mxu0  ;;  %v5002_v26 = vmax.f32 %v4208_v48, 0.0 }
 0x280   :  { %v8326_v50 = vpop.f32.mrb[155].mxu1  ;;  %v7643_v22 = vld [vmem:[#allocation5 + $0x648] ss:$12 sps:$4 sm:$0xff]  }
 0x281   :  { %v5003_v12 = vmax.f32 %v4211_v21, 0.0  ;;  %3365 = vmatmul.mubr.bf16.gmra.mrb[4].mxu0 %v7633_v3 }
 0x282   :  { %6903 = vmatmul.mubr.bf16.gmra.mrb[4].mxu1 %v7637_v45  ;;  %3372 = vmatprep.mubr.bf16.mxu0 %v7640_v63 }
 0x283   :  { %6906 = vmatprep.mubr.bf16.mxu1 %v7641_v13  ;;  %v8328_v25 = vpack.c.bf16 %v5003_v12, %v5002_v26  ;;  %v7647_v26 = vld [vmem:[#allocation5 + $0x980] ss:$12 sps:$4 sm:$0xff]  }
 0x284   :  { %v3158_v33 = vpop.f32.mrb[156].mxu0 }
 0x285   :  { %9063 = vst [vmem:[#allocation50_spill] sm:$0xff] %v8328_v25  ;;  %v8330_v18 = vpop.f32.mrb[156].mxu1  ;;  %v4216_v61 = vadd.f32 %v8308_v37, %v3158_v33  ;;  %v3160_v47 = vpop.f32.mrb[157].mxu0  ;;  %v7650_v33 = vld [vmem:[#allocation5 + $0x664] ss:$12 sps:$4 sm:$0xff]  }
 0x286   :  { %v8333_v57 = vpop.f32.mrb[157].mxu1  ;;  %v3161_v55 = vpop.f32.mrb[158].mxu0  ;;  %v7651_v47 = vld [vmem:[#allocation5 + $0x998] ss:$12 sps:$4 sm:$0xff]   ;;  %v7668_v25 = vld [vmem:[#allocation5 + $0x6c0] ss:$12 sps:$4 sm:$0xff]  }
 0x287   :  { %v8335_v2 = vpop.f32.mrb[158].mxu1  ;;  %v4219_v49 = vadd.f32 %v8310_v5, %v3161_v55  ;;  %v3163_v48 = vpop.f32.mrb[159].mxu0  ;;  %v5004_v3 = vmax.f32 %v4216_v61, 0.0 }
 0x288   :  { %v8338_v19 = vpop.f32.mrb[159].mxu1 }
 0x289   :  { %v5005_v45 = vmax.f32 %v4219_v49, 0.0  ;;  %3373 = vmatmul.mubr.bf16.gmra.mrb[8].mxu0 %v7638_v10 }
 0x28a   :  { %6907 = vmatmul.mubr.bf16.gmra.mrb[8].mxu1 %v7642_v31  ;;  %3380 = vmatprep.mubr.bf16.mxu0 %v7645_v36 }
 0x28b   :  { %6910 = vmatprep.mubr.bf16.mxu1 %v7646_v14  ;;  %v8340_v37 = vpack.c.bf16 %v5005_v45, %v5004_v3 }
 0x28c   :  { %v3166_v53 = vpop.f32.mrb[160].mxu0 }
 0x28d   :  { %9064 = vst [vmem:[#allocation51_spill] sm:$0xff] %v8340_v37  ;;  %v8342_v63 = vpop.f32.mrb[160].mxu1  ;;  %v4224_v13 = vadd.f32 %v4223_v29, %v3166_v53  ;;  %v3168_v21 = vpop.f32.mrb[161].mxu0  ;;  %v7648_v53 = vld [vmem:[#allocation5 + $0x660] ss:$12 sps:$4 sm:$0xff]  }
 0x28e   :  { %v8344_v12 = vpop.f32.mrb[161].mxu1  ;;  %v3169_v5 = vpop.f32.mrb[162].mxu0  ;;  %v7652_v21 = vld [vmem:[#allocation5 + $0x9b0] ss:$12 sps:$4 sm:$0xff]  }
 0x28f   :  { %v8346_v61 = vpop.f32.mrb[162].mxu1  ;;  %v4227_v10 = vadd.f32 %v4226_v30, %v3169_v5  ;;  %v3171_v31 = vpop.f32.mrb[163].mxu0  ;;  %v5006_v36 = vmax.f32 %v4224_v13, 0.0  ;;  %v7656_v13 = vld [vmem:[#allocation5 + $0x9c8] ss:$12 sps:$4 sm:$0xff]  }
 0x290   :  { %v8348_v55 = vpop.f32.mrb[163].mxu1  ;;  %v7655_v31 = vld [vmem:[#allocation5 + $0x67c] ss:$12 sps:$4 sm:$0xff]  }
 0x291   :  { %v5007_v14 = vmax.f32 %v4227_v10, 0.0  ;;  %3381 = vmatmul.mubr.bf16.gmra.mrb[12].mxu0 %v7643_v22 }
 0x292   :  { %6911 = vmatmul.mubr.bf16.gmra.mrb[12].mxu1 %v7647_v26  ;;  %3388 = vmatprep.mubr.bf16.mxu0 %v7650_v33 }
 0x293   :  { %6914 = vmatprep.mubr.bf16.mxu1 %v7651_v47  ;;  %v8350_v29 = vpack.c.bf16 %v5007_v14, %v5006_v36 }
 0x294   :  { %v3174_v49 = vpop.f32.mrb[164].mxu0 }
 0x295   :  { %v8352_v48 = vpop.f32.mrb[164].mxu1  ;;  %v4232_v3 = vadd.f32 %v8314_v58, %v3174_v49  ;;  %v3176_v45 = vpop.f32.mrb[165].mxu0 }
 0x296   :  { %v8355_v30 = vpop.f32.mrb[165].mxu1  ;;  %v3177_v5 = vpop.f32.mrb[166].mxu0 }
 0x297   :  { %v8357_v10 = vpop.f32.mrb[166].mxu1  ;;  %v4235_v22 = vadd.f32 %v8316_v35, %v3177_v5  ;;  %v3179_v26 = vpop.f32.mrb[167].mxu0  ;;  %v5008_v47 = vmax.f32 %v4232_v3, 0.0  ;;  %v7661_v3 = vld [vmem:[#allocation5 + $0x9f8] ss:$12 sps:$4 sm:$0xff]  }
 0x298   :  { %v8360_v33 = vpop.f32.mrb[167].mxu1  ;;  %v7660_v26 = vld [vmem:[#allocation5 + $0x694] ss:$12 sps:$4 sm:$0xff]  }
 0x299   :  { %v5009_v36 = vmax.f32 %v4235_v22, 0.0  ;;  %3389 = vmatmul.mubr.bf16.gmra.mrb[16].mxu0 %v7648_v53 }
 0x29a   :  { %6915 = vmatmul.mubr.bf16.gmra.mrb[16].mxu1 %v7652_v21  ;;  %3396 = vmatprep.mubr.bf16.mxu0 %v7655_v31 }
 0x29b   :  { %6918 = vmatprep.mubr.bf16.mxu1 %v7656_v13  ;;  %v8362_v58 = vpack.c.bf16 %v5009_v36, %v5008_v47 }
 0x29c   :  { %v3182_v14 = vpop.f32.mrb[168].mxu0 }
 0x29d   :  { %v8364_v49 = vpop.f32.mrb[168].mxu1  ;;  %v4240_v45 = vadd.f32 %v8322_v4, %v3182_v14  ;;  %v3184_v0 = vpop.f32.mrb[169].mxu0 }
 0x29e   :  { %v8367_v35 = vpop.f32.mrb[169].mxu1  ;;  %v3185_v5 = vpop.f32.mrb[170].mxu0 }
 0x29f   :  { %v8369_v22 = vpop.f32.mrb[170].mxu1  ;;  %v4243_v53 = vadd.f32 %v8326_v50, %v3185_v5  ;;  %v3187_v21 = vpop.f32.mrb[171].mxu0  ;;  %v5010_v13 = vmax.f32 %v4240_v45, 0.0  ;;  %v7666_v45 = vld [vmem:[#allocation5 + $0xa28] ss:$12 sps:$4 sm:$0xff]  }
 0x2a0   :  { %v8372_v31 = vpop.f32.mrb[171].mxu1  ;;  %v7665_v21 = vld [vmem:[#allocation5 + $0x6ac] ss:$12 sps:$4 sm:$0xff]  }
 0x2a1   :  { %v5011_v47 = vmax.f32 %v4243_v53, 0.0  ;;  %3397 = vmatmul.mubr.bf16.gmra.mrb[20].mxu0 %v7653_v44 }
 0x2a2   :  { %6919 = vmatmul.mubr.bf16.gmra.mrb[20].mxu1 %v7657_v56  ;;  %3404 = vmatprep.mubr.bf16.mxu0 %v7660_v26 }
 0x2a3   :  { %6922 = vmatprep.mubr.bf16.mxu1 %v7661_v3  ;;  %v8374_v0 = vpack.c.bf16 %v5011_v47, %v5010_v13 }
 0x2a4   :  { %v3190_v4 = vpop.f32.mrb[172].mxu0 }
 0x2a5   :  { %v8376_v36 = vpop.f32.mrb[172].mxu1  ;;  %v4248_v14 = vadd.f32 %v8320_v27, %v3190_v4  ;;  %v3192_v28 = vpop.f32.mrb[173].mxu0 }
 0x2a6   :  { %v8379_v50 = vpop.f32.mrb[173].mxu1  ;;  %v3193_v5 = vpop.f32.mrb[174].mxu0 }
 0x2a7   :  { %v8381_v53 = vpop.f32.mrb[174].mxu1  ;;  %v4251_v44 = vadd.f32 %v8324_v38, %v3193_v5  ;;  %v3195_v56 = vpop.f32.mrb[175].mxu0  ;;  %v5012_v3 = vmax.f32 %v4248_v14, 0.0  ;;  %v7671_v14 = vld [vmem:[#allocation5 + $0xa58] ss:$12 sps:$4 sm:$0xff]  }
 0x2a8   :  { %v8384_v26 = vpop.f32.mrb[175].mxu1  ;;  %v7670_v56 = vld [vmem:[#allocation5 + $0x6c4] ss:$12 sps:$4 sm:$0xff]  }
 0x2a9   :  { %v5013_v13 = vmax.f32 %v4251_v44, 0.0  ;;  %3405 = vmatmul.mubr.bf16.gmra.mrb[24].mxu0 %v7658_v40 }
 0x2aa   :  { %6923 = vmatmul.mubr.bf16.gmra.mrb[24].mxu1 %v7662_v20  ;;  %3412 = vmatprep.mubr.bf16.mxu0 %v7665_v21 }
 0x2ab   :  { %6926 = vmatprep.mubr.bf16.mxu1 %v7666_v45  ;;  %v8386_v28 = vpack.c.bf16 %v5013_v13, %v5012_v3 }
 0x2ac   :  { %v3198_v27 = vpop.f32.mrb[176].mxu0 }
 0x2ad   :  { %9065 = vst [vmem:[#allocation52_spill] sm:$0xff] %v8386_v28  ;;  %v8388_v47 = vpop.f32.mrb[176].mxu1  ;;  %v4256_v4 = vadd.f32 %v8333_v57, %v3198_v27  ;;  %v3200_v32 = vpop.f32.mrb[177].mxu0  ;;  %v7678_v28 = vld [vmem:[#allocation5 + $0x6f0] ss:$12 sps:$4 sm:$0xff]  }
 0x2ae   :  { %v8391_v38 = vpop.f32.mrb[177].mxu1  ;;  %v3201_v5 = vpop.f32.mrb[178].mxu0 }
 0x2af   :  { %v8393_v44 = vpop.f32.mrb[178].mxu1  ;;  %v4259_v20 = vadd.f32 %v8338_v19, %v3201_v5  ;;  %v3203_v40 = vpop.f32.mrb[179].mxu0  ;;  %v5014_v45 = vmax.f32 %v4256_v4, 0.0  ;;  %v7676_v4 = vld [vmem:[#allocation5 + $0xa88] ss:$12 sps:$4 sm:$0xff]  }
 0x2b0   :  { %v8396_v21 = vpop.f32.mrb[179].mxu1  ;;  %v7675_v40 = vld [vmem:[#allocation5 + $0x6dc] ss:$12 sps:$4 sm:$0xff]  }
 0x2b1   :  { %v5015_v3 = vmax.f32 %v4259_v20, 0.0  ;;  %3413 = vmatmul.mubr.bf16.gmra.mrb[28].mxu0 %v7663_v16 }
 0x2b2   :  { %6927 = vmatmul.mubr.bf16.gmra.mrb[28].mxu1 %v7667_v8  ;;  %3420 = vmatprep.mubr.bf16.mxu0 %v7670_v56 }
 0x2b3   :  { %6930 = vmatprep.mubr.bf16.mxu1 %v7671_v14  ;;  %v8398_v32 = vpack.c.bf16 %v5015_v3, %v5014_v45 }
 0x2b4   :  { %v3206_v57 = vpop.f32.mrb[180].mxu0 }
 0x2b5   :  { %9066 = vst [vmem:[#allocation53_spill] sm:$0xff] %v8398_v32  ;;  %v8400_v13 = vpop.f32.mrb[180].mxu1  ;;  %v4264_v27 = vadd.f32 %v8330_v18, %v3206_v57  ;;  %v3208_v37 = vpop.f32.mrb[181].mxu0  ;;  %v7673_v32 = vld [vmem:[#allocation5 + $0x6d8] ss:$12 sps:$4 sm:$0xff]  }
 0x2b6   :  { %v8403_v19 = vpop.f32.mrb[181].mxu1  ;;  %v3209_v5 = vpop.f32.mrb[182].mxu0 }
 0x2b7   :  { %v8405_v20 = vpop.f32.mrb[182].mxu1  ;;  %v4267_v8 = vadd.f32 %v8335_v2, %v3209_v5  ;;  %v3211_v16 = vpop.f32.mrb[183].mxu0  ;;  %v5016_v14 = vmax.f32 %v4264_v27, 0.0  ;;  %v7681_v27 = vld [vmem:[#allocation5 + $0xab8] ss:$12 sps:$4 sm:$0xff]  }
 0x2b8   :  { %v8408_v56 = vpop.f32.mrb[183].mxu1  ;;  %v7680_v16 = vld [vmem:[#allocation5 + $0x6f4] ss:$12 sps:$4 sm:$0xff]  }
 0x2b9   :  { %v5017_v45 = vmax.f32 %v4267_v8, 0.0  ;;  %3421 = vmatmul.mubr.bf16.gmra.mrb[32].mxu0 %v7668_v25 }
 0x2ba   :  { %6931 = vmatmul.mubr.bf16.gmra.mrb[32].mxu1 %v7672_v42  ;;  %3428 = vmatprep.mubr.bf16.mxu0 %v7675_v40 }
 0x2bb   :  { %6934 = vmatprep.mubr.bf16.mxu1 %v7676_v4  ;;  %v8410_v18 = vpack.c.bf16 %v5017_v45, %v5016_v14 }
 0x2bc   :  { %v3214_v37 = vpop.f32.mrb[184].mxu0 }
 0x2bd   :  { %9067 = vst [vmem:[#allocation54_spill] sm:$0xff] %v8410_v18  ;;  %v8412_v3 = vpop.f32.mrb[184].mxu1  ;;  %v4272_v57 = vadd.f32 %v8344_v12, %v3214_v37  ;;  %v3216_v6 = vpop.f32.mrb[185].mxu0 }
 0x2be   :  { %v8415_v2 = vpop.f32.mrb[185].mxu1  ;;  %v3217_v5 = vpop.f32.mrb[186].mxu0 }
 0x2bf   :  { %v8417_v8 = vpop.f32.mrb[186].mxu1  ;;  %v4275_v42 = vadd.f32 %v8348_v55, %v3217_v5  ;;  %v3219_v25 = vpop.f32.mrb[187].mxu0  ;;  %v5018_v4 = vmax.f32 %v4272_v57, 0.0  ;;  %v7686_v57 = vld [vmem:[#allocation5 + $0xae8] ss:$12 sps:$4 sm:$0xff]  }
 0x2c0   :  { %v8420_v40 = vpop.f32.mrb[187].mxu1  ;;  %v7685_v25 = vld [vmem:[#allocation5 + $0x70c] ss:$12 sps:$4 sm:$0xff]  }
 0x2c1   :  { %v5019_v14 = vmax.f32 %v4275_v42, 0.0  ;;  %3429 = vmatmul.mubr.bf16.gmra.mrb[36].mxu0 %v7673_v32 }
 0x2c2   :  { %6935 = vmatmul.mubr.bf16.gmra.mrb[36].mxu1 %v7677_v60  ;;  %3436 = vmatprep.mubr.bf16.mxu0 %v7680_v16 }
 0x2c3   :  { %6938 = vmatprep.mubr.bf16.mxu1 %v7681_v27  ;;  %v8422_v6 = vpack.c.bf16 %v5019_v14, %v5018_v4 }
 0x2c4   :  { %v3222_v12 = vpop.f32.mrb[188].mxu0 }
 0x2c5   :  { %9068 = vst [vmem:[#allocation55_spill] sm:$0xff] %v8422_v6  ;;  %v8424_v45 = vpop.f32.mrb[188].mxu1  ;;  %v4280_v37 = vadd.f32 %v8342_v63, %v3222_v12  ;;  %v3224_v18 = vpop.f32.mrb[189].mxu0 }
 0x2c6   :  { %9069 = vst [vmem:[#allocation56_spill] sm:$0xff] %v8424_v45  ;;  %v8427_v55 = vpop.f32.mrb[189].mxu1  ;;  %v3225_v5 = vpop.f32.mrb[190].mxu0  ;;  %v7687_v45 = vld [vmem:[#allocation5 + $0xb00] ss:$12 sps:$4 sm:$0xff]  }
 0x2c7   :  { %v8429_v42 = vpop.f32.mrb[190].mxu1  ;;  %v4283_v60 = vadd.f32 %v8346_v61, %v3225_v5  ;;  %v3227_v32 = vpop.f32.mrb[191].mxu0  ;;  %v5020_v27 = vmax.f32 %v4280_v37, 0.0  ;;  %v7691_v37 = vld [vmem:[#allocation5 + $0xb18] ss:$12 sps:$4 sm:$0xff]  }
 0x2c8   :  { %9070 = vst [vmem:[#allocation57_spill] sm:$0xff] %v8429_v42  ;;  %v8432_v16 = vpop.f32.mrb[191].mxu1  ;;  %v7683_v42 = vld [vmem:[#allocation5 + $0x708] ss:$12 sps:$4 sm:$0xff]   ;;  %v7690_v32 = vld [vmem:[#allocation5 + $0x724] ss:$12 sps:$4 sm:$0xff]  }
 0x2c9   :  { %v5021_v4 = vmax.f32 %v4283_v60, 0.0  ;;  %3437 = vmatmul.mubr.bf16.gmra.mrb[40].mxu0 %v7678_v28 }
 0x2ca   :  { %6939 = vmatmul.mubr.bf16.gmra.mrb[40].mxu1 %v7682_v54  ;;  %3444 = vmatprep.mubr.bf16.mxu0 %v7685_v25 }
 0x2cb   :  { %6942 = vmatprep.mubr.bf16.mxu1 %v7686_v57  ;;  %v8434_v63 = vpack.c.bf16 %v5021_v4, %v5020_v27 }
 0x2cc   :  { %v3230_v18 = vpop.f32.mrb[192].mxu0 }
 0x2cd   :  { %v8436_v14 = vpop.f32.mrb[192].mxu1  ;;  %v4288_v12 = vadd.f32 %v8355_v30, %v3230_v18  ;;  %v3232_v6 = vpop.f32.mrb[193].mxu0 }
 0x2ce   :  { %9071 = vst [vmem:[#allocation58_spill] sm:$0xff] %v8436_v14  ;;  %v8439_v61 = vpop.f32.mrb[193].mxu1  ;;  %v3233_v5 = vpop.f32.mrb[194].mxu0 }
 0x2cf   :  { %9072 = vst [vmem:[#allocation59_spill] sm:$0xff] %v8439_v61  ;;  %v8441_v60 = vpop.f32.mrb[194].mxu1  ;;  %v4291_v54 = vadd.f32 %v8360_v33, %v3233_v5  ;;  %v3235_v28 = vpop.f32.mrb[195].mxu0  ;;  %v5022_v57 = vmax.f32 %v4288_v12, 0.0  ;;  %v7692_v61 = vld [vmem:[#allocation5 + $0xb30] ss:$12 sps:$4 sm:$0xff]  }
 0x2d0   :  { %9073 = vst [vmem:[#allocation60_spill] sm:$0xff] %v8441_v60  ;;  %v8444_v25 = vpop.f32.mrb[195].mxu1  ;;  %v7688_v60 = vld [vmem:[#allocation5 + $0x720] ss:$12 sps:$4 sm:$0xff]   ;;  %v7695_v28 = vld [vmem:[#allocation5 + $0x73c] ss:$12 sps:$4 sm:$0xff]  }
 0x2d1   :  { %v5023_v27 = vmax.f32 %v4291_v54, 0.0  ;;  %3445 = vmatmul.mubr.bf16.gmra.mrb[44].mxu0 %v7683_v42  ;;  %v7696_v12 = vld [vmem:[#allocation5 + $0xb48] ss:$12 sps:$4 sm:$0xff]  }
 0x2d2   :  { %6943 = vmatmul.mubr.bf16.gmra.mrb[44].mxu1 %v7687_v45  ;;  %3452 = vmatprep.mubr.bf16.mxu0 %v7690_v32 }
 0x2d3   :  { %6946 = vmatprep.mubr.bf16.mxu1 %v7691_v37  ;;  %v8446_v30 = vpack.c.bf16 %v5023_v27, %v5022_v57 }
 0x2d4   :  { %v3238_v6 = vpop.f32.mrb[196].mxu0 }
 0x2d5   :  { %v8448_v4 = vpop.f32.mrb[196].mxu1  ;;  %v4296_v18 = vadd.f32 %v8352_v48, %v3238_v6  ;;  %v3240_v14 = vpop.f32.mrb[197].mxu0 }
 0x2d6   :  { %9074 = vst [vmem:[#allocation61_spill] sm:$0xff] %v8448_v4  ;;  %v8451_v33 = vpop.f32.mrb[197].mxu1  ;;  %v3241_v5 = vpop.f32.mrb[198].mxu0 }
 0x2d7   :  { %9075 = vst [vmem:[#allocation62_spill] sm:$0xff] %v8451_v33  ;;  %v8453_v54 = vpop.f32.mrb[198].mxu1  ;;  %v4299_v45 = vadd.f32 %v8357_v10, %v3241_v5  ;;  %v3243_v42 = vpop.f32.mrb[199].mxu0  ;;  %v5024_v37 = vmax.f32 %v4296_v18, 0.0  ;;  %v7697_v33 = vld [vmem:[#allocation5 + $0xb60] ss:$12 sps:$4 sm:$0xff]  }
 0x2d8   :  { %9076 = vst [vmem:[#allocation63_spill] sm:$0xff] %v8453_v54  ;;  %v8456_v32 = vpop.f32.mrb[199].mxu1  ;;  %v7693_v54 = vld [vmem:[#allocation5 + $0x738] ss:$12 sps:$4 sm:$0xff]   ;;  %v7700_v42 = vld [vmem:[#allocation5 + $0x754] ss:$12 sps:$4 sm:$0xff]  }
 0x2d9   :  { %v5025_v57 = vmax.f32 %v4299_v45, 0.0  ;;  %3453 = vmatmul.mubr.bf16.gmra.mrb[48].mxu0 %v7688_v60  ;;  %v7701_v18 = vld [vmem:[#allocation5 + $0xb78] ss:$12 sps:$4 sm:$0xff]  }
 0x2da   :  { %6947 = vmatmul.mubr.bf16.gmra.mrb[48].mxu1 %v7692_v61  ;;  %3460 = vmatprep.mubr.bf16.mxu0 %v7695_v28 }
 0x2db   :  { %6950 = vmatprep.mubr.bf16.mxu1 %v7696_v12  ;;  %v8458_v48 = vpack.c.bf16 %v5025_v57, %v5024_v37 }
 0x2dc   :  { %v3246_v14 = vpop.f32.mrb[200].mxu0 }
 0x2dd   :  { %v8460_v27 = vpop.f32.mrb[200].mxu1  ;;  %v4304_v6 = vadd.f32 %v8367_v35, %v3246_v14  ;;  %v3248_v4 = vpop.f32.mrb[201].mxu0 }
 0x2de   :  { %9077 = vst [vmem:[#allocation64_spill] sm:$0xff] %v8460_v27  ;;  %v8463_v10 = vpop.f32.mrb[201].mxu1  ;;  %v3249_v5 = vpop.f32.mrb[202].mxu0 }
 0x2df   :  { %9078 = vst [vmem:[#allocation65_spill] sm:$0xff] %v8463_v10  ;;  %v8465_v45 = vpop.f32.mrb[202].mxu1  ;;  %v4307_v61 = vadd.f32 %v8372_v31, %v3249_v5  ;;  %v3251_v60 = vpop.f32.mrb[203].mxu0  ;;  %v5026_v12 = vmax.f32 %v4304_v6, 0.0  ;;  %v7702_v10 = vld [vmem:[#allocation5 + $0xb90] ss:$12 sps:$4 sm:$0xff]  }
 0x2e0   :  { %9079 = vst [vmem:[#allocation66_spill] sm:$0xff] %v8465_v45  ;;  %v8468_v28 = vpop.f32.mrb[203].mxu1  ;;  %v7698_v45 = vld [vmem:[#allocation5 + $0x750] ss:$12 sps:$4 sm:$0xff]   ;;  %v7705_v60 = vld [vmem:[#allocation5 + $0x76c] ss:$12 sps:$4 sm:$0xff]  }
 0x2e1   :  { %v5027_v37 = vmax.f32 %v4307_v61, 0.0  ;;  %3461 = vmatmul.mubr.bf16.gmra.mrb[52].mxu0 %v7693_v54  ;;  %v7706_v6 = vld [vmem:[#allocation5 + $0xba8] ss:$12 sps:$4 sm:$0xff]  }
 0x2e2   :  { %6951 = vmatmul.mubr.bf16.gmra.mrb[52].mxu1 %v7697_v33  ;;  %3468 = vmatprep.mubr.bf16.mxu0 %v7700_v42 }
 0x2e3   :  { %6954 = vmatprep.mubr.bf16.mxu1 %v7701_v18  ;;  %v8470_v35 = vpack.c.bf16 %v5027_v37, %v5026_v12 }
 0x2e4   :  { %v3254_v4 = vpop.f32.mrb[204].mxu0 }
 0x2e5   :  { %v8472_v57 = vpop.f32.mrb[204].mxu1  ;;  %v4312_v14 = vadd.f32 %v8364_v49, %v3254_v4  ;;  %v3256_v27 = vpop.f32.mrb[205].mxu0 }
 0x2e6   :  { %9080 = vst [vmem:[#allocation67_spill] sm:$0xff] %v8472_v57  ;;  %v8475_v31 = vpop.f32.mrb[205].mxu1  ;;  %v3257_v5 = vpop.f32.mrb[206].mxu0 }
 0x2e7   :  { %9081 = vst [vmem:[#allocation68_spill] sm:$0xff] %v8475_v31  ;;  %v8477_v61 = vpop.f32.mrb[206].mxu1  ;;  %v4315_v33 = vadd.f32 %v8369_v22, %v3257_v5  ;;  %v3259_v54 = vpop.f32.mrb[207].mxu0  ;;  %v5028_v18 = vmax.f32 %v4312_v14, 0.0  ;;  %v7707_v31 = vld [vmem:[#allocation5 + $0xbc0] ss:$12 sps:$4 sm:$0xff]  }
 0x2e8   :  { %9082 = vst [vmem:[#allocation69_spill] sm:$0xff] %v8477_v61  ;;  %v8480_v42 = vpop.f32.mrb[207].mxu1  ;;  %v7703_v61 = vld [vmem:[#allocation5 + $0x768] ss:$12 sps:$4 sm:$0xff]   ;;  %v7710_v54 = vld [vmem:[#allocation5 + $0x784] ss:$12 sps:$4 sm:$0xff]  }
 0x2e9   :  { %v5029_v12 = vmax.f32 %v4315_v33, 0.0  ;;  %3469 = vmatmul.mubr.bf16.gmra.mrb[56].mxu0 %v7698_v45  ;;  %v7711_v14 = vld [vmem:[#allocation5 + $0xbd8] ss:$12 sps:$4 sm:$0xff]  }
 0x2ea   :  { %6955 = vmatmul.mubr.bf16.gmra.mrb[56].mxu1 %v7702_v10  ;;  %3476 = vmatprep.mubr.bf16.mxu0 %v7705_v60 }
 0x2eb   :  { %6958 = vmatprep.mubr.bf16.mxu1 %v7706_v6  ;;  %v8482_v49 = vpack.c.bf16 %v5029_v12, %v5028_v18 }
 0x2ec   :  { %v3262_v27 = vpop.f32.mrb[208].mxu0 }
 0x2ed   :  { %v8484_v37 = vpop.f32.mrb[208].mxu1  ;;  %v4320_v4 = vadd.f32 %v8379_v50, %v3262_v27  ;;  %v3264_v57 = vpop.f32.mrb[209].mxu0 }
 0x2ee   :  { %9083 = vst [vmem:[#allocation70_spill] sm:$0xff] %v8484_v37  ;;  %v8487_v22 = vpop.f32.mrb[209].mxu1  ;;  %v3265_v5 = vpop.f32.mrb[210].mxu0 }
 0x2ef   :  { %9084 = vst [vmem:[#allocation71_spill] sm:$0xff] %v8487_v22  ;;  %v8489_v33 = vpop.f32.mrb[210].mxu1  ;;  %v4323_v10 = vadd.f32 %v8384_v26, %v3265_v5  ;;  %v3267_v45 = vpop.f32.mrb[211].mxu0  ;;  %v5030_v6 = vmax.f32 %v4320_v4, 0.0  ;;  %v7712_v22 = vld [vmem:[#allocation5 + $0xbf0] ss:$12 sps:$4 sm:$0xff]  }
 0x2f0   :  { %9085 = vst [vmem:[#allocation72_spill] sm:$0xff] %v8489_v33  ;;  %v8492_v60 = vpop.f32.mrb[211].mxu1  ;;  %v7708_v33 = vld [vmem:[#allocation5 + $0x780] ss:$12 sps:$4 sm:$0xff]   ;;  %v7715_v45 = vld [vmem:[#allocation5 + $0x79c] ss:$12 sps:$4 sm:$0xff]  }
 0x2f1   :  { %v5031_v18 = vmax.f32 %v4323_v10, 0.0  ;;  %3477 = vmatmul.mubr.bf16.gmra.mrb[60].mxu0 %v7703_v61 }
 0x2f2   :  { %6959 = vmatmul.mubr.bf16.gmra.mrb[60].mxu1 %v7707_v31  ;;  %3484 = vmatprep.mubr.bf16.mxu0 %v7710_v54  ;;  %v5183_v54 = vld [vmem:[#allocation7 + $0x8] sm:$0xff] }
 0x2f3   :  { %6962 = vmatprep.mubr.bf16.mxu1 %v7711_v14  ;;  %v8494_v50 = vpack.c.bf16 %v5031_v18, %v5030_v6 }
 0x2f4   :  { %v3270_v57 = vpop.f32.mrb[212].mxu0 }
 0x2f5   :  { %v8496_v12 = vpop.f32.mrb[212].mxu1  ;;  %v4328_v27 = vadd.f32 %v8376_v36, %v3270_v57  ;;  %v3272_v37 = vpop.f32.mrb[213].mxu0 }
 0x2f6   :  { %9086 = vst [vmem:[#allocation73_spill] sm:$0xff] %v8496_v12  ;;  %v8499_v26 = vpop.f32.mrb[213].mxu1  ;;  %v3273_v5 = vpop.f32.mrb[214].mxu0  ;;  %v7713_v12 = vld [vmem:[#allocation5 + $0x798] ss:$12 sps:$4 sm:$0xff]  }
 0x2f7   :  { %v8501_v4 = vpop.f32.mrb[214].mxu1  ;;  %v4331_v31 = vadd.f32 %v8381_v53, %v3273_v5  ;;  %v3275_v61 = vpop.f32.mrb[215].mxu0  ;;  %v5032_v10 = vmax.f32 %v4328_v27, 0.0 }
 0x2f8   :  { %9087 = vst [vmem:[#allocation74_spill] sm:$0xff] %v8501_v4  ;;  %v8504_v14 = vpop.f32.mrb[215].mxu1  ;;  %v5182_v61 = vld [vmem:[#allocation7] sm:$0xff] }
 0x2f9   :  { %9088 = vst [vmem:[#allocation75_spill] sm:$0xff] %v8504_v14  ;;  %v5033_v6 = vmax.f32 %v4331_v31, 0.0  ;;  %3485 = vmatmul.mubr.bf16.gmra.mrb[64].mxu0 %v7708_v33  ;;  %v7718_v14 = vld [vmem:[#allocation5 + $0x7b4] ss:$12 sps:$4 sm:$0xff]   ;;  %v5199_v31 = vld [vmem:[#allocation7 + $0x88] sm:$0xff] }
 0x2fa   :  { %6963 = vmatmul.mubr.bf16.gmra.mrb[64].mxu1 %v7712_v22  ;;  %3492 = vmatprep.mubr.bf16.mxu0 %v7715_v45 }
 0x2fb   :  { %5290 = vmatprep.mubr.f32.mxu1 %v5183_v54  ;;  %v8506_v36 = vpack.c.bf16 %v5033_v6, %v5032_v10  ;;  %v5185_v6 = vld [vmem:[#allocation7 + $0x18] sm:$0xff] }
 0x2fc   :  { %v3278_v37 = vpop.f32.mrb[216].mxu0 }
 0x2fd   :  { %v8508_v18 = vpop.f32.mrb[216].mxu1  ;;  %v4336_v57 = vadd.f32 %v8391_v38, %v3278_v37  ;;  %v3280_v4 = vpop.f32.mrb[217].mxu0  ;;  %v5198_v38 = vld [vmem:[#allocation7 + $0x80] sm:$0xff] }
 0x2fe   :  { %v8511_v53 = vpop.f32.mrb[217].mxu1  ;;  %v3281_v5 = vpop.f32.mrb[218].mxu0 }
 0x2ff   :  { %v8513_v27 = vpop.f32.mrb[218].mxu1  ;;  %v4339_v22 = vadd.f32 %v8396_v21, %v3281_v5  ;;  %v3283_v33 = vpop.f32.mrb[219].mxu0  ;;  %v5034_v54 = vmax.f32 %v4336_v57, 0.0  ;;  %v7716_v57 = vld [vmem:[#allocation5 + $0x7b0] ss:$12 sps:$4 sm:$0xff]  }
 0x300   :  { %v8516_v45 = vpop.f32.mrb[219].mxu1 }
 0x301   :  { %v5035_v10 = vmax.f32 %v4339_v22, 0.0  ;;  %3493 = vmatmul.mubr.bf16.gmra.mrb[68].mxu0 %v7713_v12 }
 0x302   :  { %5291 = vmatmul.mubr.f32.vlgmr.msra.gmra.mrb[68].mxu1 %v5182_v61  ;;  %3500 = vmatprep.mubr.bf16.mxu0 %v7718_v14  ;;  %v7721_v14 = vld [vmem:[#allocation5 + $0x7cc] ss:$12 sps:$4 sm:$0xff]  }
 0x303   :  { %7001 = vmatpush3.bf16.msra.mxu1 %v8238_v51  ;;  %v8519_v4 = vpack.c.bf16 %v5035_v10, %v5034_v54  ;;  %5295 = vmatprep.mubr.f32.mxu1 %v5199_v31 }
 0x304   :  { %7003 = vmatprep.subr.bf16.mxu1 %v8280_v41  ;;  %v3286_v37 = vpop.f32.mrb[220].mxu0 }
 0x305   :  { %v8522_v21 = vpop.f32.mrb[220].mxu1  ;;  %v4344_v5 = vadd.f32 %v8388_v47, %v3286_v37  ;;  %v3288_v33 = vpop.f32.mrb[221].mxu0 }
 0x306   :  { %5296 = vmatmul.mubr.f32.gmra.mrb[70].mxu1 %v5198_v38  ;;  %v8525_v12 = vpop.f32.mrb[221].mxu1  ;;  %v3289_v51 = vpop.f32.mrb[222].mxu0  ;;  %v7724_v33 = vld [vmem:[#allocation5 + $0x7e4] ss:$12 sps:$4 sm:$0xff]  }
 0x307   :  { %7005 = vmatpush3.bf16.msra.mxu1 %v8235_v62  ;;  %5365 = vmatprep.mubr.f32.mxu1 %v5185_v6  ;;  %v8528_v61 = vpop.f32.mrb[222].mxu1  ;;  %v4347_v41 = vadd.f32 %v8393_v44, %v3289_v51  ;;  %v3291_v22 = vpop.f32.mrb[223].mxu0  ;;  %v5036_v47 = vmax.f32 %v4344_v5, 0.0 }
 0x308   :  { %7007 = vmatprep.subr.bf16.mxu1 %v8288_v17  ;;  %v8532_v31 = vpop.f32.mrb[223].mxu1  ;;  %v7719_v17 = vld [vmem:[#allocation5 + $0x7c8] ss:$12 sps:$4 sm:$0xff]  }
 0x309   :  { %v5037_v54 = vmax.f32 %v4347_v41, 0.0  ;;  %3501 = vmatmul.mubr.bf16.gmra.mrb[72].mxu0 %v7716_v57 }
 0x30a   :  { %3508 = vmatprep.mubr.bf16.mxu0 %v7721_v14 }
 0x30b   :  { %7009 = vmatpush3.bf16.msra.mxu1 %v8250_v59  ;;  %v8535_v10 = vpack.c.bf16 %v5037_v54, %v5036_v47 }
 0x30c   :  { %7011 = vmatprep.subr.bf16.mxu1 %v8286_v43  ;;  %v3294_v62 = vpop.f32.mrb[224].mxu0 }
 0x30d   :  { %v8538_v38 = vpop.f32.mrb[224].mxu1  ;;  %v4352_v44 = vadd.f32 %v8403_v19, %v3294_v62  ;;  %v3296_v6 = vpop.f32.mrb[225].mxu0 }
 0x30e   :  { %v8541_v37 = vpop.f32.mrb[225].mxu1  ;;  %v3297_v5 = vpop.f32.mrb[226].mxu0 }
 0x30f   :  { %7013 = vmatpush3.bf16.msra.mxu1 %v8248_v9  ;;  %v8544_v57 = vpop.f32.mrb[226].mxu1  ;;  %v4355_v59 = vadd.f32 %v8408_v56, %v3297_v5  ;;  %v3299_v43 = vpop.f32.mrb[227].mxu0  ;;  %v5038_v14 = vmax.f32 %v4352_v44, 0.0  ;;  %v7727_v44 = vld [vmem:[#allocation5 + $0x7fc] ss:$12 sps:$4 sm:$0xff]  }
 0x310   :  { %7015 = vmatprep.subr.bf16.mxu1 %v8294_v46  ;;  %v8548_v51 = vpop.f32.mrb[227].mxu1  ;;  %v7722_v46 = vld [vmem:[#allocation5 + $0x7e0] ss:$12 sps:$4 sm:$0xff]  }
 0x311   :  { %v5039_v41 = vmax.f32 %v4355_v59, 0.0  ;;  %3509 = vmatmul.mubr.bf16.gmra.mrb[76].mxu0 %v7719_v17 }
 0x312   :  { %3516 = vmatprep.mubr.bf16.mxu0 %v7724_v33 }
 0x313   :  { %7017 = vmatpush3.bf16.msra.mxu1 %v8262_v34  ;;  %v8551_v19 = vpack.c.bf16 %v5039_v41, %v5038_v14 }
 0x314   :  { %7019 = vmatprep.subr.bf16.mxu1 %v8292_v15  ;;  %v3302_v9 = vpop.f32.mrb[228].mxu0 }
 0x315   :  { %v8554_v22 = vpop.f32.mrb[228].mxu1  ;;  %v4360_v56 = vadd.f32 %v8400_v13, %v3302_v9  ;;  %v3304_v47 = vpop.f32.mrb[229].mxu0  ;;  %v5184_v9 = vld [vmem:[#allocation7 + $0x10] sm:$0xff] }
 0x316   :  { %v8557_v54 = vpop.f32.mrb[229].mxu1  ;;  %v3305_v62 = vpop.f32.mrb[230].mxu0 }
 0x317   :  { %7021 = vmatpush3.bf16.msra.mxu1 %v8260_v39  ;;  %v8560_v6 = vpop.f32.mrb[230].mxu1  ;;  %v4363_v34 = vadd.f32 %v8405_v20, %v3305_v62  ;;  %v3307_v15 = vpop.f32.mrb[231].mxu0  ;;  %v5040_v5 = vmax.f32 %v4360_v56, 0.0  ;;  %v7730_v56 = vld [vmem:[#allocation5 + $0x814] ss:$12 sps:$4 sm:$0xff]   ;;  %v5201_v62 = vld [vmem:[#allocation7 + $0x98] sm:$0xff] }
 0x318   :  { %7023 = vmatprep.subr.bf16.mxu1 %v8298_v1  ;;  %v8564_v17 = vpop.f32.mrb[231].mxu1  ;;  %v7725_v1 = vld [vmem:[#allocation5 + $0x7f8] ss:$12 sps:$4 sm:$0xff]  }
 0x319   :  { %v5041_v33 = vmax.f32 %v4363_v34, 0.0  ;;  %3517 = vmatmul.mubr.bf16.gmra.mrb[80].mxu0 %v7722_v46 }
 0x31a   :  { %3524 = vmatprep.mubr.bf16.mxu0 %v7727_v44 }
 0x31b   :  { %7025 = vmatpush3.bf16.msra.mxu1 %v8274_v7  ;;  %v8567_v13 = vpack.c.bf16 %v5041_v33, %v5040_v5 }
 0x31c   :  { %7027 = vmatprep.subr.bf16.mxu1 %v8296_v52  ;;  %v3310_v39 = vpop.f32.mrb[232].mxu0 }
 0x31d   :  { %v8570_v59 = vpop.f32.mrb[232].mxu1  ;;  %v4368_v20 = vadd.f32 %v8415_v2, %v3310_v39  ;;  %v3312_v43 = vpop.f32.mrb[233].mxu0  ;;  %v7728_v39 = vld [vmem:[#allocation5 + $0x810] ss:$12 sps:$4 sm:$0xff]  }
 0x31e   :  { %v8573_v14 = vpop.f32.mrb[233].mxu1  ;;  %v3313_v41 = vpop.f32.mrb[234].mxu0  ;;  %v7733_v43 = vld [vmem:[#allocation5 + $0x82c] ss:$12 sps:$4 sm:$0xff]  }
 0x31f   :  { %7029 = vmatpush3.bf16.msra.mxu1 %v8272_v24  ;;  %v8576_v7 = vpop.f32.mrb[234].mxu1  ;;  %v4371_v47 = vadd.f32 %v8420_v40, %v3313_v41  ;;  %v3315_v52 = vpop.f32.mrb[235].mxu0  ;;  %v5042_v2 = vmax.f32 %v4368_v20, 0.0  ;;  %v5200_v24 = vld [vmem:[#allocation7 + $0x90] sm:$0xff]  ;;  %v5187_v40 = vld [vmem:[#allocation7 + $0x28] sm:$0xff] }
 0x320   :  { %7031 = vmatprep.subr.bf16.mxu1 %v8350_v29  ;;  %v8580_v46 = vpop.f32.mrb[235].mxu1 }
 0x321   :  { %v5043_v44 = vmax.f32 %v4371_v47, 0.0  ;;  %3525 = vmatmul.mubr.bf16.gmra.mrb[84].mxu0 %v7725_v1  ;;  %v9089_v47 = vld [vmem:[#allocation46_spill] sm:$0xff] }
 0x322   :  { %5366 = vmatmul.mubr.f32.vlgmr.msra.gmra.mrb[72].mxu1 %v5184_v9  ;;  %3532 = vmatprep.mubr.bf16.mxu0 %v7730_v56 }
 0x323   :  { %7033 = vmatpush3.bf16.msra.mxu1 %v8302_v11  ;;  %v8583_v34 = vpack.c.bf16 %v5043_v44, %v5042_v2  ;;  %5370 = vmatprep.mubr.f32.mxu1 %v5201_v62 }
 0x324   :  { %7035 = vmatprep.subr.bf16.mxu1 %v8362_v58  ;;  %v3318_v15 = vpop.f32.mrb[236].mxu0 }
 0x325   :  { %v8586_v29 = vpop.f32.mrb[236].mxu1  ;;  %v4376_v5 = vadd.f32 %v8412_v3, %v3318_v15  ;;  %v3320_v33 = vpop.f32.mrb[237].mxu0 }
 0x326   :  { %5371 = vmatmul.mubr.f32.gmra.mrb[74].mxu1 %v5200_v24  ;;  %v8589_v20 = vpop.f32.mrb[237].mxu1  ;;  %v3321_v11 = vpop.f32.mrb[238].mxu0 }
 0x327   :  { %7037 = vmatpush3.bf16.msra.mxu1 %v8300_v23  ;;  %5440 = vmatprep.mubr.f32.mxu1 %v5187_v40  ;;  %v8592_v1 = vpop.f32.mrb[238].mxu1  ;;  %v4379_v58 = vadd.f32 %v8417_v8, %v3321_v11  ;;  %v3323_v41 = vpop.f32.mrb[239].mxu0  ;;  %v5044_v3 = vmax.f32 %v4376_v5, 0.0  ;;  %v9090_v23 = vld [vmem:[#allocation52_spill] sm:$0xff]  ;;  %v9091_v40 = vld [vmem:[#allocation47_spill] sm:$0xff]  ;;  %v9093_v11 = vld [vmem:[#allocation53_spill] sm:$0xff] }
 0x328   :  { %7039 = vmatprep.subr.bf16.mxu1 %v8374_v0  ;;  %v8596_v9 = vpop.f32.mrb[239].mxu1  ;;  %v7731_v0 = vld [vmem:[#allocation5 + $0x828] ss:$12 sps:$4 sm:$0xff]   ;;  %v7736_v5 = vld [vmem:[#allocation5 + $0x844] ss:$12 sps:$4 sm:$0xff]  }
 0x329   :  { %v5045_v56 = vmax.f32 %v4379_v58, 0.0  ;;  %3533 = vmatmul.mubr.bf16.gmra.mrb[88].mxu0 %v7728_v39 }
 0x32a   :  { %3540 = vmatprep.mubr.bf16.mxu0 %v7733_v43 }
 0x32b   :  { %7041 = vmatpush3.bf16.msra.mxu1 %v9089_v47  ;;  %v8599_v52 = vpack.c.bf16 %v5045_v56, %v5044_v3  ;;  %v9095_v47 = vld [vmem:[#allocation54_spill] sm:$0xff] }
 0x32c   :  { %7043 = vmatprep.subr.bf16.mxu1 %v9090_v23  ;;  %v3326_v62 = vpop.f32.mrb[240].mxu0 }
 0x32d   :  { %v8602_v2 = vpop.f32.mrb[240].mxu1  ;;  %v4384_v8 = vadd.f32 %v8427_v55, %v3326_v62  ;;  %v3328_v44 = vpop.f32.mrb[241].mxu0  ;;  %v9094_v55 = vld [vmem:[#allocation48_spill] sm:$0xff] }
 0x32e   :  { %v8605_v24 = vpop.f32.mrb[241].mxu1  ;;  %v3329_v15 = vpop.f32.mrb[242].mxu0  ;;  %v9097_v44 = vld [vmem:[#allocation56_spill] sm:$0xff] }
 0x32f   :  { %7045 = vmatpush3.bf16.msra.mxu1 %v9091_v40  ;;  %v8608_v33 = vpop.f32.mrb[242].mxu1  ;;  %v4387_v39 = vadd.f32 %v8432_v16, %v3329_v15  ;;  %v3331_v43 = vpop.f32.mrb[243].mxu0  ;;  %v5046_v41 = vmax.f32 %v4384_v8, 0.0  ;;  %v7734_v15 = vld [vmem:[#allocation5 + $0x840] ss:$12 sps:$4 sm:$0xff]  }
 0x330   :  { %9092 = vst [vmem:[#allocation46_spill] sm:$0xff] %v8608_v33  ;;  %7047 = vmatprep.subr.bf16.mxu1 %v9093_v11  ;;  %v8612_v58 = vpop.f32.mrb[243].mxu1  ;;  %v9098_v43 = vld [vmem:[#allocation49_spill] sm:$0xff] }
 0x331   :  { %v5047_v3 = vmax.f32 %v4387_v39, 0.0  ;;  %3541 = vmatmul.mubr.bf16.gmra.mrb[92].mxu0 %v7731_v0  ;;  %v7739_v0 = vld [vmem:[#allocation5 + $0x85c] ss:$12 sps:$4 sm:$0xff]  }
 0x332   :  { %3548 = vmatprep.mubr.bf16.mxu0 %v7736_v5  ;;  %v9100_v5 = vld [vmem:[#allocation57_spill] sm:$0xff] }
 0x333   :  { %7049 = vmatpush3.bf16.msra.mxu1 %v9094_v55  ;;  %v8615_v56 = vpack.c.bf16 %v5047_v3, %v5046_v41  ;;  %v9101_v3 = vld [vmem:[#allocation55_spill] sm:$0xff] }
 0x334   :  { %7051 = vmatprep.subr.bf16.mxu1 %v9095_v47  ;;  %v3334_v23 = vpop.f32.mrb[244].mxu0 }
 0x335   :  { %v8618_v62 = vpop.f32.mrb[244].mxu1  ;;  %v4392_v16 = vadd.f32 %v9097_v44, %v3334_v23  ;;  %v3336_v40 = vpop.f32.mrb[245].mxu0  ;;  %v9103_v23 = vld [vmem:[#allocation50_spill] sm:$0xff] }
 0x336   :  { %9096 = vst [vmem:[#allocation52_spill] sm:$0xff] %v8618_v62  ;;  %v8621_v11 = vpop.f32.mrb[245].mxu1  ;;  %v3337_v8 = vpop.f32.mrb[246].mxu0 }
 0x337   :  { %7053 = vmatpush3.bf16.msra.mxu1 %v9098_v43  ;;  %v8624_v39 = vpop.f32.mrb[246].mxu1  ;;  %v4395_v41 = vadd.f32 %v9100_v5, %v3337_v8  ;;  %v3339_v55 = vpop.f32.mrb[247].mxu0  ;;  %v5048_v62 = vmax.f32 %v4392_v16, 0.0 }
 0x338   :  { %9099 = vst [vmem:[#allocation47_spill] sm:$0xff] %v8624_v39  ;;  %7055 = vmatprep.subr.bf16.mxu1 %v9101_v3  ;;  %v8628_v47 = vpop.f32.mrb[247].mxu1  ;;  %v9105_v39 = vld [vmem:[#allocation59_spill] sm:$0xff]  ;;  %v7737_v3 = vld [vmem:[#allocation5 + $0x858] ss:$12 sps:$4 sm:$0xff]  }
 0x339   :  { %9102 = vst [vmem:[#allocation53_spill] sm:$0xff] %v8628_v47  ;;  %v5049_v33 = vmax.f32 %v4395_v41, 0.0  ;;  %3549 = vmatmul.mubr.bf16.gmra.mrb[96].mxu0 %v7734_v15  ;;  %v9106_v47 = vld [vmem:[#allocation51_spill] sm:$0xff]  ;;  %v5186_v15 = vld [vmem:[#allocation7 + $0x20] sm:$0xff] }
 0x33a   :  { %3556 = vmatprep.mubr.bf16.mxu0 %v7739_v0  ;;  %v7742_v41 = vld [vmem:[#allocation5 + $0x874] ss:$12 sps:$4 sm:$0xff]   ;;  %v5203_v0 = vld [vmem:[#allocation7 + $0xa8] sm:$0xff] }
 0x33b   :  { %7057 = vmatpush3.bf16.msra.mxu1 %v9103_v23  ;;  %v8631_v44 = vpack.c.bf16 %v5049_v33, %v5048_v62 }
 0x33c   :  { %7059 = vmatprep.subr.bf16.mxu1 %v8434_v63  ;;  %v3342_v40 = vpop.f32.mrb[248].mxu0 }
 0x33d   :  { %v8634_v43 = vpop.f32.mrb[248].mxu1  ;;  %v4400_v8 = vadd.f32 %v9105_v39, %v3342_v40  ;;  %v3344_v5 = vpop.f32.mrb[249].mxu0 }
 0x33e   :  { %9104 = vst [vmem:[#allocation48_spill] sm:$0xff] %v8634_v43  ;;  %v8637_v55 = vpop.f32.mrb[249].mxu1  ;;  %v3345_v16 = vpop.f32.mrb[250].mxu0 }
 0x33f   :  { %7061 = vmatpush3.bf16.msra.mxu1 %v9106_v47  ;;  %v8640_v23 = vpop.f32.mrb[250].mxu1  ;;  %v4403_v33 = vadd.f32 %v8444_v25, %v3345_v16  ;;  %v3347_v63 = vpop.f32.mrb[251].mxu0  ;;  %v5050_v39 = vmax.f32 %v4400_v8, 0.0  ;;  %v5202_v47 = vld [vmem:[#allocation7 + $0xa0] sm:$0xff] }
 0x340   :  { %9107 = vst [vmem:[#allocation54_spill] sm:$0xff] %v8640_v23  ;;  %7063 = vmatprep.subr.bf16.mxu1 %v8551_v19  ;;  %v8644_v62 = vpop.f32.mrb[251].mxu1  ;;  %v5189_v23 = vld [vmem:[#allocation7 + $0x38] sm:$0xff]  ;;  %v9109_v19 = vld [vmem:[#allocation58_spill] sm:$0xff] }
 0x341   :  { %9108 = vst [vmem:[#allocation56_spill] sm:$0xff] %v8644_v62  ;;  %v5051_v40 = vmax.f32 %v4403_v33, 0.0  ;;  %3557 = vmatmul.mubr.bf16.gmra.mrb[100].mxu0 %v7737_v3  ;;  %v7740_v62 = vld [vmem:[#allocation5 + $0x870] ss:$12 sps:$4 sm:$0xff]   ;;  %v7745_v3 = vld [vmem:[#allocation5 + $0x88c] ss:$12 sps:$4 sm:$0xff]  }
 0x342   :  { %5441 = vmatmul.mubr.f32.vlgmr.msra.gmra.mrb[76].mxu1 %v5186_v15  ;;  %3564 = vmatprep.mubr.bf16.mxu0 %v7742_v41 }
 0x343   :  { %7065 = vmatpush3.bf16.msra.mxu1 %v8446_v30  ;;  %v7086_v5 = vpack.c.bf16 %v5051_v40, %v5050_v39  ;;  %5445 = vmatprep.mubr.f32.mxu1 %v5203_v0 }
 0x344   :  { %7067 = vmatprep.subr.bf16.mxu1 %v8567_v13  ;;  %v3350_v25 = vpop.f32.mrb[252].mxu0  ;;  %v9110_v13 = vld [vmem:[#allocation60_spill] sm:$0xff] }
 0x345   :  { %v8648_v16 = vpop.f32.mrb[252].mxu1  ;;  %v4408_v63 = vadd.f32 %v9109_v19, %v3350_v25  ;;  %v3352_v43 = vpop.f32.mrb[253].mxu0 }
 0x346   :  { %v8651_v8 = vpop.f32.mrb[253].mxu1  ;;  %5446 = vmatmul.mubr.f32.gmra.mrb[78].mxu1 %v5202_v47  ;;  %v3353_v30 = vpop.f32.mrb[254].mxu0 }
 0x347   :  { %7069 = vmatpush3.bf16.msra.mxu1 %v8458_v48  ;;  %v8654_v15 = vpop.f32.mrb[254].mxu1  ;;  %5515 = vmatprep.mubr.f32.mxu1 %v5189_v23  ;;  %v4411_v41 = vadd.f32 %v9110_v13, %v3353_v30  ;;  %v3355_v33 = vpop.f32.mrb[255].mxu0  ;;  %v5052_v39 = vmax.f32 %v4408_v63, 0.0  ;;  %v9112_v23 = vld [vmem:[#allocation62_spill] sm:$0xff]  ;;  %v7743_v30 = vld [vmem:[#allocation5 + $0x888] ss:$12 sps:$4 sm:$0xff]  }
 0x348   :  { %7071 = vmatprep.subr.bf16.mxu1 %v8583_v34  ;;  %v8658_v0 = vpop.f32.mrb[255].mxu1  ;;  %v7748_v13 = vld [vmem:[#allocation5 + $0x8a4] ss:$12 sps:$4 sm:$0xff]  }
 0x349   :  { %v5053_v43 = vmax.f32 %v4411_v41, 0.0  ;;  %3565 = vmatmul.mubr.bf16.gmra.mrb[104].mxu0 %v7740_v62 }
 0x34a   :  { %3572 = vmatprep.mubr.bf16.mxu0 %v7745_v3 }
 0x34b   :  { %7073 = vmatpush3.bf16.msra.mxu1 %v8470_v35  ;;  %v7090_v40 = vpack.c.bf16 %v5053_v43, %v5052_v39 }
 0x34c   :  { %7075 = vmatprep.subr.bf16.mxu1 %v8599_v52  ;;  %v3358_v48 = vpop.f32.mrb[0].mxu0 }
 0x34d   :  { %v8662_v47 = vpop.f32.mrb[0].mxu1  ;;  %v4416_v25 = vadd.f32 %v9112_v23, %v3358_v48  ;;  %v3360_v19 = vpop.f32.mrb[1].mxu0  ;;  %v9117_v48 = vld [vmem:[#allocation61_spill] sm:$0xff] }
 0x34e   :  { %9111 = vst [vmem:[#allocation49_spill] sm:$0xff] %v8662_v47  ;;  %v8665_v34 = vpop.f32.mrb[1].mxu1  ;;  %v3361_v63 = vpop.f32.mrb[2].mxu0 }
 0x34f   :  { %9113 = vst [vmem:[#allocation57_spill] sm:$0xff] %v8665_v34  ;;  %7077 = vmatpush3.bf16.msra.mxu1 %v8482_v49  ;;  %v8668_v62 = vpop.f32.mrb[2].mxu1  ;;  %v4419_v35 = vadd.f32 %v8456_v32, %v3361_v63  ;;  %v3363_v52 = vpop.f32.mrb[3].mxu0  ;;  %v5054_v41 = vmax.f32 %v4416_v25, 0.0 }
 0x350   :  { %9114 = vst [vmem:[#allocation55_spill] sm:$0xff] %v8668_v62  ;;  %7079 = vmatprep.subr.bf16.mxu1 %v8615_v56  ;;  %v8672_v3 = vpop.f32.mrb[3].mxu1  ;;  %v7746_v56 = vld [vmem:[#allocation5 + $0x8a0] ss:$12 sps:$4 sm:$0xff]  }
 0x351   :  { %9115 = vst [vmem:[#allocation50_spill] sm:$0xff] %v8672_v3  ;;  %v5055_v33 = vmax.f32 %v4419_v35, 0.0  ;;  %3573 = vmatmul.mubr.bf16.gmra.mrb[108].mxu0 %v7743_v30  ;;  %v7751_v30 = vld [vmem:[#allocation5 + $0x8bc] ss:$12 sps:$4 sm:$0xff]  }
 0x352   :  { %3580 = vmatprep.mubr.bf16.mxu0 %v7748_v13 }
 0x353   :  { %7081 = vmatpush3.bf16.msra.mxu1 %v8494_v50  ;;  %v8675_v39 = vpack.c.bf16 %v5055_v33, %v5054_v41  ;;  %v9120_v50 = vld [vmem:[#allocation63_spill] sm:$0xff] }
 0x354   :  { %7083 = vmatprep.subr.bf16.mxu1 %v8631_v44  ;;  %v3366_v49 = vpop.f32.mrb[4].mxu0 }
 0x355   :  { %v8678_v43 = vpop.f32.mrb[4].mxu1  ;;  %v4424_v32 = vadd.f32 %v9117_v48, %v3366_v49  ;;  %v3368_v23 = vpop.f32.mrb[5].mxu0  ;;  %v9123_v48 = vld [vmem:[#allocation65_spill] sm:$0xff] }
 0x356   :  { %9116 = vst [vmem:[#allocation59_spill] sm:$0xff] %v8678_v43  ;;  %v8681_v19 = vpop.f32.mrb[5].mxu1  ;;  %v3369_v25 = vpop.f32.mrb[6].mxu0 }
 0x357   :  { %9118 = vst [vmem:[#allocation51_spill] sm:$0xff] %v8681_v19  ;;  %7085 = vmatpush3.bf16.msra.mxu1 %v8506_v36  ;;  %v8684_v63 = vpop.f32.mrb[6].mxu1  ;;  %v4427_v13 = vadd.f32 %v9120_v50, %v3369_v25  ;;  %v3371_v35 = vpop.f32.mrb[7].mxu0  ;;  %v5056_v52 = vmax.f32 %v4424_v32, 0.0  ;;  %v7749_v25 = vld [vmem:[#allocation5 + $0x8b8] ss:$12 sps:$4 sm:$0xff]  }
 0x358   :  { %9119 = vst [vmem:[#allocation58_spill] sm:$0xff] %v8684_v63  ;;  %7087 = vmatprep.subr.bf16.mxu1 %v7086_v5  ;;  %v8687_v44 = vpop.f32.mrb[7].mxu1  ;;  %v7754_v50 = vld [vmem:[#allocation5 + $0x8d4] ss:$12 sps:$4 sm:$0xff]  }
 0x359   :  { %9121 = vst [vmem:[#allocation60_spill] sm:$0xff] %v8687_v44  ;;  %v5057_v41 = vmax.f32 %v4427_v13, 0.0  ;;  %3581 = vmatmul.mubr.bf16.gmra.mrb[112].mxu0 %v7746_v56  ;;  %v7767_v19 = vld [vmem:[#allocation5 + $0x948] ss:$12 sps:$4 sm:$0xff]  }
 0x35a   :  { %3588 = vmatprep.mubr.bf16.mxu0 %v7751_v30 }
 0x35b   :  { %7089 = vmatpush3.bf16.msra.mxu1 %v8519_v4  ;;  %v8690_v33 = vpack.c.bf16 %v5057_v41, %v5056_v52  ;;  %v5188_v4 = vld [vmem:[#allocation7 + $0x30] sm:$0xff] }
 0x35c   :  { %7091 = vmatprep.subr.bf16.mxu1 %v7090_v40  ;;  %v3374_v36 = vpop.f32.mrb[8].mxu0 }
 0x35d   :  { %v8692_v49 = vpop.f32.mrb[8].mxu1  ;;  %v4432_v23 = vadd.f32 %v9123_v48, %v3374_v36  ;;  %v3376_v63 = vpop.f32.mrb[9].mxu0 }
 0x35e   :  { %9122 = vst [vmem:[#allocation62_spill] sm:$0xff] %v8692_v49  ;;  %v8695_v5 = vpop.f32.mrb[9].mxu1  ;;  %v3377_v32 = vpop.f32.mrb[10].mxu0 }
 0x35f   :  { %9124 = vst [vmem:[#allocation61_spill] sm:$0xff] %v8695_v5  ;;  %7093 = vmatpush3.bf16.msra.mxu1 %v8535_v10  ;;  %v8698_v56 = vpop.f32.mrb[10].mxu1  ;;  %v4435_v30 = vadd.f32 %v8468_v28, %v3377_v32  ;;  %v3379_v13 = vpop.f32.mrb[11].mxu0  ;;  %v5058_v35 = vmax.f32 %v4432_v23, 0.0  ;;  %v9128_v10 = vld [vmem:[#allocation64_spill] sm:$0xff]  ;;  %v9131_v23 = vld [vmem:[#allocation66_spill] sm:$0xff] }
 0x360   :  { %9125 = vst [vmem:[#allocation63_spill] sm:$0xff] %v8698_v56  ;;  %v8701_v40 = vpop.f32.mrb[11].mxu1  ;;  %v7752_v56 = vld [vmem:[#allocation5 + $0x8d0] ss:$12 sps:$4 sm:$0xff]   ;;  %v7757_v32 = vld [vmem:[#allocation5 + $0x8ec] ss:$12 sps:$4 sm:$0xff]  }
 0x361   :  { %9126 = vst [vmem:[#allocation65_spill] sm:$0xff] %v8701_v40  ;;  %v5059_v52 = vmax.f32 %v4435_v30, 0.0  ;;  %3589 = vmatmul.mubr.bf16.gmra.mrb[116].mxu0 %v7749_v25  ;;  %v7755_v40 = vld [vmem:[#allocation5 + $0x8e8] ss:$12 sps:$4 sm:$0xff]  }
 0x362   :  { %5516 = vmatmul.mubr.f32.vlgmr.msra.gmra.mrb[80].mxu1 %v5188_v4  ;;  %3596 = vmatprep.mubr.bf16.mxu0 %v7754_v50 }
 0x363   :  { %v8703_v63 = vpack.c.bf16 %v5059_v52, %v5058_v35 }
 0x364   :  { %v3382_v41 = vpop.f32.mrb[12].mxu0 }
 0x365   :  { %v8705_v36 = vpop.f32.mrb[12].mxu1  ;;  %v4440_v48 = vadd.f32 %v9128_v10, %v3382_v41  ;;  %v3384_v49 = vpop.f32.mrb[13].mxu0  ;;  %v9134_v10 = vld [vmem:[#allocation68_spill] sm:$0xff] }
 0x366   :  { %9127 = vst [vmem:[#allocation76_spill] sm:$0xff] %v8705_v36  ;;  %v8708_v5 = vpop.f32.mrb[13].mxu1  ;;  %v3385_v28 = vpop.f32.mrb[14].mxu0 }
 0x367   :  { %9129 = vst [vmem:[#allocation64_spill] sm:$0xff] %v8708_v5  ;;  %v8710_v13 = vpop.f32.mrb[14].mxu1  ;;  %v4443_v30 = vadd.f32 %v9131_v23, %v3385_v28  ;;  %v3387_v25 = vpop.f32.mrb[15].mxu0  ;;  %v5060_v50 = vmax.f32 %v4440_v48, 0.0  ;;  %v7760_v28 = vld [vmem:[#allocation5 + $0x904] ss:$12 sps:$4 sm:$0xff]  }
 0x368   :  { %9130 = vst [vmem:[#allocation77_spill] sm:$0xff] %v8710_v13  ;;  %v8713_v4 = vpop.f32.mrb[15].mxu1 }
 0x369   :  { %9132 = vst [vmem:[#allocation66_spill] sm:$0xff] %v8713_v4  ;;  %v5061_v35 = vmax.f32 %v4443_v30, 0.0  ;;  %3597 = vmatmul.mubr.bf16.gmra.mrb[120].mxu0 %v7752_v56 }
 0x36a   :  { %3604 = vmatprep.mubr.bf16.mxu0 %v7757_v32 }
 0x36b   :  { %v8715_v52 = vpack.c.bf16 %v5061_v35, %v5060_v50 }
 0x36c   :  { %v3390_v41 = vpop.f32.mrb[16].mxu0 }
 0x36d   :  { %v8717_v49 = vpop.f32.mrb[16].mxu1  ;;  %v4448_v36 = vadd.f32 %v9134_v10, %v3390_v41  ;;  %v3392_v5 = vpop.f32.mrb[17].mxu0  ;;  %v9139_v41 = vld [vmem:[#allocation67_spill] sm:$0xff] }
 0x36e   :  { %9133 = vst [vmem:[#allocation78_spill] sm:$0xff] %v8717_v49  ;;  %v8720_v43 = vpop.f32.mrb[17].mxu1  ;;  %v3393_v13 = vpop.f32.mrb[18].mxu0 }
 0x36f   :  { %9135 = vst [vmem:[#allocation68_spill] sm:$0xff] %v8720_v43  ;;  %v8722_v23 = vpop.f32.mrb[18].mxu1  ;;  %v4451_v48 = vadd.f32 %v8480_v42, %v3393_v13  ;;  %v3395_v30 = vpop.f32.mrb[19].mxu0  ;;  %v5062_v32 = vmax.f32 %v4448_v36, 0.0  ;;  %v7758_v43 = vld [vmem:[#allocation5 + $0x900] ss:$12 sps:$4 sm:$0xff]  }
 0x370   :  { %9136 = vst [vmem:[#allocation79_spill] sm:$0xff] %v8722_v23  ;;  %v8725_v56 = vpop.f32.mrb[19].mxu1  ;;  %v7763_v42 = vld [vmem:[#allocation5 + $0x91c] ss:$12 sps:$4 sm:$0xff]  }
 0x371   :  { %9137 = vst [vmem:[#allocation80_spill] sm:$0xff] %v8725_v56  ;;  %v5063_v25 = vmax.f32 %v4451_v48, 0.0  ;;  %3605 = vmatmul.mubr.bf16.gmra.mrb[124].mxu0 %v7755_v40  ;;  %v9142_v30 = vld [vmem:[#allocation69_spill] sm:$0xff] }
 0x372   :  { %3612 = vmatprep.mubr.bf16.mxu0 %v7760_v28  ;;  %v7761_v56 = vld [vmem:[#allocation5 + $0x918] ss:$12 sps:$4 sm:$0xff]  }
 0x373   :  { %v8727_v50 = vpack.c.bf16 %v5063_v25, %v5062_v32 }
 0x374   :  { %v3398_v35 = vpop.f32.mrb[20].mxu0 }
 0x375   :  { %v8729_v5 = vpop.f32.mrb[20].mxu1  ;;  %v4456_v10 = vadd.f32 %v9139_v41, %v3398_v35  ;;  %v3400_v49 = vpop.f32.mrb[21].mxu0  ;;  %v9145_v41 = vld [vmem:[#allocation71_spill] sm:$0xff] }
 0x376   :  { %9138 = vst [vmem:[#allocation81_spill] sm:$0xff] %v8729_v5  ;;  %v8732_v4 = vpop.f32.mrb[21].mxu1  ;;  %v3401_v23 = vpop.f32.mrb[22].mxu0 }
 0x377   :  { %9140 = vst [vmem:[#allocation67_spill] sm:$0xff] %v8732_v4  ;;  %v8734_v13 = vpop.f32.mrb[22].mxu1  ;;  %v4459_v36 = vadd.f32 %v9142_v30, %v3401_v23  ;;  %v3403_v48 = vpop.f32.mrb[23].mxu0  ;;  %v5064_v28 = vmax.f32 %v4456_v10, 0.0  ;;  %v7766_v30 = vld [vmem:[#allocation5 + $0x934] ss:$12 sps:$4 sm:$0xff]  }
 0x378   :  { %9141 = vst [vmem:[#allocation82_spill] sm:$0xff] %v8734_v13  ;;  %v8737_v40 = vpop.f32.mrb[23].mxu1 }
 0x379   :  { %9143 = vst [vmem:[#allocation69_spill] sm:$0xff] %v8737_v40  ;;  %v5065_v32 = vmax.f32 %v4459_v36, 0.0  ;;  %3613 = vmatmul.mubr.bf16.gmra.mrb[128].mxu0 %v7758_v43 }
 0x37a   :  { %3620 = vmatprep.mubr.bf16.mxu0 %v7763_v42 }
 0x37b   :  { %v8739_v25 = vpack.c.bf16 %v5065_v32, %v5064_v28 }
 0x37c   :  { %v3406_v35 = vpop.f32.mrb[24].mxu0 }
 0x37d   :  { %v8741_v49 = vpop.f32.mrb[24].mxu1  ;;  %v4464_v5 = vadd.f32 %v9145_v41, %v3406_v35  ;;  %v3408_v4 = vpop.f32.mrb[25].mxu0  ;;  %v9150_v35 = vld [vmem:[#allocation70_spill] sm:$0xff] }
 0x37e   :  { %9144 = vst [vmem:[#allocation83_spill] sm:$0xff] %v8741_v49  ;;  %v8744_v44 = vpop.f32.mrb[25].mxu1  ;;  %v3409_v13 = vpop.f32.mrb[26].mxu0 }
 0x37f   :  { %9146 = vst [vmem:[#allocation71_spill] sm:$0xff] %v8744_v44  ;;  %v8746_v23 = vpop.f32.mrb[26].mxu1  ;;  %v4467_v10 = vadd.f32 %v8492_v60, %v3409_v13  ;;  %v3411_v36 = vpop.f32.mrb[27].mxu0  ;;  %v5066_v42 = vmax.f32 %v4464_v5, 0.0  ;;  %v7764_v44 = vld [vmem:[#allocation5 + $0x930] ss:$12 sps:$4 sm:$0xff]  }
 0x380   :  { %9147 = vst [vmem:[#allocation84_spill] sm:$0xff] %v8746_v23  ;;  %v8749_v43 = vpop.f32.mrb[27].mxu1  ;;  %v7769_v13 = vld [vmem:[#allocation5 + $0x94c] ss:$12 sps:$4 sm:$0xff]   ;;  %v9153_v36 = vld [vmem:[#allocation72_spill] sm:$0xff] }
 0x381   :  { %9148 = vst [vmem:[#allocation85_spill] sm:$0xff] %v8749_v43  ;;  %v5067_v48 = vmax.f32 %v4467_v10, 0.0  ;;  %3621 = vmatmul.mubr.bf16.gmra.mrb[132].mxu0 %v7761_v56 }
 0x382   :  { %3628 = vmatprep.mubr.bf16.mxu0 %v7766_v30 }
 0x383   :  { %v8751_v28 = vpack.c.bf16 %v5067_v48, %v5066_v42 }
 0x384   :  { %v3414_v32 = vpop.f32.mrb[28].mxu0 }
 0x385   :  { %v8753_v4 = vpop.f32.mrb[28].mxu1  ;;  %v4472_v41 = vadd.f32 %v9150_v35, %v3414_v32  ;;  %v3416_v49 = vpop.f32.mrb[29].mxu0 }
 0x386   :  { %9149 = vst [vmem:[#allocation86_spill] sm:$0xff] %v8753_v4  ;;  %v8756_v23 = vpop.f32.mrb[29].mxu1  ;;  %v3417_v40 = vpop.f32.mrb[30].mxu0  ;;  %v9155_v4 = vld [vmem:[#allocation12_spill] sm:$0xff] }
 0x387   :  { %9151 = vst [vmem:[#allocation70_spill] sm:$0xff] %v8756_v23  ;;  %v8758_v60 = vpop.f32.mrb[30].mxu1  ;;  %v4475_v5 = vadd.f32 %v9153_v36, %v3417_v40  ;;  %v3419_v10 = vpop.f32.mrb[31].mxu0  ;;  %v5068_v30 = vmax.f32 %v4472_v41, 0.0 }
 0x388   :  { %9152 = vst [vmem:[#allocation87_spill] sm:$0xff] %v8758_v60  ;;  %v8761_v56 = vpop.f32.mrb[31].mxu1  ;;  %v7772_v10 = vld [vmem:[#allocation5 + $0x964] ss:$12 sps:$4 sm:$0xff]  }
 0x389   :  { %9154 = vst [vmem:[#allocation72_spill] sm:$0xff] %v8761_v56  ;;  %v5069_v42 = vmax.f32 %v4475_v5, 0.0  ;;  %3629 = vmatmul.mubr.bf16.gmra.mrb[136].mxu0 %v7764_v44  ;;  %v9157_v56 = vld [vmem:[#allocation75_spill] sm:$0xff]  ;;  %v9158_v5 = vld [vmem:[#allocation13_spill] sm:$0xff] }
 0x38a   :  { %3636 = vmatprep.mubr.bf16.mxu0 %v7769_v13 }
 0x38b   :  { %v8763_v48 = vpack.c.bf16 %v5069_v42, %v5068_v30  ;;  %v5205_v42 = vld [vmem:[#allocation7 + $0xb8] sm:$0xff] }
 0x38c   :  { %v3422_v32 = vpop.f32.mrb[32].mxu0  ;;  %5520 = vmatprep.mubr.f32.mxu1 %v5205_v42 }
 0x38d   :  { %v6932_v49 = vpop.f32.mrb[32].mxu1  ;;  %v4480_v35 = vadd.f32 %v8499_v26, %v3422_v32  ;;  %v3424_v43 = vpop.f32.mrb[33].mxu0 }
 0x38e   :  { %v4792_v23 = vadd.f32 %v6932_v49, %v9155_v4  ;;  %v8767_v60 = vpop.f32.mrb[33].mxu1  ;;  %v3425_v40 = vpop.f32.mrb[34].mxu0  ;;  %v5204_v43 = vld [vmem:[#allocation7 + $0xb0] sm:$0xff] }
 0x38f   :  { %9156 = vst [vmem:[#allocation12_spill] sm:$0xff] %v8767_v60  ;;  %v6933_v36 = vpop.f32.mrb[34].mxu1  ;;  %v4483_v41 = vadd.f32 %v9157_v56, %v3425_v40  ;;  %v3427_v13 = vpop.f32.mrb[35].mxu0  ;;  %v5070_v62 = vmax.f32 %v4480_v35, 0.0  ;;  %5521 = vmatmul.mubr.f32.gmra.mrb[82].mxu1 %v5204_v43  ;;  %v5191_v40 = vld [vmem:[#allocation7 + $0x48] sm:$0xff] }
 0x390   :  { %v4795_v44 = vadd.f32 %v6933_v36, %v9158_v5  ;;  %v8771_v30 = vpop.f32.mrb[35].mxu1  ;;  %v5148_v47 = vmax.f32 %v4792_v23, 0.0  ;;  %v9161_v36 = vld [vmem:[#allocation73_spill] sm:$0xff]  ;;  %v9162_v13 = vld [vmem:[#allocation16_spill] sm:$0xff]  ;;  %v7770_v23 = vld [vmem:[#allocation5 + $0x960] ss:$12 sps:$4 sm:$0xff]   ;;  %5590 = vmatprep.mubr.f32.mxu1 %v5191_v40 }
 0x391   :  { %9159 = vst [vmem:[#allocation75_spill] sm:$0xff] %v8771_v30  ;;  %v5071_v26 = vmax.f32 %v4483_v41, 0.0  ;;  %3637 = vmatmul.mubr.bf16.gmra.mrb[140].mxu0 %v7767_v19  ;;  %v9163_v19 = vld [vmem:[#allocation14_spill] sm:$0xff] }
 0x392   :  { %v5149_v32 = vmax.f32 %v4795_v44, 0.0  ;;  %3644 = vmatprep.mubr.bf16.mxu0 %v7772_v10 }
 0x393   :  { %v7094_v4 = vpack.c.bf16 %v5071_v26, %v5070_v62  ;;  %v9164_v62 = vld [vmem:[#allocation74_spill] sm:$0xff]  ;;  %v9165_v26 = vld [vmem:[#allocation17_spill] sm:$0xff] }
 0x394   :  { %v8773_v49 = vpack.c.bf16 %v5149_v32, %v5148_v47  ;;  %v3430_v60 = vpop.f32.mrb[36].mxu0  ;;  %v7775_v47 = vld [vmem:[#allocation5 + $0x97c] ss:$12 sps:$4 sm:$0xff]  }
 0x395   :  { %v6936_v56 = vpop.f32.mrb[36].mxu1  ;;  %v4488_v5 = vadd.f32 %v9161_v36, %v3430_v60  ;;  %v3432_v3 = vpop.f32.mrb[37].mxu0  ;;  %7095 = vmatprep.subr.bf16.mxu1 %v7094_v4  ;;  %v9166_v36 = vld [vmem:[#allocation15_spill] sm:$0xff] }
 0x396   :  { %9160 = vst [vmem:[#allocation13_spill] sm:$0xff] %v8773_v49  ;;  %v4808_v30 = vadd.f32 %v6936_v56, %v9162_v13  ;;  %v4799_v35 = vpop.f32.mrb[37].mxu1  ;;  %v3433_v44 = vpop.f32.mrb[38].mxu0  ;;  %7097 = vmatpush3.bf16.msra.mxu1 %v8675_v39 }
 0x397   :  { %v4800_v41 = vadd.f32 %v4799_v35, %v9163_v19  ;;  %v6937_v10 = vpop.f32.mrb[38].mxu1  ;;  %v4491_v42 = vadd.f32 %v9164_v62, %v3433_v44  ;;  %v3435_v43 = vpop.f32.mrb[39].mxu0  ;;  %v5072_v3 = vmax.f32 %v4488_v5, 0.0 }
 0x398   :  { %v4811_v32 = vadd.f32 %v6937_v10, %v9165_v26  ;;  %v4802_v60 = vpop.f32.mrb[39].mxu1  ;;  %v5152_v13 = vmax.f32 %v4808_v30, 0.0  ;;  %v9167_v26 = vld [vmem:[#allocation20_spill] sm:$0xff]  ;;  %v7773_v30 = vld [vmem:[#allocation5 + $0x978] ss:$12 sps:$4 sm:$0xff]  }
 0x399   :  { %v4803_v56 = vadd.f32 %v4802_v60, %v9166_v36  ;;  %v5073_v4 = vmax.f32 %v4491_v42, 0.0  ;;  %3645 = vmatmul.mubr.bf16.gmra.mrb[144].mxu0 %v7770_v23  ;;  %v5150_v40 = vmax.f32 %v4800_v41, 0.0  ;;  %v9168_v42 = vld [vmem:[#allocation18_spill] sm:$0xff]  ;;  %v9169_v36 = vld [vmem:[#allocation21_spill] sm:$0xff] }
 0x39a   :  { %v5153_v49 = vmax.f32 %v4811_v32, 0.0  ;;  %3652 = vmatprep.mubr.bf16.mxu0 %v7775_v47 }
 0x39b   :  { %v5151_v35 = vmax.f32 %v4803_v56, 0.0  ;;  %v7098_v19 = vpack.c.bf16 %v5073_v4, %v5072_v3 }
 0x39c   :  { %v8782_v34 = vpack.c.bf16 %v5153_v49, %v5152_v13  ;;  %v3438_v44 = vpop.f32.mrb[40].mxu0  ;;  %v7778_v49 = vld [vmem:[#allocation5 + $0x994] ss:$12 sps:$4 sm:$0xff]  }
 0x39d   :  { %v8784_v39 = vpack.c.bf16 %v5151_v35, %v5150_v40  ;;  %v6940_v62 = vpop.f32.mrb[40].mxu1  ;;  %v4496_v10 = vadd.f32 %v8511_v53, %v3438_v44  ;;  %v3440_v60 = vpop.f32.mrb[41].mxu0  ;;  %7099 = vmatprep.subr.bf16.mxu1 %v7098_v19  ;;  %v9170_v53 = vld [vmem:[#allocation19_spill] sm:$0xff] }
 0x39e   :  { %v4824_v43 = vadd.f32 %v6940_v62, %v9167_v26  ;;  %v4815_v5 = vpop.f32.mrb[41].mxu1  ;;  %v3441_v41 = vpop.f32.mrb[42].mxu0  ;;  %7101 = vmatpush3.bf16.msra.mxu1 %v8690_v33 }
 0x39f   :  { %v4816_v23 = vadd.f32 %v4815_v5, %v9168_v42  ;;  %v6941_v32 = vpop.f32.mrb[42].mxu1  ;;  %v4499_v47 = vadd.f32 %v8516_v45, %v3441_v41  ;;  %v3443_v3 = vpop.f32.mrb[43].mxu0  ;;  %v5074_v40 = vmax.f32 %v4496_v10, 0.0 }
 0x3a0   :  { %v4827_v56 = vadd.f32 %v6941_v32, %v9169_v36  ;;  %v4818_v13 = vpop.f32.mrb[43].mxu1  ;;  %v5156_v35 = vmax.f32 %v4824_v43, 0.0  ;;  %v9171_v32 = vld [vmem:[#allocation24_spill] sm:$0xff] }
 0x3a1   :  { %v4819_v4 = vadd.f32 %v4818_v13, %v9170_v53  ;;  %v5075_v44 = vmax.f32 %v4499_v47, 0.0  ;;  %3653 = vmatmul.mubr.bf16.gmra.mrb[148].mxu0 %v7773_v30  ;;  %v5154_v62 = vmax.f32 %v4816_v23, 0.0  ;;  %v7776_v43 = vld [vmem:[#allocation5 + $0x990] ss:$12 sps:$4 sm:$0xff]   ;;  %v9172_v47 = vld [vmem:[#allocation22_spill] sm:$0xff] }
 0x3a2   :  { %v5157_v19 = vmax.f32 %v4827_v56, 0.0  ;;  %3660 = vmatprep.mubr.bf16.mxu0 %v7778_v49  ;;  %v7781_v49 = vld [vmem:[#allocation5 + $0x9ac] ss:$12 sps:$4 sm:$0xff]  }
 0x3a3   :  { %v5155_v26 = vmax.f32 %v4819_v4, 0.0  ;;  %v7102_v60 = vpack.c.bf16 %v5075_v44, %v5074_v40  ;;  %v9173_v53 = vld [vmem:[#allocation25_spill] sm:$0xff] }
 0x3a4   :  { %v8793_v5 = vpack.c.bf16 %v5157_v19, %v5156_v35  ;;  %v3446_v45 = vpop.f32.mrb[44].mxu0 }
 0x3a5   :  { %v8795_v33 = vpack.c.bf16 %v5155_v26, %v5154_v62  ;;  %v6944_v42 = vpop.f32.mrb[44].mxu1  ;;  %v4504_v41 = vadd.f32 %v8508_v18, %v3446_v45  ;;  %v3448_v3 = vpop.f32.mrb[45].mxu0  ;;  %7103 = vmatprep.subr.bf16.mxu1 %v7102_v60  ;;  %v9174_v18 = vld [vmem:[#allocation23_spill] sm:$0xff] }
 0x3a6   :  { %v4840_v36 = vadd.f32 %v6944_v42, %v9171_v32  ;;  %v4831_v10 = vpop.f32.mrb[45].mxu1  ;;  %v3449_v23 = vpop.f32.mrb[46].mxu0  ;;  %7105 = vmatpush3.bf16.msra.mxu1 %v8703_v63 }
 0x3a7   :  { %v4832_v30 = vadd.f32 %v4831_v10, %v9172_v47  ;;  %v6945_v56 = vpop.f32.mrb[46].mxu1  ;;  %v4507_v13 = vadd.f32 %v8513_v27, %v3449_v23  ;;  %v3451_v40 = vpop.f32.mrb[47].mxu0  ;;  %v5076_v19 = vmax.f32 %v4504_v41, 0.0  ;;  %v9175_v23 = vld [vmem:[#allocation28_spill] sm:$0xff] }
 0x3a8   :  { %v4843_v4 = vadd.f32 %v6945_v56, %v9173_v53  ;;  %v4834_v35 = vpop.f32.mrb[47].mxu1  ;;  %v5160_v62 = vmax.f32 %v4840_v36, 0.0  ;;  %v7779_v36 = vld [vmem:[#allocation5 + $0x9a8] ss:$12 sps:$4 sm:$0xff]  }
 0x3a9   :  { %v4835_v44 = vadd.f32 %v4834_v35, %v9174_v18  ;;  %v5077_v26 = vmax.f32 %v4507_v13, 0.0  ;;  %3661 = vmatmul.mubr.bf16.gmra.mrb[152].mxu0 %v7776_v43  ;;  %v5158_v45 = vmax.f32 %v4832_v30, 0.0  ;;  %v9176_v13 = vld [vmem:[#allocation26_spill] sm:$0xff]  ;;  %v9177_v35 = vld [vmem:[#allocation29_spill] sm:$0xff] }
 0x3aa   :  { %v5161_v60 = vmax.f32 %v4843_v4, 0.0  ;;  %3668 = vmatprep.mubr.bf16.mxu0 %v7781_v49  ;;  %v7784_v49 = vld [vmem:[#allocation5 + $0x9c4] ss:$12 sps:$4 sm:$0xff]  }
 0x3ab   :  { %v5159_v42 = vmax.f32 %v4835_v44, 0.0  ;;  %v7106_v32 = vpack.c.bf16 %v5077_v26, %v5076_v19 }
 0x3ac   :  { %v8804_v3 = vpack.c.bf16 %v5161_v60, %v5160_v62  ;;  %v3454_v27 = vpop.f32.mrb[48].mxu0 }
 0x3ad   :  { %v8806_v63 = vpack.c.bf16 %v5159_v42, %v5158_v45  ;;  %v6948_v10 = vpop.f32.mrb[48].mxu1  ;;  %v4512_v47 = vadd.f32 %v8525_v12, %v3454_v27  ;;  %v3456_v53 = vpop.f32.mrb[49].mxu0  ;;  %7107 = vmatprep.subr.bf16.mxu1 %v7106_v32  ;;  %v9178_v12 = vld [vmem:[#allocation27_spill] sm:$0xff] }
 0x3ae   :  { %v4856_v56 = vadd.f32 %v6948_v10, %v9175_v23  ;;  %v4847_v41 = vpop.f32.mrb[49].mxu1  ;;  %v3457_v30 = vpop.f32.mrb[50].mxu0  ;;  %7109 = vmatpush3.bf16.msra.mxu1 %v8715_v52 }
 0x3af   :  { %v4848_v43 = vadd.f32 %v4847_v41, %v9176_v13  ;;  %v6949_v4 = vpop.f32.mrb[50].mxu1  ;;  %v4515_v40 = vadd.f32 %v8532_v31, %v3457_v30  ;;  %v3459_v44 = vpop.f32.mrb[51].mxu0  ;;  %v5078_v26 = vmax.f32 %v4512_v47, 0.0  ;;  %v9179_v13 = vld [vmem:[#allocation32_spill] sm:$0xff] }
 0x3b0   :  { %v4859_v18 = vadd.f32 %v6949_v4, %v9177_v35  ;;  %v4850_v19 = vpop.f32.mrb[51].mxu1  ;;  %v5164_v60 = vmax.f32 %v4856_v56, 0.0  ;;  %v7782_v56 = vld [vmem:[#allocation5 + $0x9c0] ss:$12 sps:$4 sm:$0xff]   ;;  %v9181_v44 = vld [vmem:[#allocation33_spill] sm:$0xff] }
 0x3b1   :  { %v4851_v62 = vadd.f32 %v4850_v19, %v9178_v12  ;;  %v5079_v45 = vmax.f32 %v4515_v40, 0.0  ;;  %3669 = vmatmul.mubr.bf16.gmra.mrb[156].mxu0 %v7779_v36  ;;  %v5162_v32 = vmax.f32 %v4848_v43, 0.0  ;;  %v9180_v40 = vld [vmem:[#allocation30_spill] sm:$0xff] }
 0x3b2   :  { %v5165_v42 = vmax.f32 %v4859_v18, 0.0  ;;  %3676 = vmatprep.mubr.bf16.mxu0 %v7784_v49  ;;  %v7787_v49 = vld [vmem:[#allocation5 + $0x9dc] ss:$12 sps:$4 sm:$0xff]  }
 0x3b3   :  { %v5163_v27 = vmax.f32 %v4851_v62, 0.0  ;;  %v7110_v10 = vpack.c.bf16 %v5079_v45, %v5078_v26 }
 0x3b4   :  { %v8815_v23 = vpack.c.bf16 %v5165_v42, %v5164_v60  ;;  %v3462_v31 = vpop.f32.mrb[52].mxu0 }
 0x3b5   :  { %v8817_v52 = vpack.c.bf16 %v5163_v27, %v5162_v32  ;;  %v6952_v53 = vpop.f32.mrb[52].mxu1  ;;  %v4520_v41 = vadd.f32 %v8522_v21, %v3462_v31  ;;  %v3464_v4 = vpop.f32.mrb[53].mxu0  ;;  %7111 = vmatprep.subr.bf16.mxu1 %v7110_v10  ;;  %v9182_v21 = vld [vmem:[#allocation31_spill] sm:$0xff] }
 0x3b6   :  { %v4872_v30 = vadd.f32 %v6952_v53, %v9179_v13  ;;  %v4863_v47 = vpop.f32.mrb[53].mxu1  ;;  %v3465_v43 = vpop.f32.mrb[54].mxu0  ;;  %7113 = vmatpush3.bf16.msra.mxu1 %v8727_v50 }
 0x3b7   :  { %v4864_v36 = vadd.f32 %v4863_v47, %v9180_v40  ;;  %v6953_v35 = vpop.f32.mrb[54].mxu1  ;;  %v4523_v18 = vadd.f32 %v8528_v61, %v3465_v43  ;;  %v3467_v12 = vpop.f32.mrb[55].mxu0  ;;  %v5080_v60 = vmax.f32 %v4520_v41, 0.0  ;;  %v9183_v47 = vld [vmem:[#allocation36_spill] sm:$0xff] }
 0x3b8   :  { %v4875_v19 = vadd.f32 %v6953_v35, %v9181_v44  ;;  %v4866_v62 = vpop.f32.mrb[55].mxu1  ;;  %v5168_v45 = vmax.f32 %v4872_v30, 0.0  ;;  %v7785_v30 = vld [vmem:[#allocation5 + $0x9d8] ss:$12 sps:$4 sm:$0xff]  }
 0x3b9   :  { %v4867_v26 = vadd.f32 %v4866_v62, %v9182_v21  ;;  %v5081_v42 = vmax.f32 %v4523_v18, 0.0  ;;  %3677 = vmatmul.mubr.bf16.gmra.mrb[160].mxu0 %v7782_v56  ;;  %v5166_v27 = vmax.f32 %v4864_v36, 0.0  ;;  %v9184_v35 = vld [vmem:[#allocation34_spill] sm:$0xff] }
 0x3ba   :  { %v5169_v32 = vmax.f32 %v4875_v19, 0.0  ;;  %3684 = vmatprep.mubr.bf16.mxu0 %v7787_v49  ;;  %v7790_v49 = vld [vmem:[#allocation5 + $0x9f4] ss:$12 sps:$4 sm:$0xff]   ;;  %v9185_v19 = vld [vmem:[#allocation37_spill] sm:$0xff] }
 0x3bb   :  { %v5167_v10 = vmax.f32 %v4867_v26, 0.0  ;;  %v7114_v31 = vpack.c.bf16 %v5081_v42, %v5080_v60 }
 0x3bc   :  { %v8826_v53 = vpack.c.bf16 %v5169_v32, %v5168_v45  ;;  %v3470_v61 = vpop.f32.mrb[56].mxu0 }
 0x3bd   :  { %v8828_v50 = vpack.c.bf16 %v5167_v10, %v5166_v27  ;;  %v6956_v13 = vpop.f32.mrb[56].mxu1  ;;  %v4528_v4 = vadd.f32 %v8541_v37, %v3470_v61  ;;  %v3472_v43 = vpop.f32.mrb[57].mxu0  ;;  %7115 = vmatprep.subr.bf16.mxu1 %v7114_v31  ;;  %v9186_v37 = vld [vmem:[#allocation35_spill] sm:$0xff] }
 0x3be   :  { %v4888_v40 = vadd.f32 %v6956_v13, %v9183_v47  ;;  %v4879_v41 = vpop.f32.mrb[57].mxu1  ;;  %v3473_v36 = vpop.f32.mrb[58].mxu0  ;;  %7117 = vmatpush3.bf16.msra.mxu1 %v8739_v25  ;;  %v9187_v43 = vld [vmem:[#allocation40_spill] sm:$0xff] }
 0x3bf   :  { %v4880_v56 = vadd.f32 %v4879_v41, %v9184_v35  ;;  %v6957_v18 = vpop.f32.mrb[58].mxu1  ;;  %v4531_v44 = vadd.f32 %v8548_v51, %v3473_v36  ;;  %v3475_v62 = vpop.f32.mrb[59].mxu0  ;;  %v5082_v60 = vmax.f32 %v4528_v4, 0.0  ;;  %v9188_v36 = vld [vmem:[#allocation38_spill] sm:$0xff] }
 0x3c0   :  { %v4891_v12 = vadd.f32 %v6957_v18, %v9185_v19  ;;  %v4882_v21 = vpop.f32.mrb[59].mxu1  ;;  %v5172_v45 = vmax.f32 %v4888_v40, 0.0  ;;  %v7788_v40 = vld [vmem:[#allocation5 + $0x9f0] ss:$12 sps:$4 sm:$0xff]  }
 0x3c1   :  { %v4883_v26 = vadd.f32 %v4882_v21, %v9186_v37  ;;  %v5083_v42 = vmax.f32 %v4531_v44, 0.0  ;;  %3685 = vmatmul.mubr.bf16.gmra.mrb[164].mxu0 %v7785_v30  ;;  %v5170_v27 = vmax.f32 %v4880_v56, 0.0  ;;  %v9189_v19 = vld [vmem:[#allocation41_spill] sm:$0xff] }
 0x3c2   :  { %v5173_v32 = vmax.f32 %v4891_v12, 0.0  ;;  %3692 = vmatprep.mubr.bf16.mxu0 %v7790_v49  ;;  %v7793_v49 = vld [vmem:[#allocation5 + $0xa0c] ss:$12 sps:$4 sm:$0xff]  }
 0x3c3   :  { %v5171_v10 = vmax.f32 %v4883_v26, 0.0  ;;  %v7118_v31 = vpack.c.bf16 %v5083_v42, %v5082_v60 }
 0x3c4   :  { %v8837_v61 = vpack.c.bf16 %v5173_v32, %v5172_v45  ;;  %v3478_v51 = vpop.f32.mrb[60].mxu0 }
 0x3c5   :  { %v8839_v25 = vpack.c.bf16 %v5171_v10, %v5170_v27  ;;  %v6960_v13 = vpop.f32.mrb[60].mxu1  ;;  %v4536_v47 = vadd.f32 %v8538_v38, %v3478_v51  ;;  %v3480_v35 = vpop.f32.mrb[61].mxu0  ;;  %7119 = vmatprep.subr.bf16.mxu1 %v7118_v31  ;;  %v9190_v38 = vld [vmem:[#allocation39_spill] sm:$0xff] }
 0x3c6   :  { %v4904_v41 = vadd.f32 %v6960_v13, %v9187_v43  ;;  %v4895_v4 = vpop.f32.mrb[61].mxu1  ;;  %v3481_v56 = vpop.f32.mrb[62].mxu0  ;;  %7121 = vmatpush3.bf16.msra.mxu1 %v8751_v28  ;;  %v9191_v43 = vld [vmem:[#allocation44_spill] sm:$0xff] }
 0x3c7   :  { %v4896_v30 = vadd.f32 %v4895_v4, %v9188_v36  ;;  %v6961_v18 = vpop.f32.mrb[62].mxu1  ;;  %v4539_v44 = vadd.f32 %v8544_v57, %v3481_v56  ;;  %v3483_v62 = vpop.f32.mrb[63].mxu0  ;;  %v5084_v26 = vmax.f32 %v4536_v47, 0.0  ;;  %v9192_v36 = vld [vmem:[#allocation42_spill] sm:$0xff] }
 0x3c8   :  { %v4907_v12 = vadd.f32 %v6961_v18, %v9189_v19  ;;  %v4898_v21 = vpop.f32.mrb[63].mxu1  ;;  %v5176_v60 = vmax.f32 %v4904_v41, 0.0  ;;  %v7791_v41 = vld [vmem:[#allocation5 + $0xa08] ss:$12 sps:$4 sm:$0xff]   ;;  %v7796_v18 = vld [vmem:[#allocation5 + $0xa24] ss:$12 sps:$4 sm:$0xff]  }
 0x3c9   :  { %v4899_v37 = vadd.f32 %v4898_v21, %v9190_v38  ;;  %v5085_v45 = vmax.f32 %v4539_v44, 0.0  ;;  %3693 = vmatmul.mubr.bf16.gmra.mrb[168].mxu0 %v7788_v40  ;;  %v5174_v32 = vmax.f32 %v4896_v30, 0.0  ;;  %v9193_v19 = vld [vmem:[#allocation45_spill] sm:$0xff]  ;;  %v5207_v21 = vld [vmem:[#allocation7 + $0xc8] sm:$0xff] }
 0x3ca   :  { %v5177_v42 = vmax.f32 %v4907_v12, 0.0  ;;  %3700 = vmatprep.mubr.bf16.mxu0 %v7793_v49  ;;  %v5190_v49 = vld [vmem:[#allocation7 + $0x40] sm:$0xff]  ;;  %v9194_v38 = vld [vmem:[#allocation43_spill] sm:$0xff] }
 0x3cb   :  { %v5175_v27 = vmax.f32 %v4899_v37, 0.0  ;;  %v7122_v10 = vpack.c.bf16 %v5085_v45, %v5084_v26 }
 0x3cc   :  { %v8848_v31 = vpack.c.bf16 %v5177_v42, %v5176_v60  ;;  %v3486_v57 = vpop.f32.mrb[64].mxu0 }
 0x3cd   :  { %v8850_v28 = vpack.c.bf16 %v5175_v27, %v5174_v32  ;;  %v6964_v51 = vpop.f32.mrb[64].mxu1  ;;  %v4544_v13 = vadd.f32 %v8557_v54, %v3486_v57  ;;  %v3488_v4 = vpop.f32.mrb[65].mxu0  ;;  %7123 = vmatprep.subr.bf16.mxu1 %v7122_v10  ;;  %v5193_v57 = vld [vmem:[#allocation7 + $0x58] sm:$0xff] }
 0x3ce   :  { %v4920_v35 = vadd.f32 %v6964_v51, %v9191_v43  ;;  %v4911_v47 = vpop.f32.mrb[65].mxu1  ;;  %v3489_v30 = vpop.f32.mrb[66].mxu0  ;;  %7125 = vmatpush3.bf16.msra.mxu1 %v8763_v48  ;;  %v5206_v48 = vld [vmem:[#allocation7 + $0xc0] sm:$0xff] }
 0x3cf   :  { %v4912_v40 = vadd.f32 %v4911_v47, %v9192_v36  ;;  %v6965_v56 = vpop.f32.mrb[66].mxu1  ;;  %v4547_v44 = vadd.f32 %v8564_v17, %v3489_v30  ;;  %v3491_v62 = vpop.f32.mrb[67].mxu0  ;;  %v5086_v26 = vmax.f32 %v4544_v13, 0.0  ;;  %v7794_v4 = vld [vmem:[#allocation5 + $0xa20] ss:$12 sps:$4 sm:$0xff]  }
 0x3d0   :  { %v4923_v12 = vadd.f32 %v6965_v56, %v9193_v19  ;;  %v4914_v54 = vpop.f32.mrb[67].mxu1  ;;  %v5180_v60 = vmax.f32 %v4920_v35, 0.0  ;;  %v7802_v62 = vld [vmem:[#allocation5 + $0xa54] ss:$12 sps:$4 sm:$0xff]  }
 0x3d1   :  { %v4915_v37 = vadd.f32 %v4914_v54, %v9194_v38  ;;  %v5087_v45 = vmax.f32 %v4547_v44, 0.0  ;;  %3701 = vmatmul.mubr.bf16.gmra.mrb[172].mxu0 %v7791_v41  ;;  %5591 = vmatmul.mubr.f32.vlgmr.msra.gmra.mrb[84].mxu1 %v5190_v49  ;;  %v5178_v32 = vmax.f32 %v4912_v40, 0.0  ;;  %v7799_v41 = vld [vmem:[#allocation5 + $0xa3c] ss:$12 sps:$4 sm:$0xff]  }
 0x3d2   :  { %v5181_v42 = vmax.f32 %v4923_v12, 0.0  ;;  %3708 = vmatprep.mubr.bf16.mxu0 %v7796_v18  ;;  %5595 = vmatprep.mubr.f32.mxu1 %v5207_v21 }
 0x3d3   :  { %v5179_v27 = vmax.f32 %v4915_v37, 0.0  ;;  %v8859_v10 = vpack.c.bf16 %v5087_v45, %v5086_v26  ;;  %v5214_v26 = vld [vmem:[%s9023_s3] sm:$0xff] }
 0x3d4   :  { %v8861_v17 = vpack.c.bf16 %v5181_v42, %v5180_v60  ;;  %v3494_v43 = vpop.f32.mrb[68].mxu0  ;;  %5218 = vperm.xlu0 %7266, %v5214_v26   ;;  %v7800_v42 = vld [vmem:[#allocation5 + $0xa50] ss:$12 sps:$4 sm:$0xff]  }
 0x3d5   :  { %v8863_v51 = vpack.c.bf16 %v5179_v27, %v5178_v32  ;;  %v4552_v13 = vadd.f32 %v8554_v22, %v3494_v43  ;;  %v3496_v35 = vpop.f32.mrb[69].mxu0  ;;  %5596 = vmatmul.mubr.f32.gmra.mrb[86].mxu1 %v5206_v48  ;;  %v7797_v22 = vld [vmem:[#allocation5 + $0xa38] ss:$12 sps:$4 sm:$0xff]  }
 0x3d6   :  { %v3497_v47 = vpop.f32.mrb[70].mxu0  ;;  %5665 = vmatprep.mubr.f32.mxu1 %v5193_v57 }
 0x3d7   :  { %v4555_v36 = vadd.f32 %v8560_v6, %v3497_v47  ;;  %v3499_v40 = vpop.f32.mrb[71].mxu0  ;;  %v5088_v30 = vmax.f32 %v4552_v13, 0.0 }
 0x3d9   :  { %v5089_v56 = vmax.f32 %v4555_v36, 0.0  ;;  %3709 = vmatmul.mubr.bf16.gmra.mrb[176].mxu0 %v7794_v4 }
 0x3da   :  { %3716 = vmatprep.mubr.bf16.mxu0 %v7799_v41 }
 0x3db   :  { %v8867_v18 = vpack.c.bf16 %v5089_v56, %v5088_v30 }
 0x3dc   :  { %v3502_v49 = vpop.f32.mrb[72].mxu0 }
 0x3dd   :  { %v4560_v44 = vadd.f32 %v8573_v14, %v3502_v49  ;;  %v3504_v19 = vpop.f32.mrb[73].mxu0 }
 0x3de   :  { %v3505_v12 = vpop.f32.mrb[74].mxu0 }
 0x3df   :  { %v4563_v54 = vadd.f32 %v8580_v46, %v3505_v12  ;;  %v3507_v21 = vpop.f32.mrb[75].mxu0  ;;  %v5090_v38 = vmax.f32 %v4560_v44, 0.0 }
 0x3e1   :  { %v5091_v37 = vmax.f32 %v4563_v54, 0.0  ;;  %3717 = vmatmul.mubr.bf16.gmra.mrb[180].mxu0 %v7797_v22 }
 0x3e2   :  { %3724 = vmatprep.mubr.bf16.mxu0 %v7802_v62 }
 0x3e3   :  { %v8871_v6 = vpack.c.bf16 %v5091_v37, %v5090_v38 }
 0x3e4   :  { %v3510_v60 = vpop.f32.mrb[76].mxu0 }
 0x3e5   :  { %v4568_v14 = vadd.f32 %v8570_v59, %v3510_v60  ;;  %v3512_v45 = vpop.f32.mrb[77].mxu0 }
 0x3e6   :  { %v3513_v32 = vpop.f32.mrb[78].mxu0 }
 0x3e7   :  { %v4571_v46 = vadd.f32 %v8576_v7, %v3513_v32  ;;  %v3515_v27 = vpop.f32.mrb[79].mxu0  ;;  %v5092_v48 = vmax.f32 %v4568_v14, 0.0 }
 0x3e9   :  { %v5093_v57 = vmax.f32 %v4571_v46, 0.0  ;;  %3725 = vmatmul.mubr.bf16.gmra.mrb[184].mxu0 %v7800_v42 }
 0x3eb   :  { %v8878_v43 = vpack.c.bf16 %v5093_v57, %v5092_v48 }
 0x3ec   :  { %v3518_v13 = vpop.f32.mrb[80].mxu0 }
 0x3ed   :  { %v4576_v35 = vadd.f32 %v8589_v20, %v3518_v13  ;;  %v3520_v4 = vpop.f32.mrb[81].mxu0 }
 0x3ee   :  { %v3521_v47 = vpop.f32.mrb[82].mxu0 }
 0x3ef   :  { %v4579_v41 = vadd.f32 %v8596_v9, %v3521_v47  ;;  %v3523_v36 = vpop.f32.mrb[83].mxu0  ;;  %v5094_v59 = vmax.f32 %v4576_v35, 0.0 }
 0x3f0   :  { %v9196_v36 = vld [vmem:[#allocation53_spill] sm:$0xff] }
 0x3f1   :  { %v5095_v40 = vmax.f32 %v4579_v41, 0.0 }
 0x3f3   :  { %v8882_v30 = vpack.c.bf16 %v5095_v40, %v5094_v59 }
 0x3f4   :  { %v3526_v56 = vpop.f32.mrb[84].mxu0 }
 0x3f5   :  { %v4584_v7 = vadd.f32 %v8586_v29, %v3526_v56  ;;  %v3528_v49 = vpop.f32.mrb[85].mxu0  ;;  %v5215_v29 = vld [vmem:[%s9023_s3 + $0x8] sm:$0xff]  ;;  %s7907_s3 = smov [#allocation8]  }
 0x3f6   :  { %v3529_v44 = vpop.f32.mrb[86].mxu0  ;;  %5223 = vperm.xlu0 %7266, %v5215_v29   ;;  %s5833_s6 = sshll.u32 %s7907_s3, 4  ;;  %s5834_s6 = int_to_ptr.vmem [resolvable:$true] %s5833_s6 }
 0x3f7   :  { %v4587_v19 = vadd.f32 %v8592_v1, %v3529_v44  ;;  %v3531_v22 = vpop.f32.mrb[87].mxu0  ;;  %v5096_v12 = vmax.f32 %v4584_v7, 0.0  ;;  %v9197_v44 = vld [vmem:[#allocation52_spill] sm:$0xff]  ;;  %s7869_s7 = scalar_lea.vmem %s5834_s6, 256  ;;  %p7874_p11 = scmp.lt.s32.totalorder %s5834_s6, %s5834_s6 }
 0x3f8   :  { %p7870_p10 = scmp.ne.s32.totalorder %s5834_s6, %s7869_s7  ;;  %p7875_p12 = scmp.lt.s32.totalorder %s7869_s7, %s7869_s7 }
 0x3f9   :  { %v5097_v62 = vmax.f32 %v4587_v19, 0.0 }
 0x3fa   :  { %p7876_p13 = por %p7875_p12, %p7874_p11 }
 0x3fb   :  { %v8886_v20 = vpack.c.bf16 %v5097_v62, %v5096_v12  ;;  %v9198_v62 = vld [vmem:[#allocation47_spill] sm:$0xff] }
 0x3fc   :  { %v3534_v54 = vpop.f32.mrb[88].mxu0  ;;  %p7877_p0 = pnand %p7876_p13, %p7870_p10 }
 0x3fd   :  { %v4592_v9 = vadd.f32 %v8605_v24, %v3534_v54  ;;  %v3536_v21 = vpop.f32.mrb[89].mxu0  ;;  %v9195_v24 = vld [vmem:[#allocation46_spill] sm:$0xff] }
 0x3fe   :  { %v3537_v38 = vpop.f32.mrb[90].mxu0 }
 0x3ff   :  { %v4595_v37 = vadd.f32 %v8612_v58, %v3537_v38  ;;  %v3539_v26 = vpop.f32.mrb[91].mxu0  ;;  %v5098_v60 = vmax.f32 %v4592_v9, 0.0 }
 0x401   :  { %v5099_v14 = vmax.f32 %v4595_v37, 0.0 }
 0x403   :  { %v8893_v1 = vpack.c.bf16 %v5099_v14, %v5098_v60  ;;  %v9199_v14 = vld [vmem:[#allocation56_spill] sm:$0xff] }
 0x404   :  { %v3542_v45 = vpop.f32.mrb[92].mxu0 }
 0x405   :  { %v4600_v42 = vadd.f32 %v8602_v2, %v3542_v45  ;;  %v3544_v32 = vpop.f32.mrb[93].mxu0 }
 0x406   :  { %v3545_v46 = vpop.f32.mrb[94].mxu0 }
 0x407   :  { %v4603_v27 = vadd.f32 %v9195_v24, %v3545_v46  ;;  %v3547_v48 = vpop.f32.mrb[95].mxu0  ;;  %v5100_v57 = vmax.f32 %v4600_v42, 0.0 }
 0x409   :  { %v5101_v58 = vmax.f32 %v4603_v27, 0.0  ;;  %v9200_v27 = vld [vmem:[#allocation48_spill] sm:$0xff] }
 0x40b   :  { %v8897_v13 = vpack.c.bf16 %v5101_v58, %v5100_v57 }
 0x40c   :  { %v3550_v35 = vpop.f32.mrb[96].mxu0 }
 0x40d   :  { %v4608_v4 = vadd.f32 %v8621_v11, %v3550_v35  ;;  %v3552_v47 = vpop.f32.mrb[97].mxu0 }
 0x40e   :  { %v3553_v41 = vpop.f32.mrb[98].mxu0 }
 0x40f   :  { %v4611_v59 = vadd.f32 %v9196_v36, %v3553_v41  ;;  %v3555_v40 = vpop.f32.mrb[99].mxu0  ;;  %v5102_v56 = vmax.f32 %v4608_v4, 0.0 }
 0x411   :  { %v5103_v7 = vmax.f32 %v4611_v59, 0.0 }
 0x413   :  { %v7126_v2 = vpack.c.bf16 %v5103_v7, %v5102_v56 }
 0x414   :  { %v3558_v49 = vpop.f32.mrb[100].mxu0 }
 0x415   :  { %v4616_v19 = vadd.f32 %v9197_v44, %v3558_v49  ;;  %v3560_v22 = vpop.f32.mrb[101].mxu0  ;;  %7127 = vmatprep.subr.bf16.mxu1 %v7126_v2 }
 0x416   :  { %v3561_v12 = vpop.f32.mrb[102].mxu0  ;;  %7129 = vmatpush3.bf16.msra.mxu1 %v8859_v10 }
 0x417   :  { %v4619_v54 = vadd.f32 %v9198_v62, %v3561_v12  ;;  %v3563_v9 = vpop.f32.mrb[103].mxu0  ;;  %v5104_v11 = vmax.f32 %v4616_v19, 0.0 }
 0x419   :  { %v5105_v21 = vmax.f32 %v4619_v54, 0.0 }
 0x41b   :  { %v7130_v38 = vpack.c.bf16 %v5105_v21, %v5104_v11 }
 0x41c   :  { %v3566_v37 = vpop.f32.mrb[104].mxu0 }
 0x41d   :  { %v4624_v26 = vadd.f32 %v8637_v55, %v3566_v37  ;;  %v3568_v29 = vpop.f32.mrb[105].mxu0  ;;  %7131 = vmatprep.subr.bf16.mxu1 %v7130_v38  ;;  %v9201_v55 = vld [vmem:[#allocation54_spill] sm:$0xff] }
 0x41e   :  { %v3569_v60 = vpop.f32.mrb[106].mxu0  ;;  %7133 = vmatpush3.bf16.msra.mxu1 %v8867_v18 }
 0x41f   :  { %v4627_v45 = vadd.f32 %v9199_v14, %v3569_v60  ;;  %v3571_v42 = vpop.f32.mrb[107].mxu0  ;;  %v5106_v32 = vmax.f32 %v4624_v26, 0.0 }
 0x421   :  { %v5107_v46 = vmax.f32 %v4627_v45, 0.0 }
 0x423   :  { %v7134_v10 = vpack.c.bf16 %v5107_v46, %v5106_v32 }
 0x424   :  { %v3574_v24 = vpop.f32.mrb[108].mxu0 }
 0x425   :  { %v4632_v48 = vadd.f32 %v9200_v27, %v3574_v24  ;;  %v3576_v57 = vpop.f32.mrb[109].mxu0  ;;  %7135 = vmatprep.subr.bf16.mxu1 %v7134_v10  ;;  %v9205_v24 = vld [vmem:[#allocation55_spill] sm:$0xff] }
 0x426   :  { %v3577_v58 = vpop.f32.mrb[110].mxu0  ;;  %7137 = vmatpush3.bf16.msra.mxu1 %v8871_v6 }
 0x427   :  { %v4635_v35 = vadd.f32 %v9201_v55, %v3577_v58  ;;  %v3579_v4 = vpop.f32.mrb[111].mxu0  ;;  %v5108_v47 = vmax.f32 %v4632_v48, 0.0 }
 0x429   :  { %v5109_v41 = vmax.f32 %v4635_v35, 0.0  ;;  %v9206_v35 = vld [vmem:[#allocation51_spill] sm:$0xff] }
 0x42b   :  { %v7138_v18 = vpack.c.bf16 %v5109_v41, %v5108_v47 }
 0x42c   :  { %v3582_v36 = vpop.f32.mrb[112].mxu0 }
 0x42d   :  { %v4640_v59 = vadd.f32 %v8651_v8, %v3582_v36  ;;  %v3584_v40 = vpop.f32.mrb[113].mxu0  ;;  %7139 = vmatprep.subr.bf16.mxu1 %v7138_v18  ;;  %v5192_v18 = vld [vmem:[#allocation7 + $0x50] sm:$0xff] }
 0x42e   :  { %v3585_v56 = vpop.f32.mrb[114].mxu0  ;;  %7141 = vmatpush3.bf16.msra.mxu1 %v8878_v43  ;;  %v9207_v36 = vld [vmem:[#allocation60_spill] sm:$0xff] }
 0x42f   :  { %v4643_v7 = vadd.f32 %v8658_v0, %v3585_v56  ;;  %v3587_v2 = vpop.f32.mrb[115].mxu0  ;;  %v5110_v49 = vmax.f32 %v4640_v59, 0.0  ;;  %v9202_v0 = vld [vmem:[#allocation57_spill] sm:$0xff] }
 0x430   :  { %v5209_v56 = vld [vmem:[#allocation7 + $0xd8] sm:$0xff]  ;;  %v5208_v2 = vld [vmem:[#allocation7 + $0xd0] sm:$0xff] }
 0x431   :  { %v5111_v44 = vmax.f32 %v4643_v7, 0.0 }
 0x433   :  { %v7142_v6 = vpack.c.bf16 %v5111_v44, %v5110_v49  ;;  %v5195_v44 = vld [vmem:[#allocation7 + $0x68] sm:$0xff] }
 0x434   :  { %v3590_v19 = vpop.f32.mrb[116].mxu0 }
 0x435   :  { %v4648_v22 = vadd.f32 %v8648_v16, %v3590_v19  ;;  %v3592_v12 = vpop.f32.mrb[117].mxu0  ;;  %7143 = vmatprep.subr.bf16.mxu1 %v7142_v6  ;;  %v9203_v16 = vld [vmem:[#allocation50_spill] sm:$0xff]  ;;  %v9208_v19 = vld [vmem:[#allocation59_spill] sm:$0xff] }
 0x436   :  { %v3593_v62 = vpop.f32.mrb[118].mxu0  ;;  %7145 = vmatpush3.bf16.msra.mxu1 %v8882_v30 }
 0x437   :  { %v4651_v8 = vadd.f32 %v8654_v15, %v3593_v62  ;;  %v3595_v54 = vpop.f32.mrb[119].mxu0  ;;  %v5112_v9 = vmax.f32 %v4648_v22, 0.0  ;;  %v9204_v15 = vld [vmem:[#allocation49_spill] sm:$0xff] }
 0x439   :  { %v5113_v11 = vmax.f32 %v4651_v8, 0.0 }
 0x43b   :  { %v7146_v43 = vpack.c.bf16 %v5113_v11, %v5112_v9  ;;  %v6422_v9 = vpop.f32.mrb[68].mxu1 }
 0x43c   :  { %v3598_v21 = vpop.f32.mrb[120].mxu0  ;;  %v6423_v11 = vpop.f32.mrb[69].mxu1 }
 0x43d   :  { %v4656_v38 = vadd.f32 %v9202_v0, %v3598_v21  ;;  %v3600_v37 = vpop.f32.mrb[121].mxu0  ;;  %7147 = vmatprep.subr.bf16.mxu1 %v7146_v43  ;;  %v6424_v0 = vadd.f32 %v6423_v11, %v6422_v9 }
 0x43e   :  { %v3601_v26 = vpop.f32.mrb[122].mxu0  ;;  %7149 = vmatpush3.bf16.msra.mxu1 %v8886_v20 }
 0x43f   :  { %v4659_v29 = vadd.f32 %v9203_v16, %v3601_v26  ;;  %v3603_v60 = vpop.f32.mrb[123].mxu0  ;;  %v5114_v14 = vmax.f32 %v4656_v38, 0.0  ;;  %v6425_v38 = vpop.f32.mrb[70].mxu1 }
 0x440   :  { %v6426_v37 = vpop.f32.mrb[71].mxu1 }
 0x441   :  { %v5115_v45 = vmax.f32 %v4659_v29, 0.0  ;;  %v8931_v16 = vadd.f32 %v6426_v37, %v6425_v38  ;;  %v6460_v29 = vpop.f32.mrb[72].mxu1 }
 0x443   :  { %v7150_v30 = vpack.c.bf16 %v5115_v45, %v5114_v14  ;;  %v6461_v14 = vpop.f32.mrb[73].mxu1  ;;  %v9210_v45 = vld [vmem:[#allocation61_spill] sm:$0xff] }
 0x444   :  { %v3606_v42 = vpop.f32.mrb[124].mxu0 }
 0x445   :  { %v4664_v32 = vadd.f32 %v9204_v15, %v3606_v42  ;;  %v3608_v46 = vpop.f32.mrb[125].mxu0  ;;  %7151 = vmatprep.subr.bf16.mxu1 %v7150_v30  ;;  %v6462_v15 = vadd.f32 %v6461_v14, %v6460_v29 }
 0x446   :  { %v3609_v10 = vpop.f32.mrb[126].mxu0  ;;  %7153 = vmatpush3.bf16.msra.mxu1 %v8893_v1 }
 0x447   :  { %v4667_v27 = vadd.f32 %v9205_v24, %v3609_v10  ;;  %v3611_v48 = vpop.f32.mrb[127].mxu0  ;;  %v5116_v57 = vmax.f32 %v4664_v32, 0.0  ;;  %v6463_v32 = vpop.f32.mrb[74].mxu1  ;;  %v9211_v24 = vld [vmem:[#allocation65_spill] sm:$0xff] }
 0x448   :  { %v6464_v10 = vpop.f32.mrb[75].mxu1 }
 0x449   :  { %v5117_v58 = vmax.f32 %v4667_v27, 0.0 }
 0x44b   :  { %v7154_v20 = vpack.c.bf16 %v5117_v58, %v5116_v57  ;;  %v6465_v57 = vadd.f32 %v6464_v10, %v6463_v32  ;;  %v6498_v58 = vpop.f32.mrb[76].mxu1 }
 0x44c   :  { %v3614_v55 = vpop.f32.mrb[128].mxu0 }
 0x44d   :  { %v4672_v4 = vadd.f32 %v9206_v35, %v3614_v55  ;;  %v3616_v47 = vpop.f32.mrb[129].mxu0  ;;  %7155 = vmatprep.subr.bf16.mxu1 %v7154_v20  ;;  %v6499_v20 = vpop.f32.mrb[77].mxu1 }
 0x44e   :  { %v3617_v41 = vpop.f32.mrb[130].mxu0  ;;  %7157 = vmatpush3.bf16.msra.mxu1 %v8897_v13  ;;  %v9209_v13 = vld [vmem:[#allocation58_spill] sm:$0xff]  ;;  %v6501_v47 = vpop.f32.mrb[78].mxu1 }
 0x44f   :  { %v4675_v59 = vadd.f32 %v9207_v36, %v3617_v41  ;;  %v3619_v40 = vpop.f32.mrb[131].mxu0  ;;  %v5118_v1 = vmax.f32 %v4672_v4, 0.0  ;;  %v6500_v4 = vadd.f32 %v6499_v20, %v6498_v58  ;;  %v6502_v41 = vpop.f32.mrb[79].mxu1 }
 0x450   :  { %v6536_v40 = vpop.f32.mrb[80].mxu1 }
 0x451   :  { %v5119_v7 = vmax.f32 %v4675_v59, 0.0  ;;  %5666 = vmatmul.mubr.f32.vlgmr.msra.gmra.mrb[88].mxu1 %v5192_v18  ;;  %v6503_v59 = vadd.f32 %v6502_v41, %v6501_v47 }
 0x452   :  { %5670 = vmatprep.mubr.f32.mxu1 %v5209_v56 }
 0x453   :  { %v8925_v49 = vpack.c.bf16 %v5119_v7, %v5118_v1  ;;  %v5219_v36 = vpop.permute.xlu0 %5218  ;;  %v6537_v7 = vpop.f32.mrb[81].mxu1 }
 0x454   :  { %v3622_v6 = vpop.f32.mrb[132].mxu0  ;;  %v5293_v1 = vadd.f32 %v6424_v0, %v5219_v36 }
 0x455   :  { %v4680_v22 = vadd.f32 %v9208_v19, %v3622_v6  ;;  %v3624_v12 = vpop.f32.mrb[133].mxu0  ;;  %5671 = vmatmul.mubr.f32.gmra.mrb[90].mxu1 %v5208_v2  ;;  %v9212_v2 = vld [vmem:[#allocation62_spill] sm:$0xff]  ;;  %v6538_v19 = vadd.f32 %v6537_v7, %v6536_v40 }
 0x456   :  { %v3625_v62 = vpop.f32.mrb[134].mxu0  ;;  %5740 = vmatprep.mubr.f32.mxu1 %v5195_v44 }
 0x457   :  { %v4683_v8 = vadd.f32 %v9209_v13, %v3625_v62  ;;  %v3627_v54 = vpop.f32.mrb[135].mxu0  ;;  %v5120_v43 = vmax.f32 %v4680_v22, 0.0  ;;  %v5368_v62 = vadd.f32 %v6462_v15, %v5293_v1  ;;  %v9218_v1 = vld [vmem:[#allocation68_spill] sm:$0xff] }
 0x459   :  { %v5121_v21 = vmax.f32 %v4683_v8, 0.0  ;;  %v9213_v8 = vld [vmem:[#allocation63_spill] sm:$0xff] }
 0x45b   :  { %v8929_v26 = vpack.c.bf16 %v5121_v21, %v5120_v43  ;;  %v5443_v43 = vadd.f32 %v6500_v4, %v5368_v62 }
 0x45c   :  { %v3630_v60 = vpop.f32.mrb[136].mxu0 }
 0x45d   :  { %v4688_v30 = vadd.f32 %v9210_v45, %v3630_v60  ;;  %v3632_v42 = vpop.f32.mrb[137].mxu0  ;;  %v8939_v37 = vadd.f32 %v6538_v19, %v5443_v43  ;;  %v9214_v60 = vld [vmem:[#allocation64_spill] sm:$0xff] }
 0x45e   :  { %v3633_v46 = vpop.f32.mrb[138].mxu0  ;;  %v9215_v42 = vld [vmem:[#allocation66_spill] sm:$0xff] }
 0x45f   :  { %v4691_v27 = vadd.f32 %v9211_v24, %v3633_v46  ;;  %v3635_v48 = vpop.f32.mrb[139].mxu0  ;;  %v5122_v55 = vmax.f32 %v4688_v30, 0.0 }
 0x460   :  { %v9216_v48 = vld [vmem:[#allocation76_spill] sm:$0xff] }
 0x461   :  { %v5123_v35 = vmax.f32 %v4691_v27, 0.0 }
 0x462   :  { %v6539_v22 = vpop.f32.mrb[82].mxu1 }
 0x463   :  { %v8935_v18 = vpack.c.bf16 %v5123_v35, %v5122_v55  ;;  %v6540_v13 = vpop.f32.mrb[83].mxu1  ;;  %v9217_v35 = vld [vmem:[#allocation77_spill] sm:$0xff] }
 0x464   :  { %v3638_v56 = vpop.f32.mrb[140].mxu0  ;;  %v6541_v11 = vadd.f32 %v6540_v13, %v6539_v22 }
 0x465   :  { %v4696_v44 = vadd.f32 %v9212_v2, %v3638_v56  ;;  %v3640_v6 = vpop.f32.mrb[141].mxu0 }
 0x466   :  { %v3641_v12 = vpop.f32.mrb[142].mxu0  ;;  %v9219_v6 = vld [vmem:[#allocation80_spill] sm:$0xff] }
 0x467   :  { %v4699_v54 = vadd.f32 %v9213_v8, %v3641_v12  ;;  %v3643_v9 = vpop.f32.mrb[143].mxu0  ;;  %v5124_v21 = vmax.f32 %v4696_v44, 0.0 }
 0x469   :  { %v5125_v38 = vmax.f32 %v4699_v54, 0.0 }
 0x46b   :  { %v8941_v29 = vpack.c.bf16 %v5125_v38, %v5124_v21  ;;  %v9220_v21 = vld [vmem:[#allocation78_spill] sm:$0xff] }
 0x46c   :  { %v3646_v0 = vpop.f32.mrb[144].mxu0 }
 0x46d   :  { %v4704_v14 = vadd.f32 %v9214_v60, %v3646_v0  ;;  %v3648_v45 = vpop.f32.mrb[145].mxu0 }
 0x46e   :  { %v3649_v30 = vpop.f32.mrb[146].mxu0  ;;  %v9221_v45 = vld [vmem:[#allocation79_spill] sm:$0xff] }
 0x46f   :  { %v4707_v32 = vadd.f32 %v9215_v42, %v3649_v30  ;;  %v3651_v15 = vpop.f32.mrb[147].mxu0  ;;  %v5126_v46 = vmax.f32 %v4704_v14, 0.0 }
 0x471   :  { %v5127_v10 = vmax.f32 %v4707_v32, 0.0 }
 0x473   :  { %v8945_v24 = vpack.c.bf16 %v5127_v10, %v5126_v46 }
 0x474   :  { %v3654_v27 = vpop.f32.mrb[148].mxu0 }
 0x475   :  { %v4712_v58 = vadd.f32 %v9216_v48, %v3654_v27  ;;  %v3656_v20 = vpop.f32.mrb[149].mxu0  ;;  %v5224_v12 = vpop.permute.xlu0 %5223  ;;  %v9222_v48 = vld [vmem:[#allocation67_spill] sm:$0xff] }
 0x476   :  { %v3657_v55 = vpop.f32.mrb[150].mxu0  ;;  %v5298_v8 = vadd.f32 %v8931_v16, %v5224_v12 }
 0x477   :  { %v4715_v4 = vadd.f32 %v9217_v35, %v3657_v55  ;;  %v3659_v47 = vpop.f32.mrb[151].mxu0  ;;  %v5128_v41 = vmax.f32 %v4712_v58, 0.0 }
 0x478   :  { %v5373_v9 = vadd.f32 %v6465_v57, %v5298_v8  ;;  %v9223_v57 = vld [vmem:[#allocation69_spill] sm:$0xff] }
 0x479   :  { %v5129_v36 = vmax.f32 %v4715_v4, 0.0 }
 0x47a   :  { %v5448_v60 = vadd.f32 %v6503_v59, %v5373_v9 }
 0x47b   :  { %v8949_v40 = vpack.c.bf16 %v5129_v36, %v5128_v41  ;;  %v9224_v36 = vld [vmem:[#allocation81_spill] sm:$0xff] }
 0x47c   :  { %v3662_v56 = vpop.f32.mrb[152].mxu0  ;;  %v5523_v32 = vadd.f32 %v6541_v11, %v5448_v60 }
 0x47d   :  { %v4720_v7 = vadd.f32 %v9218_v1, %v3662_v56  ;;  %v3664_v2 = vpop.f32.mrb[153].mxu0 }
 0x47e   :  { %v3665_v44 = vpop.f32.mrb[154].mxu0 }
 0x47f   :  { %v4723_v19 = vadd.f32 %v9219_v6, %v3665_v44  ;;  %v3667_v22 = vpop.f32.mrb[155].mxu0  ;;  %v5130_v62 = vmax.f32 %v4720_v7, 0.0  ;;  %v9225_v7 = vld [vmem:[#allocation82_spill] sm:$0xff] }
 0x481   :  { %v5131_v13 = vmax.f32 %v4723_v19, 0.0 }
 0x483   :  { %v8954_v54 = vpack.c.bf16 %v5131_v13, %v5130_v62  ;;  %v9226_v62 = vld [vmem:[#allocation71_spill] sm:$0xff] }
 0x484   :  { %v3670_v43 = vpop.f32.mrb[156].mxu0 }
 0x485   :  { %v4728_v38 = vadd.f32 %v9220_v21, %v3670_v43  ;;  %v3672_v0 = vpop.f32.mrb[157].mxu0  ;;  %v9227_v43 = vld [vmem:[#allocation85_spill] sm:$0xff] }
 0x486   :  { %v3673_v14 = vpop.f32.mrb[158].mxu0 }
 0x487   :  { %v4731_v30 = vadd.f32 %v9221_v45, %v3673_v14  ;;  %v3675_v42 = vpop.f32.mrb[159].mxu0  ;;  %v5132_v15 = vmax.f32 %v4728_v38, 0.0 }
 0x489   :  { %v5133_v46 = vmax.f32 %v4731_v30, 0.0  ;;  %v9228_v30 = vld [vmem:[#allocation83_spill] sm:$0xff] }
 0x48b   :  { %v8958_v10 = vpack.c.bf16 %v5133_v46, %v5132_v15 }
 0x48c   :  { %v3678_v27 = vpop.f32.mrb[160].mxu0 }
 0x48d   :  { %v4736_v16 = vadd.f32 %v9222_v48, %v3678_v27  ;;  %v3680_v58 = vpop.f32.mrb[161].mxu0 }
 0x48e   :  { %v3681_v20 = vpop.f32.mrb[162].mxu0 }
 0x48f   :  { %v4739_v55 = vadd.f32 %v9223_v57, %v3681_v20  ;;  %v3683_v35 = vpop.f32.mrb[163].mxu0  ;;  %v5134_v4 = vmax.f32 %v4736_v16, 0.0  ;;  %v9229_v16 = vld [vmem:[#allocation84_spill] sm:$0xff] }
 0x491   :  { %v5135_v47 = vmax.f32 %v4739_v55, 0.0 }
 0x493   :  { %v7158_v59 = vpack.c.bf16 %v5135_v47, %v5134_v4 }
 0x494   :  { %v3686_v41 = vpop.f32.mrb[164].mxu0 }
 0x495   :  { %v4744_v56 = vadd.f32 %v9224_v36, %v3686_v41  ;;  %v3688_v1 = vpop.f32.mrb[165].mxu0  ;;  %7159 = vmatprep.subr.bf16.mxu1 %v7158_v59 }
 0x496   :  { %v3689_v11 = vpop.f32.mrb[166].mxu0  ;;  %7161 = vmatpush3.bf16.msra.mxu1 %v8925_v49 }
 0x497   :  { %v4747_v2 = vadd.f32 %v9225_v7, %v3689_v11  ;;  %v3691_v44 = vpop.f32.mrb[167].mxu0  ;;  %v5136_v6 = vmax.f32 %v4744_v56, 0.0  ;;  %v9230_v56 = vld [vmem:[#allocation70_spill] sm:$0xff]  ;;  %v9231_v7 = vld [vmem:[#allocation72_spill] sm:$0xff] }
 0x499   :  { %v5137_v19 = vmax.f32 %v4747_v2, 0.0 }
 0x49b   :  { %v7162_v22 = vpack.c.bf16 %v5137_v19, %v5136_v6 }
 0x49c   :  { %v3694_v12 = vpop.f32.mrb[168].mxu0 }
 0x49d   :  { %v4752_v13 = vadd.f32 %v9226_v62, %v3694_v12  ;;  %v3696_v8 = vpop.f32.mrb[169].mxu0  ;;  %7163 = vmatprep.subr.bf16.mxu1 %v7162_v22  ;;  %v9232_v12 = vld [vmem:[#allocation86_spill] sm:$0xff] }
 0x49e   :  { %v3697_v9 = vpop.f32.mrb[170].mxu0  ;;  %7165 = vmatpush3.bf16.msra.mxu1 %v8929_v26  ;;  %v9233_v8 = vld [vmem:[#allocation87_spill] sm:$0xff] }
 0x49f   :  { %v4755_v21 = vadd.f32 %v9227_v43, %v3697_v9  ;;  %v3699_v38 = vpop.f32.mrb[171].mxu0  ;;  %v5138_v0 = vmax.f32 %v4752_v13, 0.0 }
 0x4a1   :  { %v5139_v60 = vmax.f32 %v4755_v21, 0.0 }
 0x4a3   :  { %v7166_v49 = vpack.c.bf16 %v5139_v60, %v5138_v0  ;;  %v9234_v60 = vld [vmem:[#allocation12_spill] sm:$0xff] }
 0x4a4   :  { %v3702_v14 = vpop.f32.mrb[172].mxu0  ;;  %v6574_v45 = vpop.f32.mrb[84].mxu1 }
 0x4a5   :  { %v4760_v42 = vadd.f32 %v9228_v30, %v3702_v14  ;;  %v3704_v15 = vpop.f32.mrb[173].mxu0  ;;  %7167 = vmatprep.subr.bf16.mxu1 %v7166_v49  ;;  %v6575_v46 = vpop.f32.mrb[85].mxu1  ;;  %v9235_v30 = vld [vmem:[#allocation75_spill] sm:$0xff] }
 0x4a6   :  { %v3705_v27 = vpop.f32.mrb[174].mxu0  ;;  %7169 = vmatpush3.bf16.msra.mxu1 %v8935_v18  ;;  %v6576_v48 = vadd.f32 %v6575_v46, %v6574_v45 }
 0x4a7   :  { %v4763_v58 = vadd.f32 %v9229_v16, %v3705_v27  ;;  %v3707_v26 = vpop.f32.mrb[175].mxu0  ;;  %v5140_v55 = vmax.f32 %v4760_v42, 0.0  ;;  %v5194_v16 = vld [vmem:[#allocation7 + $0x60] sm:$0xff] }
 0x4a8   :  { %v8972_v20 = vadd.f32 %v6576_v48, %v8939_v37  ;;  %v6577_v57 = vpop.f32.mrb[86].mxu1  ;;  %v9236_v48 = vld [vmem:[#allocation13_spill] sm:$0xff] }
 0x4a9   :  { %v5141_v35 = vmax.f32 %v4763_v58, 0.0  ;;  %v6578_v4 = vpop.f32.mrb[87].mxu1  ;;  %v5211_v58 = vld [vmem:[#allocation7 + $0xe8] sm:$0xff]  ;;  %v5197_v26 = vld [vmem:[#allocation7 + $0x78] sm:$0xff] }
 0x4aa   :  { %v6579_v47 = vadd.f32 %v6578_v4, %v6577_v57 }
 0x4ab   :  { %v7170_v59 = vpack.c.bf16 %v5141_v35, %v5140_v55 }
 0x4ac   :  { %v3710_v41 = vpop.f32.mrb[176].mxu0  ;;  %v8974_v36 = vadd.f32 %v6579_v47, %v5523_v32 }
 0x4ad   :  { %v4768_v1 = vadd.f32 %v9230_v56, %v3710_v41  ;;  %v3712_v11 = vpop.f32.mrb[177].mxu0  ;;  %7171 = vmatprep.subr.bf16.mxu1 %v7170_v59 }
 0x4ae   :  { %v3713_v18 = vpop.f32.mrb[178].mxu0  ;;  %7173 = vmatpush3.bf16.msra.mxu1 %v8941_v29 }
 0x4af   :  { %v4771_v2 = vadd.f32 %v9231_v7, %v3713_v18  ;;  %v3715_v37 = vpop.f32.mrb[179].mxu0  ;;  %v5142_v44 = vmax.f32 %v4768_v1, 0.0 }
 0x4b1   :  { %v5143_v6 = vmax.f32 %v4771_v2, 0.0 }
 0x4b3   :  { %v7174_v19 = vpack.c.bf16 %v5143_v6, %v5142_v44 }
 0x4b4   :  { %v3718_v22 = vpop.f32.mrb[180].mxu0 }
 0x4b5   :  { %v4776_v62 = vadd.f32 %v9232_v12, %v3718_v22  ;;  %v3720_v13 = vpop.f32.mrb[181].mxu0  ;;  %7175 = vmatprep.subr.bf16.mxu1 %v7174_v19 }
 0x4b6   :  { %v3721_v32 = vpop.f32.mrb[182].mxu0  ;;  %7177 = vmatpush3.bf16.msra.mxu1 %v8945_v24 }
 0x4b7   :  { %v4779_v9 = vadd.f32 %v9233_v8, %v3721_v32  ;;  %v3723_v43 = vpop.f32.mrb[183].mxu0  ;;  %v5144_v21 = vmax.f32 %v4776_v62, 0.0 }
 0x4b9   :  { %v5145_v38 = vmax.f32 %v4779_v9, 0.0 }
 0x4bb   :  { %v7178_v29 = vpack.c.bf16 %v5145_v38, %v5144_v21 }
 0x4bc   :  { %v3726_v0 = vpop.f32.mrb[184].mxu0 }
 0x4bd   :  { %v4784_v49 = vadd.f32 %v9234_v60, %v3726_v0  ;;  %v3728_v14 = vpop.f32.mrb[185].mxu0  ;;  %7179 = vmatprep.subr.bf16.mxu1 %v7178_v29 }
 0x4be   :  { %v3729_v45 = vpop.f32.mrb[186].mxu0  ;;  %7181 = vmatpush3.bf16.msra.mxu1 %v8949_v40  ;;  %v5210_v40 = vld [vmem:[#allocation7 + $0xe0] sm:$0xff] }
 0x4bf   :  { %v4787_v42 = vadd.f32 %v9235_v30, %v3729_v45  ;;  %v3731_v15 = vpop.f32.mrb[187].mxu0  ;;  %v5146_v46 = vmax.f32 %v4784_v49, 0.0 }
 0x4c1   :  { %v5147_v27 = vmax.f32 %v4787_v42, 0.0 }
 0x4c3   :  { %v7182_v24 = vpack.c.bf16 %v5147_v27, %v5146_v46 }
 0x4c5   :  { %7183 = vmatprep.subr.bf16.mxu1 %v7182_v24 }
 0x4c6   :  { %7185 = vmatpush3.bf16.msra.mxu1 %v8954_v54 }
 0x4c7   :  { %7187 = vmatprep.subr.bf16.mxu1 %v9236_v48 }
 0x4ca   :  { %7189 = vmatpush3.bf16.msra.mxu1 %v8958_v10 }
 0x4cb   :  { %7191 = vmatprep.subr.bf16.mxu1 %v8828_v50 }
 0x4cd   :  { %5741 = vmatmul.mubr.f32.vlgmr.msra.gmra.mrb[92].mxu1 %v5194_v16 }
 0x4ce   :  { %7193 = vmatpush3.bf16.msra.mxu1 %v8784_v39  ;;  %5745 = vmatprep.mubr.f32.mxu1 %v5211_v58  ;;  %v5213_v39 = vld [vmem:[#allocation7 + $0xf8] sm:$0xff] }
 0x4cf   :  { %7195 = vmatprep.subr.bf16.mxu1 %v8826_v53 }
 0x4d1   :  { %5746 = vmatmul.mubr.f32.gmra.mrb[94].mxu1 %v5210_v40 }
 0x4d2   :  { %7197 = vmatpush3.bf16.msra.mxu1 %v8782_v34  ;;  %5815 = vmatprep.mubr.f32.mxu1 %v5197_v26  ;;  %v5196_v34 = vld [vmem:[#allocation7 + $0x70] sm:$0xff] }
 0x4d3   :  { %7199 = vmatprep.subr.bf16.mxu1 %v8839_v25 }
 0x4d6   :  { %7201 = vmatpush3.bf16.msra.mxu1 %v8795_v33 }
 0x4d7   :  { %7203 = vmatprep.subr.bf16.mxu1 %v8837_v61 }
 0x4da   :  { %7205 = vmatpush3.bf16.msra.mxu1 %v8793_v5  ;;  %v5212_v5 = vld [vmem:[#allocation7 + $0xf0] sm:$0xff] }
 0x4db   :  { %7207 = vmatprep.subr.bf16.mxu1 %v8850_v28 }
 0x4de   :  { %7209 = vmatpush3.bf16.msra.mxu1 %v8806_v63 }
 0x4df   :  { %7211 = vmatprep.subr.bf16.mxu1 %v8848_v31 }
 0x4e2   :  { %7213 = vmatpush3.bf16.msra.mxu1 %v8804_v3 }
 0x4e3   :  { %7215 = vmatprep.subr.bf16.mxu1 %v8863_v51 }
 0x4e6   :  { %7217 = vmatpush3.bf16.msra.mxu1 %v8817_v52 }
 0x4e7   :  { %7219 = vmatprep.subr.bf16.mxu1 %v8861_v17 }
 0x4ea   :  { %7221 = vmatpush3.bf16.msra.mxu1 %v8815_v23 }
 0x4ed   :  { %5816 = vmatmul.mubr.f32.vlgmr.msra.gmra.mrb[96].mxu1 %v5196_v34 }
 0x4ee   :  { %5820 = vmatprep.mubr.f32.mxu1 %v5213_v39 }
 0x4f1   :  { %5821 = vmatmul.mubr.f32.gmra.mrb[98].mxu1 %v5212_v5 }
 0x524   :  { %v6612_v33 = vpop.f32.mrb[88].mxu1 }
 0x525   :  { %v6613_v63 = vpop.f32.mrb[89].mxu1 }
 0x526   :  { %v6614_v53 = vadd.f32 %v6613_v63, %v6612_v33 }
 0x528   :  { %v5668_v50 = vadd.f32 %v6614_v53, %v8972_v20  ;;  %v6615_v3 = vpop.f32.mrb[90].mxu1 }
 0x529   :  { %v6616_v61 = vpop.f32.mrb[91].mxu1 }
 0x52a   :  { %v6617_v25 = vadd.f32 %v6616_v61, %v6615_v3 }
 0x52c   :  { %v5673_v52 = vadd.f32 %v6617_v25, %v8974_v36 }
 0x5a0   :  { %v6650_v31 = vpop.f32.mrb[92].mxu1 }
 0x5a1   :  { %v6651_v28 = vpop.f32.mrb[93].mxu1 }
 0x5a2   :  { %v6652_v17 = vadd.f32 %v6651_v28, %v6650_v31 }
 0x5a4   :  { %v5743_v23 = vadd.f32 %v6652_v17, %v5668_v50  ;;  %v6653_v51 = vpop.f32.mrb[94].mxu1 }
 0x5a5   :  { %v6654_v54 = vpop.f32.mrb[95].mxu1 }
 0x5a6   :  { %v6655_v10 = vadd.f32 %v6654_v54, %v6653_v51 }
 0x5a8   :  { %v5748_v57 = vadd.f32 %v6655_v10, %v5673_v52 }
 0x5c0   :  { %v6688_v55 = vpop.f32.mrb[96].mxu1 }
 0x5c1   :  { %v6689_v35 = vpop.f32.mrb[97].mxu1 }
 0x5c2   :  { %v6690_v4 = vadd.f32 %v6689_v35, %v6688_v55 }
 0x5c4   :  { %v5818_v47 = vadd.f32 %v6690_v4, %v5743_v23  ;;  %v6691_v59 = vpop.f32.mrb[98].mxu1 }
 0x5c5   :  { %v6692_v41 = vpop.f32.mrb[99].mxu1 }
 0x5c6   :  { %5826 = vst [vmem:[#allocation8] sm:$0xff] %v5818_v47  ;;  %v6693_v20 = vadd.f32 %v6692_v41, %v6691_v59 }
 0x5c8   :  { %v5823_v56 = vadd.f32 %v6693_v20, %v5748_v57 }
 0x5ca   :  { %5827 = vst [vmem:[#allocation8 + $0x8] sm:$0xff] %v5823_v56 }
 0x5cb   :  { %7880 = shalt.err (!%p7877_p0)
}
 0x5cc   :  { %s7881_s10 = scalar_lea.hbm %s9024_s4, 256 }
 0x5cd   :  { %p7882_p1 = scmp.ne.s32.totalorder %s9024_s4, %s7881_s10  ;;  %p7885_p2 = scmp.lt.u32.totalorder %s7881_s10, %s9024_s4 }
 0x5cf   :  { %p7887_p3 = pnand %p7885_p2, %p7882_p1 }
 0x5d1   :  { %7890 = shalt.err (!%p7887_p3)
}
 0x5d2   :  { %s7908_s14 = smov 8  }
 0x5d3   :  { %5839 = dma.vmem_to_hbm [thread:$0]  %s5834_s6, 256, %s9024_s4, [#allocation4], %s7905_s26, %s7905_s26, %s7908_s14  }
 0x5d4   :  { %7895 = dma.done.wait [#allocation4], 256  }
 0x5d5   :  { %7896 = vsyncadd [#allocation4], 4294967040 }
 0x5d6   :  { %5843 = vsyncpa [#allocation3], 1 }
 0x5d7   :  { %5844 = vsyncpa [#allocation6], 1 }
 0x5d8   :  { %5845 = vsyncpa [#allocation4], 1 }

</bundles_post_ra>
